<compile_context>
chip_gen: v6e
topology: v6e:2x2x1
jax: 0.10.0
libtpu: 0.0.40
codegen_flags: <defaults>
</compile_context>

<pallas_src>
import functools

import jax
import jax.numpy as jnp
import numpy as np
from jax.experimental import pallas as pl
from jax.experimental.pallas import tpu as pltpu

EPS = 1e-5


# ---------------------------------------------------------------------------
# Pallas kernels
# ---------------------------------------------------------------------------
def _mm_bias_relu_bn_kernel(p_ref, w_ref, aff_ref, o_ref):
    """Row-tile matmul fused with +bias, ReLU and BatchNorm affine (scale/shift)."""
    acc = jnp.dot(p_ref[...], w_ref[...], preferred_element_type=jnp.float32)
    aff = aff_ref[...]                                   # (3, Cout): bias/scale/shift
    acc = acc + aff[0:1, :]
    acc = jnp.maximum(acc, 0.0)                          # ReLU
    acc = acc * aff[1:2, :] + aff[2:3, :]                # BatchNorm (running stats)
    o_ref[...] = acc.astype(o_ref.dtype)


def _deconv3_logsoftmax_kernel(p_ref, w_ref, b_ref, o_ref, *, n_valid):
    """Final deconv (phase form, 16 columns) + LogSoftmax over the whole map."""
    x = jnp.dot(p_ref[0], w_ref[...], preferred_element_type=jnp.float32)
    x = x + b_ref[...]                                   # (Rp, 16)
    rows = jax.lax.broadcasted_iota(jnp.int32, x.shape, 0)
    valid = rows < n_valid                               # mask padded rows
    xm = jnp.where(valid, x, -1e30)
    m = jnp.max(xm, axis=-1, keepdims=True)
    m = jnp.max(m, axis=-2, keepdims=True)               # (1, 1)
    e = jnp.where(valid, jnp.exp(x - m), 0.0)
    s = jnp.sum(e, axis=-1, keepdims=True)
    s = jnp.sum(s, axis=-2, keepdims=True)               # (1, 1)
    o_ref[0] = (x - m - jnp.log(s)).astype(o_ref.dtype)


# ---------------------------------------------------------------------------
# Pallas wrappers
# ---------------------------------------------------------------------------
def _round_up(x, m):
    return (x + m - 1) // m * m


def _row_tile(rows, max_tile=256):
    """Row tile (multiple of 8, <= max_tile) minimizing padding; >=2 grid steps."""
    r8 = _round_up(rows, 8)
    n_steps = -(-r8 // max_tile)                      # ceil
    if n_steps == 1 and rows > 16:
        # Split in two so the input DMA pipelines and a second TensorCore
        # (v7x) has work.
        n_steps = 2
    rt = _round_up(-(-rows // n_steps), 8)
    return rt, _round_up(rows, rt)


def mm_bias_relu_bn(p2d, w_mat, aff, *, max_tile=256):
    """p2d: [R, K] (batch folded into rows), w_mat: [K, C], aff: [3, C] -> [R, C]."""
    R, K = p2d.shape
    C = w_mat.shape[1]
    rt, rp = _row_tile(R, max_tile)
    if rp != R:
        p2d = jnp.pad(p2d, ((0, rp - R), (0, 0)))
    out = pl.pallas_call(
        _mm_bias_relu_bn_kernel,
        out_shape=jax.ShapeDtypeStruct((rp, C), jnp.float32),
        grid_spec=pltpu.PrefetchScalarGridSpec(
            num_scalar_prefetch=0,
            grid=(rp // rt,),
            in_specs=[
                pl.BlockSpec((rt, K), lambda r: (r, 0)),
                pl.BlockSpec((K, C), lambda r: (0, 0)),   # weights stay resident
                pl.BlockSpec((3, C), lambda r: (0, 0)),   # affine stays resident
            ],
            out_specs=pl.BlockSpec((rt, C), lambda r: (r, 0)),
        ),
        compiler_params=pltpu.CompilerParams(dimension_semantics=("parallel",)),
    )(p2d, w_mat, aff)
    return out if rp == R else out[:R]


def deconv3_logsoftmax_call(p, w_mat, b_cols, *, n_valid):
    """p: [B, Rp, K], w_mat: [K, 16], b_cols: [1, 16] -> log-softmaxed [B, Rp, 16]."""
    B, Rp, K = p.shape
    C = w_mat.shape[1]
    kernel = functools.partial(_deconv3_logsoftmax_kernel, n_valid=n_valid)
    return pl.pallas_call(
        kernel,
        out_shape=jax.ShapeDtypeStruct((B, Rp, C), jnp.float32),
        grid_spec=pltpu.PrefetchScalarGridSpec(
            num_scalar_prefetch=0,
            grid=(B,),
            in_specs=[
                pl.BlockSpec((1, Rp, K), lambda b: (b, 0, 0)),
                pl.BlockSpec((K, C), lambda b: (0, 0)),
                pl.BlockSpec((1, C), lambda b: (0, 0)),
            ],
            out_specs=pl.BlockSpec((1, Rp, C), lambda b: (b, 0, 0)),
        ),
        compiler_params=pltpu.CompilerParams(dimension_semantics=("parallel",)),
    )(p, w_mat, b_cols)


# ---------------------------------------------------------------------------
# Plain-JAX glue: im2col, weight / affine packing
# ---------------------------------------------------------------------------
def im2col(x, k, s):
    """x: [B, H, W, C] -> ([B, OH*OW, k*k*C], OH, OW); K ordered (kh, kw, c)."""
    B, H, W, C = x.shape
    OH = (H - k) // s + 1
    OW = (W - k) // s + 1
    cols = []
    for kh in range(k):
        for kw in range(k):
            cols.append(x[:, kh:kh + (OH - 1) * s + 1:s,
                          kw:kw + (OW - 1) * s + 1:s, :])
    p = jnp.stack(cols, axis=3)                       # [B, OH, OW, k*k, C]
    return p.reshape(B, OH * OW, k * k * C), OH, OW


def _conv_w_mat(w):
    # torch Conv2d weight [Cout, Cin, kh, kw] -> [kh*kw*Cin, Cout]
    cout, cin, kh, kw = w.shape
    return jnp.transpose(w, (2, 3, 1, 0)).reshape(kh * kw * cin, cout)


def _deconv_phase_w_mat(w, s):
    # torch ConvTranspose2d weight [Cin, Cout, k, k] -> sub-pixel weight matrix
    # [(t*t*Cin), (s*s*Cout)], t = k // s.  Row order (a, b, c) matches im2col;
    # column order (p, q, co) matches the depth-to-space interleave.
    # Per phase (p, q): y[s*m+p, s*n+q, co] = sum_{a,b,c} xpad[m+a, n+b, c]
    #                                         * W[c, co, p + s*(t-1-a), q + s*(t-1-b)]
    cin, cout, k, _ = w.shape
    t = k // s
    w6 = w.reshape(cin, cout, t, s, t, s)             # [c, co, dh, p, dw, q]
    w6 = jnp.flip(w6, axis=(2, 4))                    # dh -> a = t-1-dh (dw -> b)
    w6 = jnp.transpose(w6, (2, 4, 0, 3, 5, 1))        # [a, b, c, p, q, co]
    return w6.reshape(t * t * cin, s * s * cout)


def _affine(bias, bn, n_phases=1):
    """Pack (bias, BN scale, BN shift) into one [3, n_phases*Cout] operand."""
    g, b, m, v = bn
    scale = g / jnp.sqrt(v + EPS)
    shift = b - m * scale
    return jnp.stack([jnp.tile(bias, n_phases),
                      jnp.tile(scale, n_phases),
                      jnp.tile(shift, n_phases)], axis=0)


# ---------------------------------------------------------------------------
# Forward pass (Pallas path)
# ---------------------------------------------------------------------------
def gaze_prediction_forward(x_nchw, P):
    B = x_nchw.shape[0]
    x = jnp.transpose(x_nchw, (0, 2, 3, 1)).astype(jnp.float32)     # NCHW -> NHWC

    def conv_block(x, w_t, b_t, bn, k, s):
        p, oh, ow = im2col(x, k, s)
        wm = _conv_w_mat(w_t)
        y = mm_bias_relu_bn(p.reshape(B * oh * ow, -1), wm, _affine(b_t, bn))
        return y.reshape(B, oh, ow, wm.shape[1])

    def deconv_block(x, w_t, b_t, bn, k, s):
        cout = w_t.shape[1]
        t = k // s
        xp = jnp.pad(x, ((0, 0), (t - 1, t - 1), (t - 1, t - 1), (0, 0)))
        p, oh, ow = im2col(xp, t, 1)                  # per-phase spatial grid
        wm = _deconv_phase_w_mat(w_t, s)              # [t*t*Cin, s*s*Cout]
        y = mm_bias_relu_bn(p.reshape(B * oh * ow, -1), wm,
                            _affine(b_t, bn, n_phases=s * s))
        y = y.reshape(B, oh, ow, s, s, cout)
        y = jnp.transpose(y, (0, 1, 3, 2, 4, 5))      # depth-to-space interleave
        return y.reshape(B, oh * s, ow * s, cout)

    def deconv3_logsoftmax(x, w_t, b_t, k, s):
        t = k // s
        xp = jnp.pad(x, ((0, 0), (t - 1, t - 1), (t - 1, t - 1), (0, 0)))
        p, oh, ow = im2col(xp, t, 1)                  # [B, 441, 128]
        R = oh * ow
        Rp = _round_up(R, 8)
        p = jnp.pad(p, ((0, 0), (0, Rp - R), (0, 0)))
        wm = _deconv_phase_w_mat(w_t, s)              # [128, 16]
        b_cols = jnp.tile(b_t, s * s)[None, :]        # [1, 16]
        y = deconv3_logsoftmax_call(p, wm, b_cols, n_valid=R)   # already log-softmaxed
        y = y[:, :R, :].reshape(B, oh, ow, s, s)
        y = jnp.transpose(y, (0, 1, 3, 2, 4))         # depth-to-space interleave
        return y.reshape(B, oh * s, ow * s)

    x = conv_block(x, P["conv1_w"], P["conv1_b"], P["bn1"], 8, 4)        # [B,20,20,32]
    x = conv_block(x, P["conv2_w"], P["conv2_b"], P["bn2"], 4, 2)        # [B, 9, 9,64]
    x = conv_block(x, P["conv3_w"], P["conv3_b"], P["bn3"], 3, 1)        # [B, 7, 7,64]
    x = deconv_block(x, P["deconv1_w"], P["deconv1_b"], P["bn4"], 3, 1)  # [B, 9, 9,64]
    x = deconv_block(x, P["deconv2_w"], P["deconv2_b"], P["bn5"], 4, 2)  # [B,20,20,32]
    return deconv3_logsoftmax(x, P["deconv3_w"], P["deconv3_b"], 8, 4)   # [B,84,84]


# ---------------------------------------------------------------------------
# Pure-JAX reference (for correctness check) and parameter init
# ---------------------------------------------------------------------------
def _bn_ref(x, g, b, m, v):
    return (g[None, :, None, None] * (x - m[None, :, None, None])
            / jnp.sqrt(v[None, :, None, None] + EPS) + b[None, :, None, None])


def reference_forward(x, P):
    hp = jax.lax.Precision.HIGHEST

    def conv(x, w, b, s):
        y = jax.lax.conv_general_dilated(
            x, w, (s, s), "VALID",
            dimension_numbers=("NCHW", "OIHW", "NCHW"), precision=hp)
        return y + b[None, :, None, None]

    def deconv(x, w, b, s, k):
        rhs = jnp.flip(w, (2, 3)).transpose(1, 0, 2, 3)
        y = jax.lax.conv_general_dilated(
            x, rhs, (1, 1), [(k - 1, k - 1)] * 2, lhs_dilation=(s, s),
            dimension_numbers=("NCHW", "OIHW", "NCHW"), precision=hp)
        return y + b[None, :, None, None]

    x = _bn_ref(jnp.maximum(conv(x, P["conv1_w"], P["conv1_b"], 4), 0.0), *P["bn1"])
    x = _bn_ref(jnp.maximum(conv(x, P["conv2_w"], P["conv2_b"], 2), 0.0), *P["bn2"])
    x = _bn_ref(jnp.maximum(conv(x, P["conv3_w"], P["conv3_b"], 1), 0.0), *P["bn3"])
    x = _bn_ref(jnp.maximum(deconv(x, P["deconv1_w"], P["deconv1_b"], 1, 3), 0.0), *P["bn4"])
    x = _bn_ref(jnp.maximum(deconv(x, P["deconv2_w"], P["deconv2_b"], 2, 4), 0.0), *P["bn5"])
    x = deconv(x, P["deconv3_w"], P["deconv3_b"], 4, 8)
    x = x.reshape(x.shape[0], -1)
    x = jax.nn.log_softmax(x, axis=1)
    return x.reshape(x.shape[0], 84, 84)


def init_params(key):
    keys = jax.random.split(key, 32)
    ki = iter(keys)

    def w(shape, scale=0.05):
        return scale * jax.random.normal(next(ki), shape, jnp.float32)

    def bn(c):
        g = 1.0 + 0.1 * jax.random.normal(next(ki), (c,), jnp.float32)
        b = 0.1 * jax.random.normal(next(ki), (c,), jnp.float32)
        m = 0.1 * jax.random.normal(next(ki), (c,), jnp.float32)
        v = 1.0 + 0.1 * jax.random.uniform(next(ki), (c,), jnp.float32)
        return (g, b, m, v)

    P = {}
    P["conv1_w"] = w((32, 4, 8, 8));    P["conv1_b"] = w((32,), 0.01)
    P["conv2_w"] = w((64, 32, 4, 4));   P["conv2_b"] = w((64,), 0.01)
    P["conv3_w"] = w((64, 64, 3, 3));   P["conv3_b"] = w((64,), 0.01)
    P["deconv1_w"] = w((64, 64, 3, 3)); P["deconv1_b"] = w((64,), 0.01)
    P["deconv2_w"] = w((64, 32, 4, 4)); P["deconv2_b"] = w((32,), 0.01)
    P["deconv3_w"] = w((32, 1, 8, 8));  P["deconv3_b"] = w((1,), 0.01)
    P["bn1"] = bn(32); P["bn2"] = bn(64); P["bn3"] = bn(64)
    P["bn4"] = bn(64); P["bn5"] = bn(32)
    return P


if __name__ == "__main__":
    key = jax.random.PRNGKey(0)
    pkey, xkey = jax.random.split(key)
    params = init_params(pkey)
    # Input forced to 84x84 by the module's final .view(B, 84, 84).
    x = jax.random.uniform(xkey, (2, 4, 84, 84), jnp.float32)

    out = jax.block_until_ready(jax.jit(gaze_prediction_forward)(x, params))
    assert out.shape == (2, 84, 84), out.shape

    ref = jax.block_until_ready(jax.jit(reference_forward)(x, params))
    np.testing.assert_allclose(np.asarray(out), np.asarray(ref),
                               atol=5e-3, rtol=5e-3)
    # log-softmax sanity: exp(out) sums to 1 per batch element
    sums = np.exp(np.asarray(out)).reshape(2, -1).sum(axis=1)
    np.testing.assert_allclose(sums, 1.0, atol=1e-3)

    print("KERNEL_OK")
</pallas_src>

<mosaic_0001>
module attributes {stable_mosaic.version = 11 : i64} {
  func.func @_mm_bias_relu_bn_kernel(%arg0: i32, %arg1: memref<200x256xf32, #tpu.memory_space<vmem>>, %arg2: memref<256x32xf32, #tpu.memory_space<vmem>>, %arg3: memref<3x32xf32, #tpu.memory_space<vmem>>, %arg4: memref<200x32xf32, #tpu.memory_space<vmem>>) attributes {dimension_semantics = [#tpu.dimension_semantics<parallel>], iteration_bounds = array<i64: 4>, scalar_prefetch = 0 : i64, scratch_operands = 0 : i64, tpu.core_type = #tpu.core_type<tc>, window_params = [{transform_indices = @transform_0, window_bounds = array<i64: 200, 256>}, {pipeline_mode = #tpu.pipeline_mode<synchronous>, transform_indices = @transform_1, window_bounds = array<i64: 256, 32>}, {pipeline_mode = #tpu.pipeline_mode<synchronous>, transform_indices = @transform_2, window_bounds = array<i64: 3, 32>}, {transform_indices = @transform_3, window_bounds = array<i64: 200, 32>}]} {
    %c0 = arith.constant 0 : index
    %c0_0 = arith.constant 0 : index
    %0 = vector.load %arg1[%c0, %c0_0] : memref<200x256xf32, #tpu.memory_space<vmem>>, vector<200x256xf32>
    %c0_1 = arith.constant 0 : index
    %c0_2 = arith.constant 0 : index
    %1 = vector.load %arg2[%c0_1, %c0_2] : memref<256x32xf32, #tpu.memory_space<vmem>>, vector<256x32xf32>
    %cst = arith.constant dense<0.000000e+00> : vector<200x32xf32>
    %2 = tpu.matmul %0, %1, %cst {dimension_numbers = #tpu.dot_dimension_numbers<[1], [0], [0], [1], [0, 0, 1, 1], [], []>} : vector<200x256xf32>, vector<256x32xf32>, vector<200x32xf32> -> vector<200x32xf32>
    %c0_3 = arith.constant 0 : index
    %c0_4 = arith.constant 0 : index
    %3 = vector.load %arg3[%c0_3, %c0_4] : memref<3x32xf32, #tpu.memory_space<vmem>>, vector<3x32xf32>
    %4 = vector.extract_strided_slice %3 {offsets = [0, 0], sizes = [1, 32], strides = [1, 1]} : vector<3x32xf32> to vector<1x32xf32>
    %5 = vector.broadcast %4 : vector<1x32xf32> to vector<200x32xf32>
    %6 = arith.addf %2, %5 : vector<200x32xf32>
    %cst_5 = arith.constant 0.000000e+00 : f32
    %7 = vector.broadcast %cst_5 : f32 to vector<200x32xf32>
    %8 = arith.maximumf %6, %7 : vector<200x32xf32>
    %9 = vector.extract_strided_slice %3 {offsets = [1, 0], sizes = [1, 32], strides = [1, 1]} : vector<3x32xf32> to vector<1x32xf32>
    %10 = vector.broadcast %9 : vector<1x32xf32> to vector<200x32xf32>
    %11 = arith.mulf %8, %10 : vector<200x32xf32>
    %12 = vector.extract_strided_slice %3 {offsets = [2, 0], sizes = [1, 32], strides = [1, 1]} : vector<3x32xf32> to vector<1x32xf32>
    %13 = vector.broadcast %12 : vector<1x32xf32> to vector<200x32xf32>
    %14 = arith.addf %11, %13 : vector<200x32xf32>
    %c0_6 = arith.constant 0 : index
    %c0_7 = arith.constant 0 : index
    %15 = vector.load %arg4[%c0_6, %c0_7] : memref<200x32xf32, #tpu.memory_space<vmem>>, vector<200x32xf32>
    tpu.vector_store %arg4[%c0_6, %c0_7], %14 {strides = array<i32>} : memref<200x32xf32, #tpu.memory_space<vmem>>, vector<200x32xf32>,
    return
  }
  func.func @transform_0(%arg0: i32) -> (i32, i32) {
    %c0_i32 = arith.constant 0 : i32
    %c0_i32_0 = arith.constant 0 : i32
    return %arg0, %c0_i32 : i32, i32
  }
  func.func @transform_1(%arg0: i32) -> (i32, i32) {
    %c0_i32 = arith.constant 0 : i32
    %c0_i32_0 = arith.constant 0 : i32
    %c0_i32_1 = arith.constant 0 : i32
    return %c0_i32, %c0_i32_0 : i32, i32
  }
  func.func @transform_2(%arg0: i32) -> (i32, i32) {
    %c0_i32 = arith.constant 0 : i32
    %c0_i32_0 = arith.constant 0 : i32
    %c0_i32_1 = arith.constant 0 : i32
    return %c0_i32, %c0_i32_0 : i32, i32
  }
  func.func @transform_3(%arg0: i32) -> (i32, i32) {
    %c0_i32 = arith.constant 0 : i32
    %c0_i32_0 = arith.constant 0 : i32
    return %arg0, %c0_i32 : i32, i32
  }
}

module attributes {stable_mosaic.version = 11 : i64} {
  func.func @_mm_bias_relu_bn_kernel(%arg0: i32, %arg1: memref<88x512xf32, #tpu.memory_space<vmem>>, %arg2: memref<512x64xf32, #tpu.memory_space<vmem>>, %arg3: memref<3x64xf32, #tpu.memory_space<vmem>>, %arg4: memref<88x64xf32, #tpu.memory_space<vmem>>) attributes {dimension_semantics = [#tpu.dimension_semantics<parallel>], iteration_bounds = array<i64: 2>, scalar_prefetch = 0 : i64, scratch_operands = 0 : i64, tpu.core_type = #tpu.core_type<tc>, window_params = [{transform_indices = @transform_0, window_bounds = array<i64: 88, 512>}, {pipeline_mode = #tpu.pipeline_mode<synchronous>, transform_indices = @transform_1, window_bounds = array<i64: 512, 64>}, {pipeline_mode = #tpu.pipeline_mode<synchronous>, transform_indices = @transform_2, window_bounds = array<i64: 3, 64>}, {transform_indices = @transform_3, window_bounds = array<i64: 88, 64>}]} {
    %c0 = arith.constant 0 : index
    %c0_0 = arith.constant 0 : index
    %0 = vector.load %arg1[%c0, %c0_0] : memref<88x512xf32, #tpu.memory_space<vmem>>, vector<88x512xf32>
    %c0_1 = arith.constant 0 : index
    %c0_2 = arith.constant 0 : index
    %1 = vector.load %arg2[%c0_1, %c0_2] : memref<512x64xf32, #tpu.memory_space<vmem>>, vector<512x64xf32>
    %cst = arith.constant dense<0.000000e+00> : vector<88x64xf32>
    %2 = tpu.matmul %0, %1, %cst {dimension_numbers = #tpu.dot_dimension_numbers<[1], [0], [0], [1], [0, 0, 1, 1], [], []>} : vector<88x512xf32>, vector<512x64xf32>, vector<88x64xf32> -> vector<88x64xf32>
    %c0_3 = arith.constant 0 : index
    %c0_4 = arith.constant 0 : index
    %3 = vector.load %arg3[%c0_3, %c0_4] : memref<3x64xf32, #tpu.memory_space<vmem>>, vector<3x64xf32>
    %4 = vector.extract_strided_slice %3 {offsets = [0, 0], sizes = [1, 64], strides = [1, 1]} : vector<3x64xf32> to vector<1x64xf32>
    %5 = vector.broadcast %4 : vector<1x64xf32> to vector<88x64xf32>
    %6 = arith.addf %2, %5 : vector<88x64xf32>
    %cst_5 = arith.constant 0.000000e+00 : f32
    %7 = vector.broadcast %cst_5 : f32 to vector<88x64xf32>
    %8 = arith.maximumf %6, %7 : vector<88x64xf32>
    %9 = vector.extract_strided_slice %3 {offsets = [1, 0], sizes = [1, 64], strides = [1, 1]} : vector<3x64xf32> to vector<1x64xf32>
    %10 = vector.broadcast %9 : vector<1x64xf32> to vector<88x64xf32>
    %11 = arith.mulf %8, %10 : vector<88x64xf32>
    %12 = vector.extract_strided_slice %3 {offsets = [2, 0], sizes = [1, 64], strides = [1, 1]} : vector<3x64xf32> to vector<1x64xf32>
    %13 = vector.broadcast %12 : vector<1x64xf32> to vector<88x64xf32>
    %14 = arith.addf %11, %13 : vector<88x64xf32>
    %c0_6 = arith.constant 0 : index
    %c0_7 = arith.constant 0 : index
    %15 = vector.load %arg4[%c0_6, %c0_7] : memref<88x64xf32, #tpu.memory_space<vmem>>, vector<88x64xf32>
    tpu.vector_store %arg4[%c0_6, %c0_7], %14 {strides = array<i32>} : memref<88x64xf32, #tpu.memory_space<vmem>>, vector<88x64xf32>,
    return
  }
  func.func @transform_0(%arg0: i32) -> (i32, i32) {
    %c0_i32 = arith.constant 0 : i32
    %c0_i32_0 = arith.constant 0 : i32
    return %arg0, %c0_i32 : i32, i32
  }
  func.func @transform_1(%arg0: i32) -> (i32, i32) {
    %c0_i32 = arith.constant 0 : i32
    %c0_i32_0 = arith.constant 0 : i32
    %c0_i32_1 = arith.constant 0 : i32
    return %c0_i32, %c0_i32_0 : i32, i32
  }
  func.func @transform_2(%arg0: i32) -> (i32, i32) {
    %c0_i32 = arith.constant 0 : i32
    %c0_i32_0 = arith.constant 0 : i32
    %c0_i32_1 = arith.constant 0 : i32
    return %c0_i32, %c0_i32_0 : i32, i32
  }
  func.func @transform_3(%arg0: i32) -> (i32, i32) {
    %c0_i32 = arith.constant 0 : i32
    %c0_i32_0 = arith.constant 0 : i32
    return %arg0, %c0_i32 : i32, i32
  }
}

module attributes {stable_mosaic.version = 11 : i64} {
  func.func @_mm_bias_relu_bn_kernel(%arg0: i32, %arg1: memref<56x576xf32, #tpu.memory_space<vmem>>, %arg2: memref<576x64xf32, #tpu.memory_space<vmem>>, %arg3: memref<3x64xf32, #tpu.memory_space<vmem>>, %arg4: memref<56x64xf32, #tpu.memory_space<vmem>>) attributes {dimension_semantics = [#tpu.dimension_semantics<parallel>], iteration_bounds = array<i64: 2>, scalar_prefetch = 0 : i64, scratch_operands = 0 : i64, tpu.core_type = #tpu.core_type<tc>, window_params = [{transform_indices = @transform_0, window_bounds = array<i64: 56, 576>}, {pipeline_mode = #tpu.pipeline_mode<synchronous>, transform_indices = @transform_1, window_bounds = array<i64: 576, 64>}, {pipeline_mode = #tpu.pipeline_mode<synchronous>, transform_indices = @transform_2, window_bounds = array<i64: 3, 64>}, {transform_indices = @transform_3, window_bounds = array<i64: 56, 64>}]} {
    %c0 = arith.constant 0 : index
    %c0_0 = arith.constant 0 : index
    %0 = vector.load %arg1[%c0, %c0_0] : memref<56x576xf32, #tpu.memory_space<vmem>>, vector<56x576xf32>
    %c0_1 = arith.constant 0 : index
    %c0_2 = arith.constant 0 : index
    %1 = vector.load %arg2[%c0_1, %c0_2] : memref<576x64xf32, #tpu.memory_space<vmem>>, vector<576x64xf32>
    %cst = arith.constant dense<0.000000e+00> : vector<56x64xf32>
    %2 = tpu.matmul %0, %1, %cst {dimension_numbers = #tpu.dot_dimension_numbers<[1], [0], [0], [1], [0, 0, 1, 1], [], []>} : vector<56x576xf32>, vector<576x64xf32>, vector<56x64xf32> -> vector<56x64xf32>
    %c0_3 = arith.constant 0 : index
    %c0_4 = arith.constant 0 : index
    %3 = vector.load %arg3[%c0_3, %c0_4] : memref<3x64xf32, #tpu.memory_space<vmem>>, vector<3x64xf32>
    %4 = vector.extract_strided_slice %3 {offsets = [0, 0], sizes = [1, 64], strides = [1, 1]} : vector<3x64xf32> to vector<1x64xf32>
    %5 = vector.broadcast %4 : vector<1x64xf32> to vector<56x64xf32>
    %6 = arith.addf %2, %5 : vector<56x64xf32>
    %cst_5 = arith.constant 0.000000e+00 : f32
    %7 = vector.broadcast %cst_5 : f32 to vector<56x64xf32>
    %8 = arith.maximumf %6, %7 : vector<56x64xf32>
    %9 = vector.extract_strided_slice %3 {offsets = [1, 0], sizes = [1, 64], strides = [1, 1]} : vector<3x64xf32> to vector<1x64xf32>
    %10 = vector.broadcast %9 : vector<1x64xf32> to vector<56x64xf32>
    %11 = arith.mulf %8, %10 : vector<56x64xf32>
    %12 = vector.extract_strided_slice %3 {offsets = [2, 0], sizes = [1, 64], strides = [1, 1]} : vector<3x64xf32> to vector<1x64xf32>
    %13 = vector.broadcast %12 : vector<1x64xf32> to vector<56x64xf32>
    %14 = arith.addf %11, %13 : vector<56x64xf32>
    %c0_6 = arith.constant 0 : index
    %c0_7 = arith.constant 0 : index
    %15 = vector.load %arg4[%c0_6, %c0_7] : memref<56x64xf32, #tpu.memory_space<vmem>>, vector<56x64xf32>
    tpu.vector_store %arg4[%c0_6, %c0_7], %14 {strides = array<i32>} : memref<56x64xf32, #tpu.memory_space<vmem>>, vector<56x64xf32>,
    return
  }
  func.func @transform_0(%arg0: i32) -> (i32, i32) {
    %c0_i32 = arith.constant 0 : i32
    %c0_i32_0 = arith.constant 0 : i32
    return %arg0, %c0_i32 : i32, i32
  }
  func.func @transform_1(%arg0: i32) -> (i32, i32) {
    %c0_i32 = arith.constant 0 : i32
    %c0_i32_0 = arith.constant 0 : i32
    %c0_i32_1 = arith.constant 0 : i32
    return %c0_i32, %c0_i32_0 : i32, i32
  }
  func.func @transform_2(%arg0: i32) -> (i32, i32) {
    %c0_i32 = arith.constant 0 : i32
    %c0_i32_0 = arith.constant 0 : i32
    %c0_i32_1 = arith.constant 0 : i32
    return %c0_i32, %c0_i32_0 : i32, i32
  }
  func.func @transform_3(%arg0: i32) -> (i32, i32) {
    %c0_i32 = arith.constant 0 : i32
    %c0_i32_0 = arith.constant 0 : i32
    return %arg0, %c0_i32 : i32, i32
  }
}

module attributes {stable_mosaic.version = 11 : i64} {
  func.func @_mm_bias_relu_bn_kernel(%arg0: i32, %arg1: memref<88x576xf32, #tpu.memory_space<vmem>>, %arg2: memref<576x64xf32, #tpu.memory_space<vmem>>, %arg3: memref<3x64xf32, #tpu.memory_space<vmem>>, %arg4: memref<88x64xf32, #tpu.memory_space<vmem>>) attributes {dimension_semantics = [#tpu.dimension_semantics<parallel>], iteration_bounds = array<i64: 2>, scalar_prefetch = 0 : i64, scratch_operands = 0 : i64, tpu.core_type = #tpu.core_type<tc>, window_params = [{transform_indices = @transform_0, window_bounds = array<i64: 88, 576>}, {pipeline_mode = #tpu.pipeline_mode<synchronous>, transform_indices = @transform_1, window_bounds = array<i64: 576, 64>}, {pipeline_mode = #tpu.pipeline_mode<synchronous>, transform_indices = @transform_2, window_bounds = array<i64: 3, 64>}, {transform_indices = @transform_3, window_bounds = array<i64: 88, 64>}]} {
    %c0 = arith.constant 0 : index
    %c0_0 = arith.constant 0 : index
    %0 = vector.load %arg1[%c0, %c0_0] : memref<88x576xf32, #tpu.memory_space<vmem>>, vector<88x576xf32>
    %c0_1 = arith.constant 0 : index
    %c0_2 = arith.constant 0 : index
    %1 = vector.load %arg2[%c0_1, %c0_2] : memref<576x64xf32, #tpu.memory_space<vmem>>, vector<576x64xf32>
    %cst = arith.constant dense<0.000000e+00> : vector<88x64xf32>
    %2 = tpu.matmul %0, %1, %cst {dimension_numbers = #tpu.dot_dimension_numbers<[1], [0], [0], [1], [0, 0, 1, 1], [], []>} : vector<88x576xf32>, vector<576x64xf32>, vector<88x64xf32> -> vector<88x64xf32>
    %c0_3 = arith.constant 0 : index
    %c0_4 = arith.constant 0 : index
    %3 = vector.load %arg3[%c0_3, %c0_4] : memref<3x64xf32, #tpu.memory_space<vmem>>, vector<3x64xf32>
    %4 = vector.extract_strided_slice %3 {offsets = [0, 0], sizes = [1, 64], strides = [1, 1]} : vector<3x64xf32> to vector<1x64xf32>
    %5 = vector.broadcast %4 : vector<1x64xf32> to vector<88x64xf32>
    %6 = arith.addf %2, %5 : vector<88x64xf32>
    %cst_5 = arith.constant 0.000000e+00 : f32
    %7 = vector.broadcast %cst_5 : f32 to vector<88x64xf32>
    %8 = arith.maximumf %6, %7 : vector<88x64xf32>
    %9 = vector.extract_strided_slice %3 {offsets = [1, 0], sizes = [1, 64], strides = [1, 1]} : vector<3x64xf32> to vector<1x64xf32>
    %10 = vector.broadcast %9 : vector<1x64xf32> to vector<88x64xf32>
    %11 = arith.mulf %8, %10 : vector<88x64xf32>
    %12 = vector.extract_strided_slice %3 {offsets = [2, 0], sizes = [1, 64], strides = [1, 1]} : vector<3x64xf32> to vector<1x64xf32>
    %13 = vector.broadcast %12 : vector<1x64xf32> to vector<88x64xf32>
    %14 = arith.addf %11, %13 : vector<88x64xf32>
    %c0_6 = arith.constant 0 : index
    %c0_7 = arith.constant 0 : index
    %15 = vector.load %arg4[%c0_6, %c0_7] : memref<88x64xf32, #tpu.memory_space<vmem>>, vector<88x64xf32>
    tpu.vector_store %arg4[%c0_6, %c0_7], %14 {strides = array<i32>} : memref<88x64xf32, #tpu.memory_space<vmem>>, vector<88x64xf32>,
    return
  }
  func.func @transform_0(%arg0: i32) -> (i32, i32) {
    %c0_i32 = arith.constant 0 : i32
    %c0_i32_0 = arith.constant 0 : i32
    return %arg0, %c0_i32 : i32, i32
  }
  func.func @transform_1(%arg0: i32) -> (i32, i32) {
    %c0_i32 = arith.constant 0 : i32
    %c0_i32_0 = arith.constant 0 : i32
    %c0_i32_1 = arith.constant 0 : i32
    return %c0_i32, %c0_i32_0 : i32, i32
  }
  func.func @transform_2(%arg0: i32) -> (i32, i32) {
    %c0_i32 = arith.constant 0 : i32
    %c0_i32_0 = arith.constant 0 : i32
    %c0_i32_1 = arith.constant 0 : i32
    return %c0_i32, %c0_i32_0 : i32, i32
  }
  func.func @transform_3(%arg0: i32) -> (i32, i32) {
    %c0_i32 = arith.constant 0 : i32
    %c0_i32_0 = arith.constant 0 : i32
    return %arg0, %c0_i32 : i32, i32
  }
}

module attributes {stable_mosaic.version = 11 : i64} {
  func.func @_mm_bias_relu_bn_kernel(%arg0: i32, %arg1: memref<104x256xf32, #tpu.memory_space<vmem>>, %arg2: memref<256x128xf32, #tpu.memory_space<vmem>>, %arg3: memref<3x128xf32, #tpu.memory_space<vmem>>, %arg4: memref<104x128xf32, #tpu.memory_space<vmem>>) attributes {dimension_semantics = [#tpu.dimension_semantics<parallel>], iteration_bounds = array<i64: 2>, scalar_prefetch = 0 : i64, scratch_operands = 0 : i64, tpu.core_type = #tpu.core_type<tc>, window_params = [{transform_indices = @transform_0, window_bounds = array<i64: 104, 256>}, {pipeline_mode = #tpu.pipeline_mode<synchronous>, transform_indices = @transform_1, window_bounds = array<i64: 256, 128>}, {pipeline_mode = #tpu.pipeline_mode<synchronous>, transform_indices = @transform_2, window_bounds = array<i64: 3, 128>}, {transform_indices = @transform_3, window_bounds = array<i64: 104, 128>}]} {
    %c0 = arith.constant 0 : index
    %c0_0 = arith.constant 0 : index
    %0 = vector.load %arg1[%c0, %c0_0] : memref<104x256xf32, #tpu.memory_space<vmem>>, vector<104x256xf32>
    %c0_1 = arith.constant 0 : index
    %c0_2 = arith.constant 0 : index
    %1 = vector.load %arg2[%c0_1, %c0_2] : memref<256x128xf32, #tpu.memory_space<vmem>>, vector<256x128xf32>
    %cst = arith.constant dense<0.000000e+00> : vector<104x128xf32>
    %2 = tpu.matmul %0, %1, %cst {dimension_numbers = #tpu.dot_dimension_numbers<[1], [0], [0], [1], [0, 0, 1, 1], [], []>} : vector<104x256xf32>, vector<256x128xf32>, vector<104x128xf32> -> vector<104x128xf32>
    %c0_3 = arith.constant 0 : index
    %c0_4 = arith.constant 0 : index
    %3 = vector.load %arg3[%c0_3, %c0_4] : memref<3x128xf32, #tpu.memory_space<vmem>>, vector<3x128xf32>
    %4 = vector.extract_strided_slice %3 {offsets = [0, 0], sizes = [1, 128], strides = [1, 1]} : vector<3x128xf32> to vector<1x128xf32>
    %5 = vector.broadcast %4 : vector<1x128xf32> to vector<104x128xf32>
    %6 = arith.addf %2, %5 : vector<104x128xf32>
    %cst_5 = arith.constant 0.000000e+00 : f32
    %7 = vector.broadcast %cst_5 : f32 to vector<104x128xf32>
    %8 = arith.maximumf %6, %7 : vector<104x128xf32>
    %9 = vector.extract_strided_slice %3 {offsets = [1, 0], sizes = [1, 128], strides = [1, 1]} : vector<3x128xf32> to vector<1x128xf32>
    %10 = vector.broadcast %9 : vector<1x128xf32> to vector<104x128xf32>
    %11 = arith.mulf %8, %10 : vector<104x128xf32>
    %12 = vector.extract_strided_slice %3 {offsets = [2, 0], sizes = [1, 128], strides = [1, 1]} : vector<3x128xf32> to vector<1x128xf32>
    %13 = vector.broadcast %12 : vector<1x128xf32> to vector<104x128xf32>
    %14 = arith.addf %11, %13 : vector<104x128xf32>
    %c0_6 = arith.constant 0 : index
    %c0_7 = arith.constant 0 : index
    %15 = vector.load %arg4[%c0_6, %c0_7] : memref<104x128xf32, #tpu.memory_space<vmem>>, vector<104x128xf32>
    tpu.vector_store %arg4[%c0_6, %c0_7], %14 {strides = array<i32>} : memref<104x128xf32, #tpu.memory_space<vmem>>, vector<104x128xf32>,
    return
  }
  func.func @transform_0(%arg0: i32) -> (i32, i32) {
    %c0_i32 = arith.constant 0 : i32
    %c0_i32_0 = arith.constant 0 : i32
    return %arg0, %c0_i32 : i32, i32
  }
  func.func @transform_1(%arg0: i32) -> (i32, i32) {
    %c0_i32 = arith.constant 0 : i32
    %c0_i32_0 = arith.constant 0 : i32
    %c0_i32_1 = arith.constant 0 : i32
    return %c0_i32, %c0_i32_0 : i32, i32
  }
  func.func @transform_2(%arg0: i32) -> (i32, i32) {
    %c0_i32 = arith.constant 0 : i32
    %c0_i32_0 = arith.constant 0 : i32
    %c0_i32_1 = arith.constant 0 : i32
    return %c0_i32, %c0_i32_0 : i32, i32
  }
  func.func @transform_3(%arg0: i32) -> (i32, i32) {
    %c0_i32 = arith.constant 0 : i32
    %c0_i32_0 = arith.constant 0 : i32
    return %arg0, %c0_i32 : i32, i32
  }
}

module attributes {stable_mosaic.version = 11 : i64} {
  func.func @_deconv3_logsoftmax_kernel(%arg0: i32, %arg1: memref<1x448x128xf32, #tpu.memory_space<vmem>>, %arg2: memref<128x16xf32, #tpu.memory_space<vmem>>, %arg3: memref<1x16xf32, #tpu.memory_space<vmem>>, %arg4: memref<1x448x16xf32, #tpu.memory_space<vmem>>) attributes {dimension_semantics = [#tpu.dimension_semantics<parallel>], iteration_bounds = array<i64: 2>, scalar_prefetch = 0 : i64, scratch_operands = 0 : i64, tpu.core_type = #tpu.core_type<tc>, window_params = [{transform_indices = @transform_0, window_bounds = array<i64: 1, 448, 128>}, {pipeline_mode = #tpu.pipeline_mode<synchronous>, transform_indices = @transform_1, window_bounds = array<i64: 128, 16>}, {pipeline_mode = #tpu.pipeline_mode<synchronous>, transform_indices = @transform_2, window_bounds = array<i64: 1, 16>}, {transform_indices = @transform_3, window_bounds = array<i64: 1, 448, 16>}]} {
    %c0 = arith.constant 0 : index
    %c0_0 = arith.constant 0 : index
    %c0_1 = arith.constant 0 : index
    %0 = vector.load %arg1[%c0, %c0_0, %c0_1] : memref<1x448x128xf32, #tpu.memory_space<vmem>>, vector<1x448x128xf32>
    %1 = vector.shape_cast %0 : vector<1x448x128xf32> to vector<448x128xf32>
    %c0_2 = arith.constant 0 : index
    %c0_3 = arith.constant 0 : index
    %2 = vector.load %arg2[%c0_2, %c0_3] : memref<128x16xf32, #tpu.memory_space<vmem>>, vector<128x16xf32>
    %cst = arith.constant dense<0.000000e+00> : vector<448x16xf32>
    %3 = tpu.matmul %1, %2, %cst {dimension_numbers = #tpu.dot_dimension_numbers<[1], [0], [0], [1], [0, 0, 1, 1], [], []>} : vector<448x128xf32>, vector<128x16xf32>, vector<448x16xf32> -> vector<448x16xf32>
    %c0_4 = arith.constant 0 : index
    %c0_5 = arith.constant 0 : index
    %4 = vector.load %arg3[%c0_4, %c0_5] : memref<1x16xf32, #tpu.memory_space<vmem>>, vector<1x16xf32>
    %5 = vector.broadcast %4 : vector<1x16xf32> to vector<448x16xf32>
    %6 = arith.addf %3, %5 : vector<448x16xf32>
    %7 = tpu.iota {dimensions = array<i32: 0>} : vector<448x16xi32>
    %c441_i32 = arith.constant 441 : i32
    %8 = vector.broadcast %c441_i32 : i32 to vector<448x16xi32>
    %9 = arith.cmpi slt, %7, %8 : vector<448x16xi32>
    %cst_6 = arith.constant -1.000000e+30 : f32
    %10 = vector.broadcast %cst_6 : f32 to vector<448x16xf32>
    %11 = arith.select %9, %6, %10 : vector<448x16xi1>, vector<448x16xf32>
    %cst_7 = arith.constant dense<0xFF800000> : vector<448xf32>
    %12 = vector.multi_reduction <maximumf>, %11, %cst_7 [1] : vector<448x16xf32> to vector<448xf32>
    %13 = vector.shape_cast %12 : vector<448xf32> to vector<448x1xf32>
    %cst_8 = arith.constant dense<0xFF800000> : vector<1xf32>
    %14 = vector.multi_reduction <maximumf>, %13, %cst_8 [0] : vector<448x1xf32> to vector<1xf32>
    %15 = vector.shape_cast %14 : vector<1xf32> to vector<1x1xf32>
    %16 = vector.broadcast %15 : vector<1x1xf32> to vector<448x16xf32>
    %17 = arith.subf %6, %16 : vector<448x16xf32>
    %18 = math.exp %17 : vector<448x16xf32>
    %cst_9 = arith.constant 0.000000e+00 : f32
    %19 = vector.broadcast %cst_9 : f32 to vector<448x16xf32>
    %20 = arith.select %9, %18, %19 : vector<448x16xi1>, vector<448x16xf32>
    %cst_10 = arith.constant dense<0.000000e+00> : vector<448xf32>
    %21 = vector.multi_reduction <add>, %20, %cst_10 [1] : vector<448x16xf32> to vector<448xf32>
    %22 = vector.shape_cast %21 : vector<448xf32> to vector<448x1xf32>
    %cst_11 = arith.constant dense<0.000000e+00> : vector<1xf32>
    %23 = vector.multi_reduction <add>, %22, %cst_11 [0] : vector<448x1xf32> to vector<1xf32>
    %24 = vector.shape_cast %23 : vector<1xf32> to vector<1x1xf32>
    %25 = vector.broadcast %15 : vector<1x1xf32> to vector<448x16xf32>
    %26 = arith.subf %6, %25 : vector<448x16xf32>
    %27 = math.log %24 : vector<1x1xf32>
    %28 = vector.broadcast %27 : vector<1x1xf32> to vector<448x16xf32>
    %29 = arith.subf %26, %28 : vector<448x16xf32>
    %c0_12 = arith.constant 0 : index
    %c0_13 = arith.constant 0 : index
    %c0_14 = arith.constant 0 : index
    %30 = vector.load %arg4[%c0_12, %c0_13, %c0_14] : memref<1x448x16xf32, #tpu.memory_space<vmem>>, vector<1x448x16xf32>
    %31 = vector.shape_cast %30 : vector<1x448x16xf32> to vector<448x16xf32>
    %32 = vector.shape_cast %29 : vector<448x16xf32> to vector<1x448x16xf32>
    tpu.vector_store %arg4[%c0_12, %c0_13, %c0_14], %32 {strides = array<i32>} : memref<1x448x16xf32, #tpu.memory_space<vmem>>, vector<1x448x16xf32>,
    return
  }
  func.func @transform_0(%arg0: i32) -> (i32, i32, i32) {
    %c0_i32 = arith.constant 0 : i32
    %c0_i32_0 = arith.constant 0 : i32
    %c0_i32_1 = arith.constant 0 : i32
    return %arg0, %c0_i32, %c0_i32_0 : i32, i32, i32
  }
  func.func @transform_1(%arg0: i32) -> (i32, i32) {
    %c0_i32 = arith.constant 0 : i32
    %c0_i32_0 = arith.constant 0 : i32
    %c0_i32_1 = arith.constant 0 : i32
    return %c0_i32, %c0_i32_0 : i32, i32
  }
  func.func @transform_2(%arg0: i32) -> (i32, i32) {
    %c0_i32 = arith.constant 0 : i32
    %c0_i32_0 = arith.constant 0 : i32
    %c0_i32_1 = arith.constant 0 : i32
    return %c0_i32, %c0_i32_0 : i32, i32
  }
  func.func @transform_3(%arg0: i32) -> (i32, i32, i32) {
    %c0_i32 = arith.constant 0 : i32
    %c0_i32_0 = arith.constant 0 : i32
    %c0_i32_1 = arith.constant 0 : i32
    return %arg0, %c0_i32, %c0_i32_0 : i32, i32, i32
  }
}

</mosaic_0001>

<bundles_post_ra>
// kernel: gaze_prediction_forward.6
= control target key start
LH: loop header
LB: loop body
LE: loop exit
PB: predicated region body
PF: predicated region fallthrough
CT: control target
= control target key end

     0   :  { %s732_s12 = smov 0   ;;  %s1103_s0 = inlined_call_operand.vmem [shape: f32[800,256], index: 0, kind: input, shape index: {}]   ;;  %s1104_s1 = inlined_call_operand.vmem [shape: f32[256,32], index: 1, kind: input, shape index: {}]   ;;  %s1105_s2 = inlined_call_operand.vmem [shape: f32[3,32], index: 2, kind: input, shape index: {}]   ;;  %s1106_s3 = inlined_call_operand.vmem [shape: f32[800,32], index: 3, kind: output, shape index: {}]  }
   0x1 LB: > { %s619_s13 = sadd.s32 4294967295, %s709_s12   ;;  %p623_p0 = scmp.ge.s32.totalorder %s709_s12, 1  ;;  %s709_s12 = sphi %s732_s12, %s13_s12  }
   0x2   : > { %p139_p1 = scmp.lt.s32.totalorder %s709_s12, 5 }
   0x4   : > { %p140_p2 = pnand %p623_p0, %p139_p1 }
   0x5   : > { %s164_s6 = smul.u32 (!%p140_p2), 25, %s619_s13 }
   0x6   : > { %143 = sbr.rel (%p140_p2) target bundleno = 326 (0x146), region = 32 }
   0x7   : > { %p165_p3 = scmp.lt.s32.totalorder (!%p140_p2), %s164_s6, 99 }
   0xb   : > { %v242_v0 = vld [vmem:[%s1104_s1 + $0x78] sm:$0xff]  ;;  %v711_v1 = vmov 0.0   ;;  %v241_v2 = vld [vmem:[%s1104_s1 + $0x70] sm:$0xff]  ;;  %v240_v3 = vld [vmem:[%s1104_s1 + $0x68] sm:$0xff]  ;;  %s1108_s6 = smov (!%p165_p3, %s164_s6), 99  ;;  %vm537_vm0 = vcmask 261120  }
   0xc   : > { %264 = vmatprep.subr.mxu0 %v711_v1  ;;  %630 = vmatprep.subr.mxu1 %v711_v1  ;;  %v239_v4 = vld [vmem:[%s1104_s1 + $0x60] sm:$0xff]  ;;  %v238_v5 = vld [vmem:[%s1104_s1 + $0x58] sm:$0xff]  ;;  %v237_v6 = vld [vmem:[%s1104_s1 + $0x50] sm:$0xff]  ;;  %s629_s20 = sshll.u32 %s1108_s6, 4  ;;  %s626_s8 = sshll.u32 %s1108_s6, 3 }
   0xd   : > { %265 = vmatpush1.msra.mxu0 %v242_v0  ;;  %662 = vmatpush1.msra.mxu1 %v242_v0  ;;  %v236_v7 = vld [vmem:[%s1104_s1 + $0x48] sm:$0xff]  ;;  %v235_v8 = vld [vmem:[%s1104_s1 + $0x40] sm:$0xff]  ;;  %v234_v9 = vld [vmem:[%s1104_s1 + $0x38] sm:$0xff]  ;;  %s896_s27 = scalar_lea.vmem %s1103_s0, %s629_s20  ;;  %s977_s13 = scalar_lea.vmem %s1106_s3, %s626_s8 }
   0xe   : > { %266 = vmatprep.subr.mxu0 %v711_v1  ;;  %631 = vmatprep.subr.mxu1 %v711_v1  ;;  %v233_v10 = vld [vmem:[%s1104_s1 + $0x30] sm:$0xff]  ;;  %v232_v11 = vld [vmem:[%s1104_s1 + $0x28] sm:$0xff]  ;;  %v231_v12 = vld [vmem:[%s1104_s1 + $0x20] sm:$0xff] }
   0xf   : > { %267 = vmatpush1.msra.mxu0 %v241_v2  ;;  %663 = vmatpush1.msra.mxu1 %v241_v2  ;;  %v230_v13 = vld [vmem:[%s1104_s1 + $0x18] sm:$0xff]  ;;  %v229_v14 = vld [vmem:[%s1104_s1 + $0x10] sm:$0xff]  ;;  %v228_v15 = vld [vmem:[%s1104_s1 + $0x8] sm:$0xff] }
  0x10   : > { %268 = vmatprep.subr.mxu0 %v711_v1  ;;  %632 = vmatprep.subr.mxu1 %v711_v1  ;;  %v227_v16 = vld [vmem:[%s1104_s1] sm:$0xff]  ;;  %v258_v17 = vld [vmem:[%s1104_s1 + $0xf8] sm:$0xff]  ;;  %v257_v18 = vld [vmem:[%s1104_s1 + $0xf0] sm:$0xff] }
  0x11   : > { %269 = vmatpush1.msra.mxu0 %v240_v3  ;;  %664 = vmatpush1.msra.mxu1 %v240_v3  ;;  %v256_v19 = vld [vmem:[%s1104_s1 + $0xe8] sm:$0xff]  ;;  %v255_v20 = vld [vmem:[%s1104_s1 + $0xe0] sm:$0xff]  ;;  %v254_v21 = vld [vmem:[%s1104_s1 + $0xd8] sm:$0xff] }
  0x12   : > { %270 = vmatprep.subr.mxu0 %v711_v1  ;;  %633 = vmatprep.subr.mxu1 %v711_v1  ;;  %v253_v22 = vld [vmem:[%s1104_s1 + $0xd0] sm:$0xff]  ;;  %v252_v23 = vld [vmem:[%s1104_s1 + $0xc8] sm:$0xff]  ;;  %v251_v24 = vld [vmem:[%s1104_s1 + $0xc0] sm:$0xff] }
  0x13   : > { %271 = vmatpush1.msra.mxu0 %v239_v4  ;;  %665 = vmatpush1.msra.mxu1 %v239_v4  ;;  %v250_v25 = vld [vmem:[%s1104_s1 + $0xb8] sm:$0xff]  ;;  %v249_v26 = vld [vmem:[%s1104_s1 + $0xb0] sm:$0xff]  ;;  %v248_v27 = vld [vmem:[%s1104_s1 + $0xa8] sm:$0xff] }
  0x14   : > { %272 = vmatprep.subr.mxu0 %v711_v1  ;;  %634 = vmatprep.subr.mxu1 %v711_v1  ;;  %v247_v28 = vld [vmem:[%s1104_s1 + $0xa0] sm:$0xff]  ;;  %v246_v29 = vld [vmem:[%s1104_s1 + $0x98] sm:$0xff]  ;;  %v245_v30 = vld [vmem:[%s1104_s1 + $0x90] sm:$0xff] }
  0x15   : > { %273 = vmatpush1.msra.mxu0 %v238_v5  ;;  %666 = vmatpush1.msra.mxu1 %v238_v5  ;;  %v244_v31 = vld [vmem:[%s1104_s1 + $0x88] sm:$0xff]  ;;  %v243_v33 = vld [vmem:[%s1104_s1 + $0x80] sm:$0xff]  ;;  %v204_v35 = vld [vmem:[%s896_s27 + $0xd8] sm:$0xff] }
  0x16   : > { %274 = vmatprep.subr.mxu0 %v711_v1  ;;  %635 = vmatprep.subr.mxu1 %v711_v1  ;;  %v178_v32 = vld [vmem:[%s896_s27 + $0x8] sm:$0xff]  ;;  %v177_v34 = vld [vmem:[%s896_s27] sm:$0xff]  ;;  %v180_v36 = vld [vmem:[%s896_s27 + $0x18] sm:$0xff] }
  0x17   : > { %275 = vmatpush1.msra.mxu0 %v237_v6  ;;  %667 = vmatpush1.msra.mxu1 %v237_v6  ;;  %v203_v37 = vld [vmem:[%s896_s27 + $0xd0] sm:$0xff]  ;;  %v206_v38 = vld [vmem:[%s896_s27 + $0xe8] sm:$0xff]  ;;  %v205_v41 = vld [vmem:[%s896_s27 + $0xe0] sm:$0xff] }
  0x18   : > { %276 = vmatprep.subr.mxu0 %v711_v1  ;;  %636 = vmatprep.subr.mxu1 %v711_v1  ;;  %v179_v39 = vld [vmem:[%s896_s27 + $0x10] sm:$0xff]  ;;  %v182_v40 = vld [vmem:[%s896_s27 + $0x28] sm:$0xff]  ;;  %v208_v42 = vld [vmem:[%s896_s27 + $0xf8] sm:$0xff] }
  0x19   : > { %277 = vmatpush1.msra.mxu0 %v236_v7  ;;  %668 = vmatpush1.msra.mxu1 %v236_v7  ;;  %v181_v43 = vld [vmem:[%s896_s27 + $0x20] sm:$0xff]  ;;  %v184_v44 = vld [vmem:[%s896_s27 + $0x38] sm:$0xff]  ;;  %v207_v45 = vld [vmem:[%s896_s27 + $0xf0] sm:$0xff] }
  0x1a   : > { %278 = vmatprep.subr.mxu0 %v711_v1  ;;  %637 = vmatprep.subr.mxu1 %v711_v1  ;;  %v210_v46 = vld [vmem:[%s896_s27 + $0x108] sm:$0xff]  ;;  %v183_v47 = vld [vmem:[%s896_s27 + $0x30] sm:$0xff]  ;;  %v209_v49 = vld [vmem:[%s896_s27 + $0x100] sm:$0xff] }
  0x1b   : > { %279 = vmatpush1.msra.mxu0 %v235_v8  ;;  %669 = vmatpush1.msra.mxu1 %v235_v8  ;;  %v186_v48 = vld [vmem:[%s896_s27 + $0x48] sm:$0xff]  ;;  %v212_v50 = vld [vmem:[%s896_s27 + $0x118] sm:$0xff]  ;;  %v185_v51 = vld [vmem:[%s896_s27 + $0x40] sm:$0xff] }
  0x1c   : > { %280 = vmatprep.subr.mxu0 %v711_v1  ;;  %638 = vmatprep.subr.mxu1 %v711_v1  ;;  %v188_v52 = vld [vmem:[%s896_s27 + $0x58] sm:$0xff]  ;;  %v211_v53 = vld [vmem:[%s896_s27 + $0x110] sm:$0xff]  ;;  %v214_v54 = vld [vmem:[%s896_s27 + $0x128] sm:$0xff] }
  0x1d   : > { %281 = vmatpush1.msra.mxu0 %v234_v9  ;;  %670 = vmatpush1.msra.mxu1 %v234_v9  ;;  %v187_v55 = vld [vmem:[%s896_s27 + $0x50] sm:$0xff]  ;;  %v190_v56 = vld [vmem:[%s896_s27 + $0x68] sm:$0xff]  ;;  %v213_v57 = vld [vmem:[%s896_s27 + $0x120] sm:$0xff] }
  0x1e   : > { %282 = vmatprep.subr.mxu0 %v711_v1  ;;  %639 = vmatprep.subr.mxu1 %v711_v1  ;;  %v216_v58 = vld [vmem:[%s896_s27 + $0x138] sm:$0xff]  ;;  %v189_v59 = vld [vmem:[%s896_s27 + $0x60] sm:$0xff]  ;;  %v215_v61 = vld [vmem:[%s896_s27 + $0x130] sm:$0xff] }
  0x1f   : > { %283 = vmatpush1.msra.mxu0 %v233_v10  ;;  %671 = vmatpush1.msra.mxu1 %v233_v10  ;;  %v192_v60 = vld [vmem:[%s896_s27 + $0x78] sm:$0xff]  ;;  %v218_v62 = vld [vmem:[%s896_s27 + $0x148] sm:$0xff]  ;;  %v191_v63 = vld [vmem:[%s896_s27 + $0x70] sm:$0xff] }
  0x20   : > { %284 = vmatprep.subr.mxu0 %v711_v1  ;;  %640 = vmatprep.subr.mxu1 %v711_v1  ;;  %v194_v0 = vld [vmem:[%s896_s27 + $0x88] sm:$0xff]  ;;  %v220_v2 = vld [vmem:[%s896_s27 + $0x158] sm:$0xff]  ;;  %v193_v3 = vld [vmem:[%s896_s27 + $0x80] sm:$0xff] }
  0x21   : > { %285 = vmatpush1.msra.mxu0 %v232_v11  ;;  %672 = vmatpush1.msra.mxu1 %v232_v11  ;;  %v196_v4 = vld [vmem:[%s896_s27 + $0x98] sm:$0xff]  ;;  %v219_v5 = vld [vmem:[%s896_s27 + $0x150] sm:$0xff]  ;;  %v222_v6 = vld [vmem:[%s896_s27 + $0x168] sm:$0xff] }
  0x22   : > { %286 = vmatprep.subr.mxu0 %v711_v1  ;;  %641 = vmatprep.subr.mxu1 %v711_v1  ;;  %v195_v7 = vld [vmem:[%s896_s27 + $0x90] sm:$0xff]  ;;  %v198_v8 = vld [vmem:[%s896_s27 + $0xa8] sm:$0xff]  ;;  %v221_v9 = vld [vmem:[%s896_s27 + $0x160] sm:$0xff] }
  0x23   : > { %287 = vmatpush1.msra.mxu0 %v231_v12  ;;  %673 = vmatpush1.msra.mxu1 %v231_v12  ;;  %v224_v10 = vld [vmem:[%s896_s27 + $0x178] sm:$0xff]  ;;  %v197_v11 = vld [vmem:[%s896_s27 + $0xa0] sm:$0xff] }
  0x24   : > { %288 = vmatprep.subr.mxu0 %v711_v1  ;;  %642 = vmatprep.subr.mxu1 %v711_v1  ;;  %v200_v12 = vld [vmem:[%s896_s27 + $0xb8] sm:$0xff] }
  0x25   : > { %289 = vmatpush1.msra.mxu0 %v230_v13  ;;  %674 = vmatpush1.msra.mxu1 %v230_v13  ;;  %v223_v13 = vld [vmem:[%s896_s27 + $0x170] sm:$0xff] }
  0x26   : > { %290 = vmatprep.subr.mxu0 %v711_v1  ;;  %643 = vmatprep.subr.mxu1 %v711_v1 }
  0x27   : > { %291 = vmatpush1.msra.mxu0 %v229_v14  ;;  %675 = vmatpush1.msra.mxu1 %v229_v14  ;;  %v226_v14 = vld [vmem:[%s896_s27 + $0x188] sm:$0xff] }
  0x28   : > { %292 = vmatprep.subr.mxu0 %v711_v1  ;;  %644 = vmatprep.subr.mxu1 %v711_v1 }
  0x29   : > { %293 = vmatpush1.msra.mxu0 %v228_v15  ;;  %676 = vmatpush1.msra.mxu1 %v228_v15  ;;  %v199_v15 = vld [vmem:[%s896_s27 + $0xb0] sm:$0xff] }
  0x2a   : > { %294 = vmatprep.subr.mxu0 %v711_v1  ;;  %645 = vmatprep.subr.mxu1 %v711_v1 }
  0x2b   : > { %295 = vmatpush1.msra.mxu0 %v227_v16  ;;  %677 = vmatpush1.msra.mxu1 %v227_v16  ;;  %v202_v16 = vld [vmem:[%s896_s27 + $0xc8] sm:$0xff] }
  0x2c   : > { %296 = vmatprep.subr.mxu0 %v711_v1  ;;  %646 = vmatprep.subr.mxu1 %v711_v1 }
  0x2d   : > { %297 = vmatpush2.msra.mxu0 %v258_v17  ;;  %678 = vmatpush2.msra.mxu1 %v258_v17  ;;  %v225_v17 = vld [vmem:[%s896_s27 + $0x180] sm:$0xff] }
  0x2e   : > { %298 = vmatprep.subr.mxu0 %v711_v1  ;;  %647 = vmatprep.subr.mxu1 %v711_v1 }
  0x2f   : > { %299 = vmatpush2.msra.mxu0 %v257_v18  ;;  %679 = vmatpush2.msra.mxu1 %v257_v18  ;;  %v201_v18 = vld [vmem:[%s896_s27 + $0xc0] sm:$0xff] }
  0x30   : > { %300 = vmatprep.subr.mxu0 %v711_v1  ;;  %648 = vmatprep.subr.mxu1 %v711_v1 }
  0x31   : > { %301 = vmatpush2.msra.mxu0 %v256_v19  ;;  %680 = vmatpush2.msra.mxu1 %v256_v19  ;;  %v260_v19 = vlaneseq }
  0x32   : > { %302 = vmatprep.subr.mxu0 %v711_v1  ;;  %649 = vmatprep.subr.mxu1 %v711_v1 }
  0x33   : > { %303 = vmatpush2.msra.mxu0 %v255_v20  ;;  %681 = vmatpush2.msra.mxu1 %v255_v20  ;;  %v261_v20 = vshrl.u32 %v260_v19, 7 }
  0x34   : > { %304 = vmatprep.subr.mxu0 %v711_v1  ;;  %650 = vmatprep.subr.mxu1 %v711_v1 }
  0x35   : > { %305 = vmatpush2.msra.mxu0 %v254_v21  ;;  %682 = vmatpush2.msra.mxu1 %v254_v21  ;;  %v262_v21 = vsub.s32 0, %v261_v20 }
  0x36   : > { %306 = vmatprep.subr.mxu0 %v711_v1  ;;  %651 = vmatprep.subr.mxu1 %v711_v1 }
  0x37   : > { %307 = vmatpush2.msra.mxu0 %v253_v22  ;;  %683 = vmatpush2.msra.mxu1 %v253_v22  ;;  %v259_v22 = vld [vmem:[%s1105_s2] sm:$0x7] }
  0x38   : > { %308 = vmatprep.subr.mxu0 %v711_v1  ;;  %652 = vmatprep.subr.mxu1 %v711_v1 }
  0x39   : > { %309 = vmatpush2.msra.mxu0 %v252_v23  ;;  %684 = vmatpush2.msra.mxu1 %v252_v23  ;;  %v963_v23 = vrot.slane %v259_v22, %v262_v21 }
  0x3a   : > { %310 = vmatprep.subr.mxu0 %v711_v1  ;;  %653 = vmatprep.subr.mxu1 %v711_v1 }
  0x3b   : > { %311 = vmatpush2.msra.mxu0 %v251_v24  ;;  %685 = vmatpush2.msra.mxu1 %v251_v24  ;;  %v481_v24 = vsub.s32 1, %v261_v20 }
  0x3c   : > { %312 = vmatprep.subr.mxu0 %v711_v1  ;;  %654 = vmatprep.subr.mxu1 %v711_v1 }
  0x3d   : > { %313 = vmatpush2.msra.mxu0 %v250_v25  ;;  %686 = vmatpush2.msra.mxu1 %v250_v25  ;;  %v510_v25 = vsub.s32 2, %v261_v20 }
  0x3e   : > { %314 = vmatprep.subr.mxu0 %v711_v1  ;;  %655 = vmatprep.subr.mxu1 %v711_v1 }
  0x3f   : > { %315 = vmatpush2.msra.mxu0 %v249_v26  ;;  %687 = vmatpush2.msra.mxu1 %v249_v26 }
  0x40   : > { %316 = vmatprep.subr.mxu0 %v711_v1  ;;  %656 = vmatprep.subr.mxu1 %v711_v1 }
  0x41   : > { %317 = vmatpush2.msra.mxu0 %v248_v27  ;;  %688 = vmatpush2.msra.mxu1 %v248_v27 }
  0x42   : > { %318 = vmatprep.subr.mxu0 %v711_v1  ;;  %657 = vmatprep.subr.mxu1 %v711_v1 }
  0x43   : > { %319 = vmatpush2.msra.mxu0 %v247_v28  ;;  %689 = vmatpush2.msra.mxu1 %v247_v28  ;;  %v966_v28 = vrot.slane %v259_v22, %v481_v24 }
  0x44   : > { %320 = vmatprep.subr.mxu0 %v711_v1  ;;  %658 = vmatprep.subr.mxu1 %v711_v1 }
  0x45   : > { %321 = vmatpush2.msra.mxu0 %v246_v29  ;;  %690 = vmatpush2.msra.mxu1 %v246_v29 }
  0x46   : > { %322 = vmatprep.subr.mxu0 %v711_v1  ;;  %659 = vmatprep.subr.mxu1 %v711_v1 }
  0x47   : > { %323 = vmatpush2.msra.mxu0 %v245_v30  ;;  %691 = vmatpush2.msra.mxu1 %v245_v30 }
  0x48   : > { %324 = vmatprep.subr.mxu0 %v711_v1  ;;  %660 = vmatprep.subr.mxu1 %v711_v1 }
  0x49   : > { %325 = vmatpush2.msra.mxu0 %v244_v31  ;;  %692 = vmatpush2.msra.mxu1 %v244_v31 }
  0x4a   : > { %326 = vmatprep.subr.mxu0 %v711_v1  ;;  %328 = vmatprep.mubr.f32.mxu0 %v178_v32  ;;  %v969_v32 = vrot.slane %v259_v22, %v510_v25 }
  0x4b   : > { %327 = vmatpush2.msra.mxu0 %v243_v33  ;;  %661 = vmatprep.subr.mxu1 %v711_v1  ;;  %v217_v1 = vld [vmem:[%s896_s27 + $0x140] sm:$0xff] }
  0x4c   : > { %329 = vmatmul.mubr.f32.vlgmr.msra.gmra.mxu0 %v177_v34  ;;  %693 = vmatpush2.msra.mxu1 %v243_v33 }
  0x4d   : > { %393 = vmatprep.mubr.f32.mxu1 %v204_v35  ;;  %333 = vmatprep.mubr.f32.mxu0 %v180_v36 }
  0x4e   : > { %394 = vmatmul.mubr.f32.vlgmr.msra.gmra.mxu1 %v203_v37 }
  0x4f   : > { %398 = vmatprep.mubr.f32.mxu1 %v206_v38 }
  0x50   : > { %334 = vmatmul.mubr.f32.gmra.mxu0 %v179_v39 }
  0x51   : > { %338 = vmatprep.mubr.f32.mxu0 %v182_v40 }
  0x52   : > { %399 = vmatmul.mubr.f32.gmra.mxu1 %v205_v41 }
  0x53   : > { %403 = vmatprep.mubr.f32.mxu1 %v208_v42 }
  0x54   : > { %339 = vmatmul.mubr.f32.gmra.mxu0 %v181_v43 }
  0x55   : > { %343 = vmatprep.mubr.f32.mxu0 %v184_v44 }
  0x56   : > { %404 = vmatmul.mubr.f32.gmra.mxu1 %v207_v45 }
  0x57   : > { %408 = vmatprep.mubr.f32.mxu1 %v210_v46 }
  0x58   : > { %344 = vmatmul.mubr.f32.gmra.mxu0 %v183_v47 }
  0x59   : > { %348 = vmatprep.mubr.f32.mxu0 %v186_v48 }
  0x5a   : > { %409 = vmatmul.mubr.f32.gmra.mxu1 %v209_v49 }
  0x5b   : > { %413 = vmatprep.mubr.f32.mxu1 %v212_v50 }
  0x5c   : > { %349 = vmatmul.mubr.f32.gmra.mxu0 %v185_v51 }
  0x5d   : > { %353 = vmatprep.mubr.f32.mxu0 %v188_v52 }
  0x5e   : > { %414 = vmatmul.mubr.f32.gmra.mxu1 %v211_v53 }
  0x5f   : > { %418 = vmatprep.mubr.f32.mxu1 %v214_v54 }
  0x60   : > { %354 = vmatmul.mubr.f32.gmra.mxu0 %v187_v55 }
  0x61   : > { %358 = vmatprep.mubr.f32.mxu0 %v190_v56 }
  0x62   : > { %419 = vmatmul.mubr.f32.gmra.mxu1 %v213_v57 }
  0x63   : > { %423 = vmatprep.mubr.f32.mxu1 %v216_v58 }
  0x64   : > { %359 = vmatmul.mubr.f32.gmra.mxu0 %v189_v59 }
  0x65   : > { %363 = vmatprep.mubr.f32.mxu0 %v192_v60 }
  0x66   : > { %424 = vmatmul.mubr.f32.gmra.mxu1 %v215_v61 }
  0x67   : > { %428 = vmatprep.mubr.f32.mxu1 %v218_v62 }
  0x68   : > { %364 = vmatmul.mubr.f32.gmra.mxu0 %v191_v63 }
  0x69   : > { %368 = vmatprep.mubr.f32.mxu0 %v194_v0 }
  0x6a   : > { %429 = vmatmul.mubr.f32.gmra.mxu1 %v217_v1 }
  0x6b   : > { %433 = vmatprep.mubr.f32.mxu1 %v220_v2 }
  0x6c   : > { %369 = vmatmul.mubr.f32.gmra.mxu0 %v193_v3 }
  0x6d   : > { %373 = vmatprep.mubr.f32.mxu0 %v196_v4 }
  0x6e   : > { %434 = vmatmul.mubr.f32.gmra.mxu1 %v219_v5 }
  0x6f   : > { %438 = vmatprep.mubr.f32.mxu1 %v222_v6 }
  0x70   : > { %374 = vmatmul.mubr.f32.gmra.mxu0 %v195_v7 }
  0x71   : > { %378 = vmatprep.mubr.f32.mxu0 %v198_v8 }
  0x72   : > { %439 = vmatmul.mubr.f32.gmra.mxu1 %v221_v9 }
  0x73   : > { %443 = vmatprep.mubr.f32.mxu1 %v224_v10 }
  0x74   : > { %379 = vmatmul.mubr.f32.gmra.mxu0 %v197_v11 }
  0x75   : > { %383 = vmatprep.mubr.f32.mxu0 %v200_v12 }
  0x76   : > { %444 = vmatmul.mubr.f32.gmra.mxu1 %v223_v13 }
  0x77   : > { %448 = vmatprep.mubr.f32.mxu1 %v226_v14 }
  0x78   : > { %384 = vmatmul.mubr.f32.gmra.mxu0 %v199_v15 }
  0x79   : > { %388 = vmatprep.mubr.f32.mxu0 %v202_v16 }
  0x7a   : > { %449 = vmatmul.mubr.f32.gmra.mxu1 %v225_v17 }
  0x7c   : > { %389 = vmatmul.mubr.f32.gmra.mxu0 %v201_v18 }
 0x10c   : > { %v330_v26 = vpop.f32.mrf.mxu0 }
 0x10d   : > { %v331_v27 = vadd.f32 %v330_v26, %v963_v23 }
 0x10e   : > { %v332_v29 = vpop.f32.mrf.mxu0  ;;  %v395_v30 = vpop.f32.mrf.mxu1 }
 0x10f   : > { %v454_v31 = vmax.f32 %v331_v27, 0.0  ;;  %v396_v33 = vadd.f32 %v395_v30, %v963_v23 }
 0x110   : > { %v335_v34 = vpop.f32.mrf.mxu0  ;;  %v397_v35 = vpop.f32.mrf.mxu1 }
 0x111   : > { %v483_v36 = vmul.f32 %v966_v28, %v454_v31  ;;  %v467_v37 = vmax.f32 %v396_v33, 0.0  ;;  %v336_v38 = vadd.f32 %v335_v34, %v963_v23 }
 0x112   : > { %v337_v39 = vpop.f32.mrf.mxu0  ;;  %v400_v40 = vpop.f32.mrf.mxu1 }
 0x113   : > { %v512_v41 = vadd.f32 %v969_v32, %v483_v36  ;;  %v496_v42 = vmul.f32 %v966_v28, %v467_v37  ;;  %v455_v43 = vmax.f32 %v336_v38, 0.0  ;;  %v401_v44 = vadd.f32 %v400_v40, %v963_v23 }
 0x114   : > { %v340_v45 = vpop.f32.mrf.mxu0  ;;  %v402_v46 = vpop.f32.mrf.mxu1 }
 0x115   : > { %538 = vst.msk [vmem:[%s977_s13] sm:$0xff] %vm537_vm0, %v512_v41  ;;  %v525_v47 = vadd.f32 %v969_v32, %v496_v42  ;;  %v484_v48 = vmul.f32 %v966_v28, %v455_v43  ;;  %v468_v49 = vmax.f32 %v401_v44, 0.0  ;;  %v341_v50 = vadd.f32 %v340_v45, %v963_v23 }
 0x116   : > { %v342_v51 = vpop.f32.mrf.mxu0  ;;  %v405_v52 = vpop.f32.mrf.mxu1 }
 0x117   : > { %551 = vst.msk [vmem:[%s977_s13 + $0x68] sm:$0xff] %vm537_vm0, %v525_v47  ;;  %v513_v53 = vadd.f32 %v969_v32, %v484_v48  ;;  %v497_v54 = vmul.f32 %v966_v28, %v468_v49  ;;  %v456_v55 = vmax.f32 %v341_v50, 0.0  ;;  %v406_v56 = vadd.f32 %v405_v52, %v963_v23 }
 0x118   : > { %v345_v57 = vpop.f32.mrf.mxu0  ;;  %v407_v58 = vpop.f32.mrf.mxu1 }
 0x119   : > { %539 = vst.msk [vmem:[%s977_s13 + $0x8] sm:$0xff] %vm537_vm0, %v513_v53  ;;  %v526_v59 = vadd.f32 %v969_v32, %v497_v54  ;;  %v485_v60 = vmul.f32 %v966_v28, %v456_v55  ;;  %v469_v61 = vmax.f32 %v406_v56, 0.0  ;;  %v346_v62 = vadd.f32 %v345_v57, %v963_v23 }
 0x11a   : > { %v347_v63 = vpop.f32.mrf.mxu0  ;;  %v410_v0 = vpop.f32.mrf.mxu1 }
 0x11b   : > { %552 = vst.msk [vmem:[%s977_s13 + $0x70] sm:$0xff] %vm537_vm0, %v526_v59  ;;  %v514_v1 = vadd.f32 %v969_v32, %v485_v60  ;;  %v498_v2 = vmul.f32 %v966_v28, %v469_v61  ;;  %v457_v3 = vmax.f32 %v346_v62, 0.0  ;;  %v411_v4 = vadd.f32 %v410_v0, %v963_v23 }
 0x11c   : > { %v350_v5 = vpop.f32.mrf.mxu0  ;;  %v412_v6 = vpop.f32.mrf.mxu1 }
 0x11d   : > { %540 = vst.msk [vmem:[%s977_s13 + $0x10] sm:$0xff] %vm537_vm0, %v514_v1  ;;  %v527_v7 = vadd.f32 %v969_v32, %v498_v2  ;;  %v486_v8 = vmul.f32 %v966_v28, %v457_v3  ;;  %v470_v9 = vmax.f32 %v411_v4, 0.0  ;;  %v351_v10 = vadd.f32 %v350_v5, %v963_v23 }
 0x11e   : > { %v352_v11 = vpop.f32.mrf.mxu0  ;;  %v415_v12 = vpop.f32.mrf.mxu1 }
 0x11f   : > { %553 = vst.msk [vmem:[%s977_s13 + $0x78] sm:$0xff] %vm537_vm0, %v527_v7  ;;  %v515_v13 = vadd.f32 %v969_v32, %v486_v8  ;;  %v499_v14 = vmul.f32 %v966_v28, %v470_v9  ;;  %v458_v15 = vmax.f32 %v351_v10, 0.0  ;;  %v416_v16 = vadd.f32 %v415_v12, %v963_v23 }
 0x120   : > { %v355_v17 = vpop.f32.mrf.mxu0  ;;  %v417_v18 = vpop.f32.mrf.mxu1 }
 0x121   : > { %541 = vst.msk [vmem:[%s977_s13 + $0x18] sm:$0xff] %vm537_vm0, %v515_v13  ;;  %v528_v19 = vadd.f32 %v969_v32, %v499_v14  ;;  %v487_v20 = vmul.f32 %v966_v28, %v458_v15  ;;  %v471_v21 = vmax.f32 %v416_v16, 0.0  ;;  %v356_v22 = vadd.f32 %v355_v17, %v963_v23 }
 0x122   : > { %v357_v24 = vpop.f32.mrf.mxu0  ;;  %v420_v25 = vpop.f32.mrf.mxu1 }
 0x123   : > { %554 = vst.msk [vmem:[%s977_s13 + $0x80] sm:$0xff] %vm537_vm0, %v528_v19  ;;  %v516_v26 = vadd.f32 %v969_v32, %v487_v20  ;;  %v500_v27 = vmul.f32 %v966_v28, %v471_v21  ;;  %v459_v29 = vmax.f32 %v356_v22, 0.0  ;;  %v421_v30 = vadd.f32 %v420_v25, %v963_v23 }
 0x124   : > { %v360_v31 = vpop.f32.mrf.mxu0  ;;  %v422_v33 = vpop.f32.mrf.mxu1 }
 0x125   : > { %542 = vst.msk [vmem:[%s977_s13 + $0x20] sm:$0xff] %vm537_vm0, %v516_v26  ;;  %v529_v34 = vadd.f32 %v969_v32, %v500_v27  ;;  %v488_v35 = vmul.f32 %v966_v28, %v459_v29  ;;  %v472_v36 = vmax.f32 %v421_v30, 0.0  ;;  %v361_v37 = vadd.f32 %v360_v31, %v963_v23 }
 0x126   : > { %v362_v38 = vpop.f32.mrf.mxu0  ;;  %v425_v39 = vpop.f32.mrf.mxu1 }
 0x127   : > { %555 = vst.msk [vmem:[%s977_s13 + $0x88] sm:$0xff] %vm537_vm0, %v529_v34  ;;  %v517_v40 = vadd.f32 %v969_v32, %v488_v35  ;;  %v501_v41 = vmul.f32 %v966_v28, %v472_v36  ;;  %v460_v42 = vmax.f32 %v361_v37, 0.0  ;;  %v426_v43 = vadd.f32 %v425_v39, %v963_v23 }
 0x128   : > { %v365_v44 = vpop.f32.mrf.mxu0  ;;  %v427_v45 = vpop.f32.mrf.mxu1 }
 0x129   : > { %543 = vst.msk [vmem:[%s977_s13 + $0x28] sm:$0xff] %vm537_vm0, %v517_v40  ;;  %v530_v46 = vadd.f32 %v969_v32, %v501_v41  ;;  %v489_v47 = vmul.f32 %v966_v28, %v460_v42  ;;  %v473_v48 = vmax.f32 %v426_v43, 0.0  ;;  %v366_v49 = vadd.f32 %v365_v44, %v963_v23 }
 0x12a   : > { %v367_v50 = vpop.f32.mrf.mxu0  ;;  %v430_v51 = vpop.f32.mrf.mxu1 }
 0x12b   : > { %556 = vst.msk [vmem:[%s977_s13 + $0x90] sm:$0xff] %vm537_vm0, %v530_v46  ;;  %v518_v52 = vadd.f32 %v969_v32, %v489_v47  ;;  %v502_v53 = vmul.f32 %v966_v28, %v473_v48  ;;  %v461_v54 = vmax.f32 %v366_v49, 0.0  ;;  %v431_v55 = vadd.f32 %v430_v51, %v963_v23 }
 0x12c   : > { %v370_v56 = vpop.f32.mrf.mxu0  ;;  %v432_v57 = vpop.f32.mrf.mxu1 }
 0x12d   : > { %544 = vst.msk [vmem:[%s977_s13 + $0x30] sm:$0xff] %vm537_vm0, %v518_v52  ;;  %v531_v58 = vadd.f32 %v969_v32, %v502_v53  ;;  %v490_v59 = vmul.f32 %v966_v28, %v461_v54  ;;  %v474_v60 = vmax.f32 %v431_v55, 0.0  ;;  %v371_v61 = vadd.f32 %v370_v56, %v963_v23 }
 0x12e   : > { %v372_v62 = vpop.f32.mrf.mxu0  ;;  %v435_v63 = vpop.f32.mrf.mxu1 }
 0x12f   : > { %557 = vst.msk [vmem:[%s977_s13 + $0x98] sm:$0xff] %vm537_vm0, %v531_v58  ;;  %v519_v0 = vadd.f32 %v969_v32, %v490_v59  ;;  %v503_v1 = vmul.f32 %v966_v28, %v474_v60  ;;  %v462_v2 = vmax.f32 %v371_v61, 0.0  ;;  %v436_v3 = vadd.f32 %v435_v63, %v963_v23 }
 0x130   : > { %v375_v4 = vpop.f32.mrf.mxu0  ;;  %v437_v5 = vpop.f32.mrf.mxu1 }
 0x131   : > { %545 = vst.msk [vmem:[%s977_s13 + $0x38] sm:$0xff] %vm537_vm0, %v519_v0  ;;  %v532_v6 = vadd.f32 %v969_v32, %v503_v1  ;;  %v491_v7 = vmul.f32 %v966_v28, %v462_v2  ;;  %v475_v8 = vmax.f32 %v436_v3, 0.0  ;;  %v376_v9 = vadd.f32 %v375_v4, %v963_v23 }
 0x132   : > { %v377_v10 = vpop.f32.mrf.mxu0  ;;  %v440_v11 = vpop.f32.mrf.mxu1 }
 0x133   : > { %558 = vst.msk [vmem:[%s977_s13 + $0xa0] sm:$0xff] %vm537_vm0, %v532_v6  ;;  %v520_v12 = vadd.f32 %v969_v32, %v491_v7  ;;  %v504_v13 = vmul.f32 %v966_v28, %v475_v8  ;;  %v463_v14 = vmax.f32 %v376_v9, 0.0  ;;  %v441_v15 = vadd.f32 %v440_v11, %v963_v23 }
 0x134   : > { %v380_v16 = vpop.f32.mrf.mxu0  ;;  %v442_v17 = vpop.f32.mrf.mxu1 }
 0x135   : > { %546 = vst.msk [vmem:[%s977_s13 + $0x40] sm:$0xff] %vm537_vm0, %v520_v12  ;;  %v533_v18 = vadd.f32 %v969_v32, %v504_v13  ;;  %v492_v19 = vmul.f32 %v966_v28, %v463_v14  ;;  %v476_v20 = vmax.f32 %v441_v15, 0.0  ;;  %v381_v21 = vadd.f32 %v380_v16, %v963_v23 }
 0x136   : > { %v382_v22 = vpop.f32.mrf.mxu0  ;;  %v445_v24 = vpop.f32.mrf.mxu1 }
 0x137   : > { %559 = vst.msk [vmem:[%s977_s13 + $0xa8] sm:$0xff] %vm537_vm0, %v533_v18  ;;  %v521_v25 = vadd.f32 %v969_v32, %v492_v19  ;;  %v505_v26 = vmul.f32 %v966_v28, %v476_v20  ;;  %v464_v27 = vmax.f32 %v381_v21, 0.0  ;;  %v446_v29 = vadd.f32 %v445_v24, %v963_v23 }
 0x138   : > { %v385_v30 = vpop.f32.mrf.mxu0  ;;  %v447_v31 = vpop.f32.mrf.mxu1 }
 0x139   : > { %547 = vst.msk [vmem:[%s977_s13 + $0x48] sm:$0xff] %vm537_vm0, %v521_v25  ;;  %v534_v33 = vadd.f32 %v969_v32, %v505_v26  ;;  %v493_v34 = vmul.f32 %v966_v28, %v464_v27  ;;  %v477_v35 = vmax.f32 %v446_v29, 0.0  ;;  %v386_v36 = vadd.f32 %v385_v30, %v963_v23 }
 0x13a   : > { %v387_v37 = vpop.f32.mrf.mxu0  ;;  %v450_v38 = vpop.f32.mrf.mxu1 }
 0x13b   : > { %560 = vst.msk [vmem:[%s977_s13 + $0xb0] sm:$0xff] %vm537_vm0, %v534_v33  ;;  %v522_v39 = vadd.f32 %v969_v32, %v493_v34  ;;  %v506_v40 = vmul.f32 %v966_v28, %v477_v35  ;;  %v465_v41 = vmax.f32 %v386_v36, 0.0  ;;  %v451_v42 = vadd.f32 %v450_v38, %v963_v23 }
 0x13c   : > { %v390_v43 = vpop.f32.mrf.mxu0  ;;  %v452_v44 = vpop.f32.mrf.mxu1 }
 0x13d   : > { %548 = vst.msk [vmem:[%s977_s13 + $0x50] sm:$0xff] %vm537_vm0, %v522_v39  ;;  %v535_v45 = vadd.f32 %v969_v32, %v506_v40  ;;  %v494_v46 = vmul.f32 %v966_v28, %v465_v41  ;;  %v478_v47 = vmax.f32 %v451_v42, 0.0  ;;  %v391_v48 = vadd.f32 %v390_v43, %v963_v23 }
 0x13e   : > { %v392_v49 = vpop.f32.mrf.mxu0 }
 0x13f   : > { %561 = vst.msk [vmem:[%s977_s13 + $0xb8] sm:$0xff] %vm537_vm0, %v535_v45  ;;  %v523_v50 = vadd.f32 %v969_v32, %v494_v46  ;;  %v507_v51 = vmul.f32 %v966_v28, %v478_v47  ;;  %v466_v52 = vmax.f32 %v391_v48, 0.0 }
 0x141   : > { %549 = vst.msk [vmem:[%s977_s13 + $0x58] sm:$0xff] %vm537_vm0, %v523_v50  ;;  %v536_v53 = vadd.f32 %v969_v32, %v507_v51  ;;  %v495_v54 = vmul.f32 %v966_v28, %v466_v52 }
 0x143   : > { %562 = vst.msk [vmem:[%s977_s13 + $0xc0] sm:$0xff] %vm537_vm0, %v536_v53  ;;  %v524_v55 = vadd.f32 %v969_v32, %v495_v54 }
 0x145   : > { %550 = vst.msk [vmem:[%s977_s13 + $0x60] sm:$0xff] %vm537_vm0, %v524_v55 }
 0x146 PF: > { %s13_s12 = sadd.s32 1, %s709_s12  }
 0x147   : > { %p10_p4 = scmp.ge.s32.totalorder %s13_s12, 6  }
 0x149   :  { %12 = sbr.rel (!%p10_p4) target bundleno = 1 (0x1), region = 62 }

// kernel: gaze_prediction_forward.7
= control target key start
LH: loop header
LB: loop body
LE: loop exit
PB: predicated region body
PF: predicated region fallthrough
CT: control target
= control target key end

     0   :  { %s816_s12 = smov 0   ;;  %s1149_s0 = inlined_call_operand.vmem [shape: f32[176,512], index: 0, kind: input, shape index: {}]   ;;  %s1150_s1 = inlined_call_operand.vmem [shape: f32[512,64], index: 1, kind: input, shape index: {}]   ;;  %s1151_s2 = inlined_call_operand.vmem [shape: f32[3,64], index: 2, kind: input, shape index: {}]   ;;  %s1152_s3 = inlined_call_operand.vmem [shape: f32[176,64], index: 3, kind: output, shape index: {}]  }
   0x1 LB: > { %s639_s13 = sadd.s32 4294967295, %s794_s12   ;;  %p643_p0 = scmp.ge.s32.totalorder %s794_s12, 1  ;;  %s794_s12 = sphi %s816_s12, %s13_s12  }
   0x2   : > { %p139_p1 = scmp.lt.s32.totalorder %s794_s12, 3 }
   0x4   : > { %p140_p2 = pnand %p643_p0, %p139_p1 }
   0x5   : > { %s910_s20 = smul.u32 (!%p140_p2), 11, %s639_s13 }
   0x6   : > { %143 = sbr.rel (%p140_p2) target bundleno = 294 (0x126), region = 32 }
   0x7   : > { %p165_p3 = scmp.lt.s32.totalorder (!%p140_p2), %s910_s20, 21 }
   0xb   : > { %v252_v0 = vld [vmem:[%s1150_s1 + $0xf8] sm:$0xff]  ;;  %v251_v4 = vld [vmem:[%s1150_s1 + $0xf0] sm:$0xff]  ;;  %v250_v8 = vld [vmem:[%s1150_s1 + $0xe8] sm:$0xff]  ;;  %s1154_s20 = smov (!%p165_p3, %s910_s20), 21  ;;  %vm571_vm0 = vcmask 523264  }
   0xc   : > { %v284_v1 = vld [vmem:[%s1150_s1 + $0x1f8] sm:$0xff]  ;;  %650 = vmatprep.subr.mxu0 %v252_v0  ;;  %v283_v5 = vld [vmem:[%s1150_s1 + $0x1f0] sm:$0xff]  ;;  %v282_v9 = vld [vmem:[%s1150_s1 + $0x1e8] sm:$0xff]  ;;  %s649_s18 = sshll.u32 %s1154_s20, 5  ;;  %s646_s24 = sshll.u32 %s1154_s20, 3 }
   0xd   : > { %v236_v2 = vld [vmem:[%s1150_s1 + $0x78] sm:$0xff]  ;;  %715 = vmatprep.subr.mxu1 %v284_v1  ;;  %v235_v6 = vld [vmem:[%s1150_s1 + $0x70] sm:$0xff]  ;;  %v234_v10 = vld [vmem:[%s1150_s1 + $0x68] sm:$0xff]  ;;  %s1012_s6 = scalar_lea.vmem %s1149_s0, %s649_s18  ;;  %s1092_s27 = scalar_lea.vmem %s1152_s3, %s646_s24 }
   0xe   : > { %v268_v3 = vld [vmem:[%s1150_s1 + $0x178] sm:$0xff]  ;;  %651 = vmatpush3.msra.mxu0 %v236_v2  ;;  %v267_v7 = vld [vmem:[%s1150_s1 + $0x170] sm:$0xff]  ;;  %v266_v11 = vld [vmem:[%s1150_s1 + $0x168] sm:$0xff] }
   0xf   : > { %716 = vmatpush3.msra.mxu1 %v268_v3  ;;  %652 = vmatprep.subr.mxu0 %v251_v4  ;;  %v249_v12 = vld [vmem:[%s1150_s1 + $0xe0] sm:$0xff]  ;;  %v248_v16 = vld [vmem:[%s1150_s1 + $0xd8] sm:$0xff]  ;;  %v247_v20 = vld [vmem:[%s1150_s1 + $0xd0] sm:$0xff] }
  0x10   : > { %717 = vmatprep.subr.mxu1 %v283_v5  ;;  %653 = vmatpush3.msra.mxu0 %v235_v6  ;;  %v281_v13 = vld [vmem:[%s1150_s1 + $0x1e0] sm:$0xff]  ;;  %v280_v17 = vld [vmem:[%s1150_s1 + $0x1d8] sm:$0xff]  ;;  %v279_v21 = vld [vmem:[%s1150_s1 + $0x1d0] sm:$0xff] }
  0x11   : > { %718 = vmatpush3.msra.mxu1 %v267_v7  ;;  %654 = vmatprep.subr.mxu0 %v250_v8  ;;  %v233_v14 = vld [vmem:[%s1150_s1 + $0x60] sm:$0xff]  ;;  %v232_v18 = vld [vmem:[%s1150_s1 + $0x58] sm:$0xff]  ;;  %v231_v22 = vld [vmem:[%s1150_s1 + $0x50] sm:$0xff] }
  0x12   : > { %719 = vmatprep.subr.mxu1 %v282_v9  ;;  %v265_v15 = vld [vmem:[%s1150_s1 + $0x160] sm:$0xff]  ;;  %655 = vmatpush3.msra.mxu0 %v234_v10  ;;  %v264_v19 = vld [vmem:[%s1150_s1 + $0x158] sm:$0xff]  ;;  %v263_v23 = vld [vmem:[%s1150_s1 + $0x150] sm:$0xff] }
  0x13   : > { %720 = vmatpush3.msra.mxu1 %v266_v11  ;;  %656 = vmatprep.subr.mxu0 %v249_v12  ;;  %v246_v24 = vld [vmem:[%s1150_s1 + $0xc8] sm:$0xff]  ;;  %v245_v28 = vld [vmem:[%s1150_s1 + $0xc0] sm:$0xff]  ;;  %v244_v32 = vld [vmem:[%s1150_s1 + $0xb8] sm:$0xff] }
  0x14   : > { %721 = vmatprep.subr.mxu1 %v281_v13  ;;  %657 = vmatpush3.msra.mxu0 %v233_v14  ;;  %v278_v25 = vld [vmem:[%s1150_s1 + $0x1c8] sm:$0xff]  ;;  %v277_v29 = vld [vmem:[%s1150_s1 + $0x1c0] sm:$0xff]  ;;  %v276_v33 = vld [vmem:[%s1150_s1 + $0x1b8] sm:$0xff] }
  0x15   : > { %722 = vmatpush3.msra.mxu1 %v265_v15  ;;  %658 = vmatprep.subr.mxu0 %v248_v16  ;;  %v230_v26 = vld [vmem:[%s1150_s1 + $0x48] sm:$0xff]  ;;  %v229_v30 = vld [vmem:[%s1150_s1 + $0x40] sm:$0xff]  ;;  %v228_v34 = vld [vmem:[%s1150_s1 + $0x38] sm:$0xff] }
  0x16   : > { %723 = vmatprep.subr.mxu1 %v280_v17  ;;  %659 = vmatpush3.msra.mxu0 %v232_v18  ;;  %v262_v27 = vld [vmem:[%s1150_s1 + $0x148] sm:$0xff]  ;;  %v261_v31 = vld [vmem:[%s1150_s1 + $0x140] sm:$0xff]  ;;  %v260_v35 = vld [vmem:[%s1150_s1 + $0x138] sm:$0xff] }
  0x17   : > { %724 = vmatpush3.msra.mxu1 %v264_v19  ;;  %660 = vmatprep.subr.mxu0 %v247_v20  ;;  %v243_v36 = vld [vmem:[%s1150_s1 + $0xb0] sm:$0xff]  ;;  %v242_v40 = vld [vmem:[%s1150_s1 + $0xa8] sm:$0xff]  ;;  %v241_v44 = vld [vmem:[%s1150_s1 + $0xa0] sm:$0xff] }
  0x18   : > { %725 = vmatprep.subr.mxu1 %v279_v21  ;;  %661 = vmatpush3.msra.mxu0 %v231_v22  ;;  %v275_v37 = vld [vmem:[%s1150_s1 + $0x1b0] sm:$0xff]  ;;  %v274_v41 = vld [vmem:[%s1150_s1 + $0x1a8] sm:$0xff]  ;;  %v273_v45 = vld [vmem:[%s1150_s1 + $0x1a0] sm:$0xff] }
  0x19   : > { %726 = vmatpush3.msra.mxu1 %v263_v23  ;;  %662 = vmatprep.subr.mxu0 %v246_v24  ;;  %v227_v38 = vld [vmem:[%s1150_s1 + $0x30] sm:$0xff]  ;;  %v226_v42 = vld [vmem:[%s1150_s1 + $0x28] sm:$0xff]  ;;  %v225_v46 = vld [vmem:[%s1150_s1 + $0x20] sm:$0xff] }
  0x1a   : > { %727 = vmatprep.subr.mxu1 %v278_v25  ;;  %663 = vmatpush3.msra.mxu0 %v230_v26  ;;  %v259_v39 = vld [vmem:[%s1150_s1 + $0x130] sm:$0xff]  ;;  %v258_v43 = vld [vmem:[%s1150_s1 + $0x128] sm:$0xff]  ;;  %v257_v47 = vld [vmem:[%s1150_s1 + $0x120] sm:$0xff] }
  0x1b   : > { %728 = vmatpush3.msra.mxu1 %v262_v27  ;;  %664 = vmatprep.subr.mxu0 %v245_v28  ;;  %v240_v48 = vld [vmem:[%s1150_s1 + $0x98] sm:$0xff]  ;;  %v239_v52 = vld [vmem:[%s1150_s1 + $0x90] sm:$0xff]  ;;  %v238_v56 = vld [vmem:[%s1150_s1 + $0x88] sm:$0xff] }
  0x1c   : > { %729 = vmatprep.subr.mxu1 %v277_v29  ;;  %665 = vmatpush3.msra.mxu0 %v229_v30  ;;  %v272_v49 = vld [vmem:[%s1150_s1 + $0x198] sm:$0xff]  ;;  %v271_v53 = vld [vmem:[%s1150_s1 + $0x190] sm:$0xff]  ;;  %v270_v57 = vld [vmem:[%s1150_s1 + $0x188] sm:$0xff] }
  0x1d   : > { %730 = vmatpush3.msra.mxu1 %v261_v31  ;;  %666 = vmatprep.subr.mxu0 %v244_v32  ;;  %v224_v50 = vld [vmem:[%s1150_s1 + $0x18] sm:$0xff]  ;;  %v223_v54 = vld [vmem:[%s1150_s1 + $0x10] sm:$0xff]  ;;  %v222_v58 = vld [vmem:[%s1150_s1 + $0x8] sm:$0xff] }
  0x1e   : > { %731 = vmatprep.subr.mxu1 %v276_v33  ;;  %667 = vmatpush3.msra.mxu0 %v228_v34  ;;  %v256_v51 = vld [vmem:[%s1150_s1 + $0x118] sm:$0xff]  ;;  %v255_v55 = vld [vmem:[%s1150_s1 + $0x110] sm:$0xff]  ;;  %v254_v59 = vld [vmem:[%s1150_s1 + $0x108] sm:$0xff] }
  0x1f   : > { %732 = vmatpush3.msra.mxu1 %v260_v35  ;;  %668 = vmatprep.subr.mxu0 %v243_v36  ;;  %v237_v60 = vld [vmem:[%s1150_s1 + $0x80] sm:$0xff]  ;;  %v178_v63 = vld [vmem:[%s1012_s6 + $0x8] sm:$0xff]  ;;  %v180_v1 = vld [vmem:[%s1012_s6 + $0x18] sm:$0xff] }
  0x20   : > { %733 = vmatprep.subr.mxu1 %v275_v37  ;;  %669 = vmatpush3.msra.mxu0 %v227_v38  ;;  %v269_v61 = vld [vmem:[%s1150_s1 + $0x180] sm:$0xff]  ;;  %v179_v3 = vld [vmem:[%s1012_s6 + $0x10] sm:$0xff]  ;;  %v182_v4 = vld [vmem:[%s1012_s6 + $0x28] sm:$0xff] }
  0x21   : > { %734 = vmatpush3.msra.mxu1 %v259_v39  ;;  %670 = vmatprep.subr.mxu0 %v242_v40  ;;  %v221_v62 = vld [vmem:[%s1150_s1] sm:$0xff]  ;;  %v184_v5 = vld [vmem:[%s1012_s6 + $0x38] sm:$0xff]  ;;  %v183_v7 = vld [vmem:[%s1012_s6 + $0x30] sm:$0xff] }
  0x22   : > { %735 = vmatprep.subr.mxu1 %v274_v41  ;;  %671 = vmatpush3.msra.mxu0 %v226_v42  ;;  %v253_v0 = vld [vmem:[%s1150_s1 + $0x100] sm:$0xff]  ;;  %v186_v8 = vld [vmem:[%s1012_s6 + $0x48] sm:$0xff]  ;;  %v188_v9 = vld [vmem:[%s1012_s6 + $0x58] sm:$0xff] }
  0x23   : > { %736 = vmatpush3.msra.mxu1 %v258_v43  ;;  %672 = vmatprep.subr.mxu0 %v241_v44  ;;  %v177_v2 = vld [vmem:[%s1012_s6] sm:$0xff]  ;;  %v187_v11 = vld [vmem:[%s1012_s6 + $0x50] sm:$0xff]  ;;  %v190_v12 = vld [vmem:[%s1012_s6 + $0x68] sm:$0xff]  ;;  %v286_v44 = vlaneseq }
  0x24   : > { %737 = vmatprep.subr.mxu1 %v273_v45  ;;  %673 = vmatpush3.msra.mxu0 %v225_v46  ;;  %v181_v6 = vld [vmem:[%s1012_s6 + $0x20] sm:$0xff]  ;;  %v192_v13 = vld [vmem:[%s1012_s6 + $0x78] sm:$0xff]  ;;  %v191_v15 = vld [vmem:[%s1012_s6 + $0x70] sm:$0xff] }
  0x25   : > { %738 = vmatpush3.msra.mxu1 %v257_v47  ;;  %674 = vmatprep.subr.mxu0 %v240_v48  ;;  %v185_v10 = vld [vmem:[%s1012_s6 + $0x40] sm:$0xff]  ;;  %v194_v16 = vld [vmem:[%s1012_s6 + $0x88] sm:$0xff]  ;;  %v196_v17 = vld [vmem:[%s1012_s6 + $0x98] sm:$0xff]  ;;  %v287_v45 = vshrl.u32 %v286_v44, 7 }
  0x26   : > { %739 = vmatprep.subr.mxu1 %v272_v49  ;;  %675 = vmatpush3.msra.mxu0 %v224_v50  ;;  %v189_v14 = vld [vmem:[%s1012_s6 + $0x60] sm:$0xff]  ;;  %v195_v19 = vld [vmem:[%s1012_s6 + $0x90] sm:$0xff]  ;;  %v198_v20 = vld [vmem:[%s1012_s6 + $0xa8] sm:$0xff] }
  0x27   : > { %740 = vmatpush3.msra.mxu1 %v256_v51  ;;  %676 = vmatprep.subr.mxu0 %v239_v52  ;;  %v193_v18 = vld [vmem:[%s1012_s6 + $0x80] sm:$0xff]  ;;  %v200_v21 = vld [vmem:[%s1012_s6 + $0xb8] sm:$0xff]  ;;  %v199_v23 = vld [vmem:[%s1012_s6 + $0xb0] sm:$0xff]  ;;  %v288_v46 = vsub.s32 0, %v287_v45 }
  0x28   : > { %741 = vmatprep.subr.mxu1 %v271_v53  ;;  %677 = vmatpush3.msra.mxu0 %v223_v54  ;;  %v197_v22 = vld [vmem:[%s1012_s6 + $0xa0] sm:$0xff]  ;;  %v202_v24 = vld [vmem:[%s1012_s6 + $0xc8] sm:$0xff]  ;;  %v204_v25 = vld [vmem:[%s1012_s6 + $0xd8] sm:$0xff]  ;;  %v543_v54 = vsub.s32 1, %v287_v45 }
  0x29   : > { %742 = vmatpush3.msra.mxu1 %v255_v55  ;;  %678 = vmatprep.subr.mxu0 %v238_v56  ;;  %v201_v26 = vld [vmem:[%s1012_s6 + $0xc0] sm:$0xff]  ;;  %v203_v27 = vld [vmem:[%s1012_s6 + $0xd0] sm:$0xff]  ;;  %v206_v28 = vld [vmem:[%s1012_s6 + $0xe8] sm:$0xff] }
  0x2a   : > { %743 = vmatprep.subr.mxu1 %v270_v57  ;;  %679 = vmatpush3.msra.mxu0 %v222_v58  ;;  %v208_v29 = vld [vmem:[%s1012_s6 + $0xf8] sm:$0xff]  ;;  %v205_v30 = vld [vmem:[%s1012_s6 + $0xe0] sm:$0xff]  ;;  %v207_v31 = vld [vmem:[%s1012_s6 + $0xf0] sm:$0xff] }
  0x2b   : > { %744 = vmatpush3.msra.mxu1 %v254_v59  ;;  %680 = vmatprep.subr.mxu0 %v237_v60  ;;  %v210_v32 = vld [vmem:[%s1012_s6 + $0x108] sm:$0xff]  ;;  %v212_v33 = vld [vmem:[%s1012_s6 + $0x118] sm:$0xff]  ;;  %v209_v34 = vld [vmem:[%s1012_s6 + $0x100] sm:$0xff]  ;;  %v558_v59 = vsub.s32 2, %v287_v45 }
  0x2c   : > { %745 = vmatprep.subr.mxu1 %v269_v61  ;;  %681 = vmatpush3.msra.mxu0 %v221_v62  ;;  %v211_v35 = vld [vmem:[%s1012_s6 + $0x110] sm:$0xff]  ;;  %v214_v36 = vld [vmem:[%s1012_s6 + $0x128] sm:$0xff]  ;;  %v216_v37 = vld [vmem:[%s1012_s6 + $0x138] sm:$0xff] }
  0x2d   : > { %354 = vmatprep.mubr.f32.mxu0 %v178_v63  ;;  %746 = vmatpush3.msra.mxu1 %v253_v0  ;;  %v213_v38 = vld [vmem:[%s1012_s6 + $0x120] sm:$0xff]  ;;  %v215_v39 = vld [vmem:[%s1012_s6 + $0x130] sm:$0xff]  ;;  %v218_v40 = vld [vmem:[%s1012_s6 + $0x148] sm:$0xff] }
  0x2e   : > { %474 = vmatprep.mubr.f32.mxu1 %v180_v1  ;;  %355 = vmatmul.mubr.f32.vlgmr.msra.gmra.mxu0 %v177_v2  ;;  %v220_v41 = vld [vmem:[%s1012_s6 + $0x158] sm:$0xff]  ;;  %v217_v42 = vld [vmem:[%s1012_s6 + $0x140] sm:$0xff]  ;;  %v219_v43 = vld [vmem:[%s1012_s6 + $0x150] sm:$0xff] }
  0x2f   : > { %475 = vmatmul.mubr.f32.vlgmr.msra.gmra.mxu1 %v179_v3  ;;  %359 = vmatprep.mubr.f32.mxu0 %v182_v4  ;;  %v285_v47 = vld [vmem:[%s1151_s2] sm:$0x7] }
  0x30   : > { %479 = vmatprep.mubr.f32.mxu1 %v184_v5  ;;  %v1079_v50 = vrot.slane %v285_v47, %v288_v46  ;;  %v1082_v63 = vrot.slane %v285_v47, %v543_v54  ;;  %v1085_v4 = vrot.slane %v285_v47, %v558_v59 }
  0x32   : > { %360 = vmatmul.mubr.f32.gmra.mxu0 %v181_v6 }
  0x33   : > { %480 = vmatmul.mubr.f32.gmra.mxu1 %v183_v7  ;;  %364 = vmatprep.mubr.f32.mxu0 %v186_v8 }
  0x34   : > { %484 = vmatprep.mubr.f32.mxu1 %v188_v9 }
  0x36   : > { %365 = vmatmul.mubr.f32.gmra.mxu0 %v185_v10 }
  0x37   : > { %485 = vmatmul.mubr.f32.gmra.mxu1 %v187_v11  ;;  %369 = vmatprep.mubr.f32.mxu0 %v190_v12 }
  0x38   : > { %489 = vmatprep.mubr.f32.mxu1 %v192_v13 }
  0x3a   : > { %370 = vmatmul.mubr.f32.gmra.mxu0 %v189_v14 }
  0x3b   : > { %490 = vmatmul.mubr.f32.gmra.mxu1 %v191_v15  ;;  %374 = vmatprep.mubr.f32.mxu0 %v194_v16 }
  0x3c   : > { %494 = vmatprep.mubr.f32.mxu1 %v196_v17 }
  0x3e   : > { %375 = vmatmul.mubr.f32.gmra.mxu0 %v193_v18 }
  0x3f   : > { %495 = vmatmul.mubr.f32.gmra.mxu1 %v195_v19  ;;  %379 = vmatprep.mubr.f32.mxu0 %v198_v20 }
  0x40   : > { %499 = vmatprep.mubr.f32.mxu1 %v200_v21 }
  0x42   : > { %380 = vmatmul.mubr.f32.gmra.mxu0 %v197_v22 }
  0x43   : > { %500 = vmatmul.mubr.f32.gmra.mxu1 %v199_v23  ;;  %384 = vmatprep.mubr.f32.mxu0 %v202_v24 }
  0x44   : > { %504 = vmatprep.mubr.f32.mxu1 %v204_v25 }
  0x46   : > { %385 = vmatmul.mubr.f32.gmra.mxu0 %v201_v26 }
  0x47   : > { %505 = vmatmul.mubr.f32.gmra.mxu1 %v203_v27  ;;  %389 = vmatprep.mubr.f32.mxu0 %v206_v28 }
  0x48   : > { %509 = vmatprep.mubr.f32.mxu1 %v208_v29 }
  0x4a   : > { %390 = vmatmul.mubr.f32.gmra.mxu0 %v205_v30 }
  0x4b   : > { %510 = vmatmul.mubr.f32.gmra.mxu1 %v207_v31  ;;  %394 = vmatprep.mubr.f32.mxu0 %v210_v32 }
  0x4c   : > { %514 = vmatprep.mubr.f32.mxu1 %v212_v33 }
  0x4e   : > { %395 = vmatmul.mubr.f32.gmra.mxu0 %v209_v34 }
  0x4f   : > { %515 = vmatmul.mubr.f32.gmra.mxu1 %v211_v35  ;;  %399 = vmatprep.mubr.f32.mxu0 %v214_v36 }
  0x50   : > { %519 = vmatprep.mubr.f32.mxu1 %v216_v37 }
  0x52   : > { %400 = vmatmul.mubr.f32.gmra.mxu0 %v213_v38 }
  0x53   : > { %520 = vmatmul.mubr.f32.gmra.mxu1 %v215_v39  ;;  %404 = vmatprep.mubr.f32.mxu0 %v218_v40 }
  0x54   : > { %524 = vmatprep.mubr.f32.mxu1 %v220_v41 }
  0x56   : > { %405 = vmatmul.mubr.f32.gmra.mxu0 %v217_v42 }
  0x57   : > { %525 = vmatmul.mubr.f32.gmra.mxu1 %v219_v43 }
  0xee   : > { %v682_v48 = vpop.f32.mrf.mxu0 }
  0xef   : > { %v747_v49 = vpop.f32.mrf.mxu1 }
  0xf0   : > { %v683_v51 = vpop.f32.mrf.mxu0 }
  0xf1   : > { %v748_v52 = vpop.f32.mrf.mxu1  ;;  %v684_v53 = vadd.f32 %v683_v51, %v682_v48 }
  0xf2   : > { %v685_v55 = vpop.f32.mrf.mxu0  ;;  %v749_v58 = vadd.f32 %v748_v52, %v747_v49 }
  0xf3   : > { %v750_v56 = vpop.f32.mrf.mxu1  ;;  %v357_v57 = vadd.f32 %v684_v53, %v1079_v50 }
  0xf4   : > { %v686_v60 = vpop.f32.mrf.mxu0 }
  0xf5   : > { %v751_v61 = vpop.f32.mrf.mxu1  ;;  %v477_v62 = vadd.f32 %v749_v58, %v357_v57  ;;  %v687_v0 = vadd.f32 %v686_v60, %v685_v55 }
  0xf6   : > { %v688_v1 = vpop.f32.mrf.mxu0  ;;  %v752_v6 = vadd.f32 %v751_v61, %v750_v56 }
  0xf7   : > { %v753_v2 = vpop.f32.mrf.mxu1  ;;  %v530_v3 = vmax.f32 %v477_v62, 0.0  ;;  %v362_v5 = vadd.f32 %v687_v0, %v1079_v50 }
  0xf8   : > { %v689_v7 = vpop.f32.mrf.mxu0 }
  0xf9   : > { %v754_v8 = vpop.f32.mrf.mxu1  ;;  %v545_v9 = vmul.f32 %v1082_v63, %v530_v3  ;;  %v482_v10 = vadd.f32 %v752_v6, %v362_v5  ;;  %v690_v11 = vadd.f32 %v689_v7, %v688_v1 }
  0xfa   : > { %v691_v12 = vpop.f32.mrf.mxu0  ;;  %v755_v17 = vadd.f32 %v754_v8, %v753_v2 }
  0xfb   : > { %v756_v13 = vpop.f32.mrf.mxu1  ;;  %v560_v14 = vadd.f32 %v1085_v4, %v545_v9  ;;  %v531_v15 = vmax.f32 %v482_v10, 0.0  ;;  %v367_v16 = vadd.f32 %v690_v11, %v1079_v50 }
  0xfc   : > { %v692_v18 = vpop.f32.mrf.mxu0 }
  0xfd   : > { %v757_v19 = vpop.f32.mrf.mxu1  ;;  %572 = vst.msk [vmem:[%s1092_s27] sm:$0xff] %vm571_vm0, %v560_v14  ;;  %v546_v20 = vmul.f32 %v1082_v63, %v531_v15  ;;  %v487_v21 = vadd.f32 %v755_v17, %v367_v16  ;;  %v693_v22 = vadd.f32 %v692_v18, %v691_v12 }
  0xfe   : > { %v694_v23 = vpop.f32.mrf.mxu0  ;;  %v758_v28 = vadd.f32 %v757_v19, %v756_v13 }
  0xff   : > { %v759_v24 = vpop.f32.mrf.mxu1  ;;  %v561_v25 = vadd.f32 %v1085_v4, %v546_v20  ;;  %v532_v26 = vmax.f32 %v487_v21, 0.0  ;;  %v372_v27 = vadd.f32 %v693_v22, %v1079_v50 }
 0x100   : > { %v695_v29 = vpop.f32.mrf.mxu0 }
 0x101   : > { %v760_v30 = vpop.f32.mrf.mxu1  ;;  %573 = vst.msk [vmem:[%s1092_s27 + $0x8] sm:$0xff] %vm571_vm0, %v561_v25  ;;  %v547_v31 = vmul.f32 %v1082_v63, %v532_v26  ;;  %v492_v32 = vadd.f32 %v758_v28, %v372_v27  ;;  %v696_v33 = vadd.f32 %v695_v29, %v694_v23 }
 0x102   : > { %v697_v34 = vpop.f32.mrf.mxu0  ;;  %v761_v39 = vadd.f32 %v760_v30, %v759_v24 }
 0x103   : > { %v762_v35 = vpop.f32.mrf.mxu1  ;;  %v562_v36 = vadd.f32 %v1085_v4, %v547_v31  ;;  %v533_v37 = vmax.f32 %v492_v32, 0.0  ;;  %v377_v38 = vadd.f32 %v696_v33, %v1079_v50 }
 0x104   : > { %v698_v40 = vpop.f32.mrf.mxu0 }
 0x105   : > { %v763_v41 = vpop.f32.mrf.mxu1  ;;  %574 = vst.msk [vmem:[%s1092_s27 + $0x10] sm:$0xff] %vm571_vm0, %v562_v36  ;;  %v548_v42 = vmul.f32 %v1082_v63, %v533_v37  ;;  %v497_v43 = vadd.f32 %v761_v39, %v377_v38  ;;  %v699_v44 = vadd.f32 %v698_v40, %v697_v34 }
 0x106   : > { %v700_v45 = vpop.f32.mrf.mxu0  ;;  %v764_v51 = vadd.f32 %v763_v41, %v762_v35 }
 0x107   : > { %v765_v46 = vpop.f32.mrf.mxu1  ;;  %v563_v47 = vadd.f32 %v1085_v4, %v548_v42  ;;  %v534_v48 = vmax.f32 %v497_v43, 0.0  ;;  %v382_v49 = vadd.f32 %v699_v44, %v1079_v50 }
 0x108   : > { %v701_v52 = vpop.f32.mrf.mxu0 }
 0x109   : > { %v766_v53 = vpop.f32.mrf.mxu1  ;;  %575 = vst.msk [vmem:[%s1092_s27 + $0x18] sm:$0xff] %vm571_vm0, %v563_v47  ;;  %v549_v54 = vmul.f32 %v1082_v63, %v534_v48  ;;  %v502_v55 = vadd.f32 %v764_v51, %v382_v49  ;;  %v702_v56 = vadd.f32 %v701_v52, %v700_v45 }
 0x10a   : > { %v703_v57 = vpop.f32.mrf.mxu0  ;;  %v767_v62 = vadd.f32 %v766_v53, %v765_v46 }
 0x10b   : > { %v768_v58 = vpop.f32.mrf.mxu1  ;;  %v564_v59 = vadd.f32 %v1085_v4, %v549_v54  ;;  %v535_v60 = vmax.f32 %v502_v55, 0.0  ;;  %v387_v61 = vadd.f32 %v702_v56, %v1079_v50 }
 0x10c   : > { %v704_v0 = vpop.f32.mrf.mxu0 }
 0x10d   : > { %v769_v1 = vpop.f32.mrf.mxu1  ;;  %576 = vst.msk [vmem:[%s1092_s27 + $0x20] sm:$0xff] %vm571_vm0, %v564_v59  ;;  %v550_v2 = vmul.f32 %v1082_v63, %v535_v60  ;;  %v507_v3 = vadd.f32 %v767_v62, %v387_v61  ;;  %v705_v5 = vadd.f32 %v704_v0, %v703_v57 }
 0x10e   : > { %v706_v6 = vpop.f32.mrf.mxu0  ;;  %v770_v11 = vadd.f32 %v769_v1, %v768_v58 }
 0x10f   : > { %v771_v7 = vpop.f32.mrf.mxu1  ;;  %v565_v8 = vadd.f32 %v1085_v4, %v550_v2  ;;  %v536_v9 = vmax.f32 %v507_v3, 0.0  ;;  %v392_v10 = vadd.f32 %v705_v5, %v1079_v50 }
 0x110   : > { %v707_v12 = vpop.f32.mrf.mxu0 }
 0x111   : > { %v772_v13 = vpop.f32.mrf.mxu1  ;;  %577 = vst.msk [vmem:[%s1092_s27 + $0x28] sm:$0xff] %vm571_vm0, %v565_v8  ;;  %v551_v14 = vmul.f32 %v1082_v63, %v536_v9  ;;  %v512_v15 = vadd.f32 %v770_v11, %v392_v10  ;;  %v708_v16 = vadd.f32 %v707_v12, %v706_v6 }
 0x112   : > { %v709_v17 = vpop.f32.mrf.mxu0  ;;  %v773_v22 = vadd.f32 %v772_v13, %v771_v7 }
 0x113   : > { %v774_v18 = vpop.f32.mrf.mxu1  ;;  %v566_v19 = vadd.f32 %v1085_v4, %v551_v14  ;;  %v537_v20 = vmax.f32 %v512_v15, 0.0  ;;  %v397_v21 = vadd.f32 %v708_v16, %v1079_v50 }
 0x114   : > { %v710_v23 = vpop.f32.mrf.mxu0 }
 0x115   : > { %v775_v24 = vpop.f32.mrf.mxu1  ;;  %578 = vst.msk [vmem:[%s1092_s27 + $0x30] sm:$0xff] %vm571_vm0, %v566_v19  ;;  %v552_v25 = vmul.f32 %v1082_v63, %v537_v20  ;;  %v517_v26 = vadd.f32 %v773_v22, %v397_v21  ;;  %v711_v27 = vadd.f32 %v710_v23, %v709_v17 }
 0x116   : > { %v712_v28 = vpop.f32.mrf.mxu0  ;;  %v776_v33 = vadd.f32 %v775_v24, %v774_v18 }
 0x117   : > { %v777_v29 = vpop.f32.mrf.mxu1  ;;  %v567_v30 = vadd.f32 %v1085_v4, %v552_v25  ;;  %v538_v31 = vmax.f32 %v517_v26, 0.0  ;;  %v402_v32 = vadd.f32 %v711_v27, %v1079_v50 }
 0x118   : > { %v713_v34 = vpop.f32.mrf.mxu0 }
 0x119   : > { %v778_v35 = vpop.f32.mrf.mxu1  ;;  %579 = vst.msk [vmem:[%s1092_s27 + $0x38] sm:$0xff] %vm571_vm0, %v567_v30  ;;  %v553_v36 = vmul.f32 %v1082_v63, %v538_v31  ;;  %v522_v37 = vadd.f32 %v776_v33, %v402_v32  ;;  %v714_v38 = vadd.f32 %v713_v34, %v712_v28 }
 0x11a   : > { %v779_v42 = vadd.f32 %v778_v35, %v777_v29 }
 0x11b   : > { %v568_v39 = vadd.f32 %v1085_v4, %v553_v36  ;;  %v539_v40 = vmax.f32 %v522_v37, 0.0  ;;  %v407_v41 = vadd.f32 %v714_v38, %v1079_v50 }
 0x11d   : > { %580 = vst.msk [vmem:[%s1092_s27 + $0x40] sm:$0xff] %vm571_vm0, %v568_v39  ;;  %v554_v43 = vmul.f32 %v1082_v63, %v539_v40  ;;  %v527_v44 = vadd.f32 %v779_v42, %v407_v41 }
 0x11f   : > { %v569_v45 = vadd.f32 %v1085_v4, %v554_v43  ;;  %v540_v46 = vmax.f32 %v527_v44, 0.0 }
 0x121   : > { %581 = vst.msk [vmem:[%s1092_s27 + $0x48] sm:$0xff] %vm571_vm0, %v569_v45  ;;  %v555_v47 = vmul.f32 %v1082_v63, %v540_v46 }
 0x123   : > { %v570_v48 = vadd.f32 %v1085_v4, %v555_v47 }
 0x125   : > { %582 = vst.msk [vmem:[%s1092_s27 + $0x50] sm:$0xff] %vm571_vm0, %v570_v48 }
 0x126 PF: > { %s13_s12 = sadd.s32 1, %s794_s12  }
 0x127   : > { %p10_p4 = scmp.ge.s32.totalorder %s13_s12, 4  }
 0x129   :  { %12 = sbr.rel (!%p10_p4) target bundleno = 1 (0x1), region = 62 }

// kernel: gaze_prediction_forward.8
= control target key start
LH: loop header
LB: loop body
LE: loop exit
PB: predicated region body
PF: predicated region fallthrough
CT: control target
= control target key end

     0   :  { %s934_s12 = smov 0   ;;  %s1272_s0 = inlined_call_operand.vmem [shape: f32[112,576], index: 0, kind: input, shape index: {}]   ;;  %s1273_s1 = inlined_call_operand.vmem [shape: f32[576,64], index: 1, kind: input, shape index: {}]   ;;  %s1274_s2 = inlined_call_operand.vmem [shape: f32[3,64], index: 2, kind: input, shape index: {}]   ;;  %s1275_s3 = inlined_call_operand.vmem [shape: f32[112,64], index: 3, kind: output, shape index: {}]  }
   0x1 LB: > { %s703_s13 = sadd.s32 4294967295, %s910_s12   ;;  %p707_p0 = scmp.ge.s32.totalorder %s910_s12, 1  ;;  %s910_s12 = sphi %s934_s12, %s13_s12  }
   0x2   : > { %p139_p1 = scmp.lt.s32.totalorder %s910_s12, 3 }
   0x4   : > { %p140_p2 = pnand %p707_p0, %p139_p1 }
   0x5   : > { %s1022_s16 = smul.u32 (!%p140_p2), 7, %s703_s13 }
   0x6   : > { %143 = sbr.rel (%p140_p2) target bundleno = 290 (0x122), region = 32 }
   0x7   : > { %p165_p3 = scmp.lt.s32.totalorder (!%p140_p2), %s1022_s16, 13 }
   0xb   : > { %v243_v0 = vld [vmem:[%s1273_s1 + $0xf8] sm:$0xff]  ;;  %v242_v4 = vld [vmem:[%s1273_s1 + $0xf0] sm:$0xff]  ;;  %v241_v8 = vld [vmem:[%s1273_s1 + $0xe8] sm:$0xff]  ;;  %s1277_s16 = smov (!%p165_p3, %s1022_s16), 13  ;;  %vm289_vm0 = vcmask 523264   ;;  %vm913_vm1 = vmmov 0  }
   0xc   : > { %v275_v1 = vld [vmem:[%s1273_s1 + $0x1f8] sm:$0xff]  ;;  %719 = vmatprep.subr.mxu0 %v243_v0  ;;  %v274_v5 = vld [vmem:[%s1273_s1 + $0x1f0] sm:$0xff]  ;;  %v273_v9 = vld [vmem:[%s1273_s1 + $0x1e8] sm:$0xff]  ;;  %s893_s14 = smul.u32 40, %s1277_s16  ;;  %s709_s15 = sshll.u32 %s1277_s16, 3 }
   0xd   : > { %v227_v2 = vld [vmem:[%s1273_s1 + $0x78] sm:$0xff]  ;;  %772 = vmatprep.subr.mxu1 %v275_v1  ;;  %v226_v6 = vld [vmem:[%s1273_s1 + $0x70] sm:$0xff]  ;;  %v225_v10 = vld [vmem:[%s1273_s1 + $0x68] sm:$0xff]  ;;  %s1253_s18 = scalar_lea.vmem %s1275_s3, %s709_s15 }
   0xe   : > { %v259_v3 = vld [vmem:[%s1273_s1 + $0x178] sm:$0xff]  ;;  %720 = vmatpush3.msra.mxu0 %v227_v2  ;;  %v258_v7 = vld [vmem:[%s1273_s1 + $0x170] sm:$0xff]  ;;  %v257_v11 = vld [vmem:[%s1273_s1 + $0x168] sm:$0xff]  ;;  %s1130_s6 = scalar_lea.vmem %s1272_s0, %s893_s14 }
   0xf   : > { %773 = vmatpush3.msra.mxu1 %v259_v3  ;;  %721 = vmatprep.subr.mxu0 %v242_v4  ;;  %v240_v12 = vld [vmem:[%s1273_s1 + $0xe0] sm:$0xff]  ;;  %v239_v16 = vld [vmem:[%s1273_s1 + $0xd8] sm:$0xff]  ;;  %v238_v20 = vld [vmem:[%s1273_s1 + $0xd0] sm:$0xff] }
  0x10   : > { %774 = vmatprep.subr.mxu1 %v274_v5  ;;  %722 = vmatpush3.msra.mxu0 %v226_v6  ;;  %v272_v13 = vld [vmem:[%s1273_s1 + $0x1e0] sm:$0xff]  ;;  %v271_v17 = vld [vmem:[%s1273_s1 + $0x1d8] sm:$0xff]  ;;  %v270_v21 = vld [vmem:[%s1273_s1 + $0x1d0] sm:$0xff] }
  0x11   : > { %775 = vmatpush3.msra.mxu1 %v258_v7  ;;  %723 = vmatprep.subr.mxu0 %v241_v8  ;;  %v224_v14 = vld [vmem:[%s1273_s1 + $0x60] sm:$0xff]  ;;  %v223_v18 = vld [vmem:[%s1273_s1 + $0x58] sm:$0xff]  ;;  %v222_v22 = vld [vmem:[%s1273_s1 + $0x50] sm:$0xff]  ;;  %v912_v7 = vmov 0.0  }
  0x12   : > { %776 = vmatprep.subr.mxu1 %v273_v9  ;;  %v256_v15 = vld [vmem:[%s1273_s1 + $0x160] sm:$0xff]  ;;  %724 = vmatpush3.msra.mxu0 %v225_v10  ;;  %v255_v19 = vld [vmem:[%s1273_s1 + $0x158] sm:$0xff]  ;;  %v254_v23 = vld [vmem:[%s1273_s1 + $0x150] sm:$0xff] }
  0x13   : > { %777 = vmatpush3.msra.mxu1 %v257_v11  ;;  %725 = vmatprep.subr.mxu0 %v240_v12  ;;  %v237_v24 = vld [vmem:[%s1273_s1 + $0xc8] sm:$0xff]  ;;  %v236_v28 = vld [vmem:[%s1273_s1 + $0xc0] sm:$0xff]  ;;  %v235_v32 = vld [vmem:[%s1273_s1 + $0xb8] sm:$0xff] }
  0x14   : > { %778 = vmatprep.subr.mxu1 %v272_v13  ;;  %726 = vmatpush3.msra.mxu0 %v224_v14  ;;  %v269_v25 = vld [vmem:[%s1273_s1 + $0x1c8] sm:$0xff]  ;;  %v268_v29 = vld [vmem:[%s1273_s1 + $0x1c0] sm:$0xff]  ;;  %v267_v33 = vld [vmem:[%s1273_s1 + $0x1b8] sm:$0xff] }
  0x15   : > { %779 = vmatpush3.msra.mxu1 %v256_v15  ;;  %727 = vmatprep.subr.mxu0 %v239_v16  ;;  %v221_v26 = vld [vmem:[%s1273_s1 + $0x48] sm:$0xff]  ;;  %v220_v30 = vld [vmem:[%s1273_s1 + $0x40] sm:$0xff]  ;;  %v219_v34 = vld [vmem:[%s1273_s1 + $0x38] sm:$0xff] }
  0x16   : > { %780 = vmatprep.subr.mxu1 %v271_v17  ;;  %728 = vmatpush3.msra.mxu0 %v223_v18  ;;  %v253_v27 = vld [vmem:[%s1273_s1 + $0x148] sm:$0xff]  ;;  %v252_v31 = vld [vmem:[%s1273_s1 + $0x140] sm:$0xff]  ;;  %v251_v35 = vld [vmem:[%s1273_s1 + $0x138] sm:$0xff] }
  0x17   : > { %781 = vmatpush3.msra.mxu1 %v255_v19  ;;  %729 = vmatprep.subr.mxu0 %v238_v20  ;;  %v234_v36 = vld [vmem:[%s1273_s1 + $0xb0] sm:$0xff]  ;;  %v233_v40 = vld [vmem:[%s1273_s1 + $0xa8] sm:$0xff]  ;;  %v232_v44 = vld [vmem:[%s1273_s1 + $0xa0] sm:$0xff] }
  0x18   : > { %782 = vmatprep.subr.mxu1 %v270_v21  ;;  %730 = vmatpush3.msra.mxu0 %v222_v22  ;;  %v266_v37 = vld [vmem:[%s1273_s1 + $0x1b0] sm:$0xff]  ;;  %v265_v41 = vld [vmem:[%s1273_s1 + $0x1a8] sm:$0xff]  ;;  %v264_v45 = vld [vmem:[%s1273_s1 + $0x1a0] sm:$0xff] }
  0x19   : > { %783 = vmatpush3.msra.mxu1 %v254_v23  ;;  %731 = vmatprep.subr.mxu0 %v237_v24  ;;  %v218_v38 = vld [vmem:[%s1273_s1 + $0x30] sm:$0xff]  ;;  %v217_v42 = vld [vmem:[%s1273_s1 + $0x28] sm:$0xff]  ;;  %v216_v46 = vld [vmem:[%s1273_s1 + $0x20] sm:$0xff] }
  0x1a   : > { %784 = vmatprep.subr.mxu1 %v269_v25  ;;  %732 = vmatpush3.msra.mxu0 %v221_v26  ;;  %v250_v39 = vld [vmem:[%s1273_s1 + $0x130] sm:$0xff]  ;;  %v249_v43 = vld [vmem:[%s1273_s1 + $0x128] sm:$0xff]  ;;  %v248_v47 = vld [vmem:[%s1273_s1 + $0x120] sm:$0xff] }
  0x1b   : > { %785 = vmatpush3.msra.mxu1 %v253_v27  ;;  %733 = vmatprep.subr.mxu0 %v236_v28  ;;  %v231_v48 = vld [vmem:[%s1273_s1 + $0x98] sm:$0xff]  ;;  %v230_v52 = vld [vmem:[%s1273_s1 + $0x90] sm:$0xff]  ;;  %v229_v56 = vld [vmem:[%s1273_s1 + $0x88] sm:$0xff] }
  0x1c   : > { %786 = vmatprep.subr.mxu1 %v268_v29  ;;  %734 = vmatpush3.msra.mxu0 %v220_v30  ;;  %v263_v49 = vld [vmem:[%s1273_s1 + $0x198] sm:$0xff]  ;;  %v262_v53 = vld [vmem:[%s1273_s1 + $0x190] sm:$0xff]  ;;  %v261_v57 = vld [vmem:[%s1273_s1 + $0x188] sm:$0xff] }
  0x1d   : > { %787 = vmatpush3.msra.mxu1 %v252_v31  ;;  %735 = vmatprep.subr.mxu0 %v235_v32  ;;  %v215_v50 = vld [vmem:[%s1273_s1 + $0x18] sm:$0xff]  ;;  %v214_v54 = vld [vmem:[%s1273_s1 + $0x10] sm:$0xff]  ;;  %v213_v58 = vld [vmem:[%s1273_s1 + $0x8] sm:$0xff] }
  0x1e   : > { %788 = vmatprep.subr.mxu1 %v267_v33  ;;  %736 = vmatpush3.msra.mxu0 %v219_v34  ;;  %v247_v51 = vld [vmem:[%s1273_s1 + $0x118] sm:$0xff]  ;;  %v246_v55 = vld [vmem:[%s1273_s1 + $0x110] sm:$0xff]  ;;  %v245_v59 = vld [vmem:[%s1273_s1 + $0x108] sm:$0xff] }
  0x1f   : > { %789 = vmatpush3.msra.mxu1 %v251_v35  ;;  %737 = vmatprep.subr.mxu0 %v234_v36  ;;  %v228_v60 = vld [vmem:[%s1273_s1 + $0x80] sm:$0xff]  ;;  %v178_v63 = vld [vmem:[%s1130_s6 + $0x8] sm:$0xff]  ;;  %v180_v1 = vld [vmem:[%s1130_s6 + $0x18] sm:$0xff] }
  0x20   : > { %790 = vmatprep.subr.mxu1 %v266_v37  ;;  %738 = vmatpush3.msra.mxu0 %v218_v38  ;;  %v260_v61 = vld [vmem:[%s1273_s1 + $0x180] sm:$0xff]  ;;  %v179_v3 = vld [vmem:[%s1130_s6 + $0x10] sm:$0xff]  ;;  %v283_v5 = vld [vmem:[%s1273_s1 + $0x238] sm:$0xff] }
  0x21   : > { %791 = vmatpush3.msra.mxu1 %v250_v39  ;;  %739 = vmatprep.subr.mxu0 %v233_v40  ;;  %v212_v62 = vld [vmem:[%s1273_s1] sm:$0xff]  ;;  %v183_v4 = vld [vmem:[%s1130_s6 + $0x30] sm:$0xff]  ;;  %v182_v8 = vld [vmem:[%s1130_s6 + $0x28] sm:$0xff] }
  0x22   : > { %792 = vmatprep.subr.mxu1 %v265_v41  ;;  %740 = vmatpush3.msra.mxu0 %v217_v42  ;;  %v244_v0 = vld [vmem:[%s1273_s1 + $0x100] sm:$0xff]  ;;  %v184_v9 = vld [vmem:[%s1130_s6 + $0x38] sm:$0xff]  ;;  %v282_v10 = vld [vmem:[%s1273_s1 + $0x230] sm:$0xff] }
  0x23   : > { %793 = vmatpush3.msra.mxu1 %v249_v43  ;;  %741 = vmatprep.subr.mxu0 %v232_v44  ;;  %v177_v2 = vld [vmem:[%s1130_s6] sm:$0xff]  ;;  %v188_v11 = vld [vmem:[%s1130_s6 + $0x58] sm:$0xff]  ;;  %v190_v12 = vld [vmem:[%s1130_s6 + $0x68] sm:$0xff] }
  0x24   : > { %794 = vmatprep.subr.mxu1 %v264_v45  ;;  %742 = vmatpush3.msra.mxu0 %v216_v46  ;;  %v185_v6 = vld [vmem:[%s1130_s6 + $0x40] sm:$0xff]  ;;  %v187_v13 = vld [vmem:[%s1130_s6 + $0x50] sm:$0xff]  ;;  %v281_v15 = vld [vmem:[%s1273_s1 + $0x228] sm:$0xff] }
  0x25   : > { %795 = vmatpush3.msra.mxu1 %v248_v47  ;;  %743 = vmatprep.subr.mxu0 %v231_v48  ;;  %v189_v14 = vld [vmem:[%s1130_s6 + $0x60] sm:$0xff]  ;;  %v195_v17 = vld [vmem:[%s1130_s6 + $0x90] sm:$0xff]  ;;  %v192_v18 = vld [vmem:[%s1130_s6 + $0x78] sm:$0xff] }
  0x26   : > { %796 = vmatprep.subr.mxu1 %v263_v49  ;;  %744 = vmatpush3.msra.mxu0 %v215_v50  ;;  %v193_v16 = vld [vmem:[%s1130_s6 + $0x80] sm:$0xff]  ;;  %v194_v19 = vld [vmem:[%s1130_s6 + $0x88] sm:$0xff]  ;;  %v200_v22 = vld [vmem:[%s1130_s6 + $0xb8] sm:$0xff] }
  0x27   : > { %797 = vmatpush3.msra.mxu1 %v247_v51  ;;  %745 = vmatprep.subr.mxu0 %v230_v52  ;;  %v280_v20 = vld [vmem:[%s1273_s1 + $0x220] sm:$0xff]  ;;  %v198_v21 = vld [vmem:[%s1130_s6 + $0xa8] sm:$0xff]  ;;  %v279_v23 = vld [vmem:[%s1273_s1 + $0x218] sm:$0xff]  ;;  %v285_v52 = vlaneseq }
  0x28   : > { %798 = vmatprep.subr.mxu1 %v262_v53  ;;  %746 = vmatpush3.msra.mxu0 %v214_v54  ;;  %v199_v24 = vld [vmem:[%s1130_s6 + $0xb0] sm:$0xff]  ;;  %v197_v25 = vld [vmem:[%s1130_s6 + $0xa0] sm:$0xff]  ;;  %v202_v29 = vld [vmem:[%s1130_s6 + $0xc8] sm:$0xff] }
  0x29   : > { %799 = vmatpush3.msra.mxu1 %v246_v55  ;;  %747 = vmatprep.subr.mxu0 %v229_v56  ;;  %v203_v26 = vld [vmem:[%s1130_s6 + $0xd0] sm:$0xff]  ;;  %v205_v27 = vld [vmem:[%s1130_s6 + $0xe0] sm:$0xff]  ;;  %v204_v30 = vld [vmem:[%s1130_s6 + $0xd8] sm:$0xff] }
  0x2a   : > { %800 = vmatprep.subr.mxu1 %v261_v57  ;;  %748 = vmatpush3.msra.mxu0 %v213_v58  ;;  %v278_v28 = vld [vmem:[%s1273_s1 + $0x210] sm:$0xff]  ;;  %v277_v31 = vld [vmem:[%s1273_s1 + $0x208] sm:$0xff]  ;;  %v208_v32 = vld [vmem:[%s1130_s6 + $0xf8] sm:$0xff]  ;;  %v286_v57 = vshrl.u32 %v285_v52, 7 }
  0x2b   : > { %801 = vmatpush3.msra.mxu1 %v245_v59  ;;  %749 = vmatprep.subr.mxu0 %v228_v60  ;;  %v210_v33 = vld [vmem:[%s1130_s6 + $0x108] sm:$0xff]  ;;  %v207_v34 = vld [vmem:[%s1130_s6 + $0xf0] sm:$0xff]  ;;  %v209_v35 = vld [vmem:[%s1130_s6 + $0x100] sm:$0xff] }
  0x2c   : > { %802 = vmatprep.subr.mxu1 %v260_v61  ;;  %750 = vmatpush3.msra.mxu0 %v212_v62  ;;  %v276_v36 = vld [vmem:[%s1273_s1 + $0x200] sm:$0xff]  ;;  %v186_v39 = vld [vmem:[%s1130_s6 + $0x48] sm:$0xff]  ;;  %v191_v41 = vld [vmem:[%s1130_s6 + $0x70] sm:$0xff]  ;;  %v287_v62 = vsub.s32 0, %v286_v57 }
  0x2d   : > { %375 = vmatprep.mubr.f32.mxu0 %v178_v63  ;;  %803 = vmatpush3.msra.mxu1 %v244_v0  ;;  %v181_v37 = vld [vmem:[%s1130_s6 + $0x20] sm:$0xff]  ;;  %v206_v40 = vld [vmem:[%s1130_s6 + $0xe8] sm:$0xff]  ;;  %v211_v42 = vld [vmem:[%s1130_s6 + $0x110] sm:$0xff] }
  0x2e   : > { %475 = vmatprep.mubr.f32.mxu1 %v180_v1  ;;  %376 = vmatmul.mubr.f32.vlgmr.msra.gmra.mxu0 %v177_v2  ;;  %v201_v38 = vld [vmem:[%s1130_s6 + $0xc0] sm:$0xff]  ;;  %v196_v43 = vld [vmem:[%s1130_s6 + $0x98] sm:$0xff] }
  0x2f   : > { %476 = vmatmul.mubr.f32.vlgmr.msra.gmra.mxu1 %v179_v3  ;;  %840 = vmatprep.subr.mxu0 %v912_v7  ;;  %v284_v0 = vld [vmem:[%s1274_s2] sm:$0x7] }
  0x30   : > { %380 = vmatprep.mubr.f32.mxu0 %v183_v4  ;;  %841 = vmatpush3.msra.mxu0 %v283_v5  ;;  %v288_v4 = vrot.slane %v284_v0, %v287_v62 }
  0x31   : > { %480 = vmatprep.mubr.f32.mxu1 %v185_v6  ;;  %877 = vmatprep.subr.mxu1 %v912_v7 }
  0x32   : > { %842 = vmatprep.subr.mxu0 %v912_v7  ;;  %381 = vmatmul.mubr.f32.gmra.mxu0 %v182_v8 }
  0x33   : > { %481 = vmatmul.mubr.f32.gmra.mxu1 %v184_v9  ;;  %843 = vmatpush3.msra.mxu0 %v282_v10 }
  0x34   : > { %885 = vmatpush3.msra.mxu1 %v283_v5  ;;  %385 = vmatprep.mubr.f32.mxu0 %v188_v11 }
  0x35   : > { %485 = vmatprep.mubr.f32.mxu1 %v190_v12  ;;  %844 = vmatprep.subr.mxu0 %v912_v7 }
  0x36   : > { %878 = vmatprep.subr.mxu1 %v912_v7  ;;  %386 = vmatmul.mubr.f32.gmra.mxu0 %v187_v13 }
  0x37   : > { %486 = vmatmul.mubr.f32.gmra.mxu1 %v189_v14  ;;  %845 = vmatpush3.msra.mxu0 %v281_v15 }
  0x38   : > { %886 = vmatpush3.msra.mxu1 %v282_v10  ;;  %390 = vmatprep.mubr.f32.mxu0 %v193_v16 }
  0x39   : > { %490 = vmatprep.mubr.f32.mxu1 %v195_v17  ;;  %879 = vmatprep.subr.mxu1 %v912_v7 }
  0x3a   : > { %846 = vmatprep.subr.mxu0 %v912_v7  ;;  %391 = vmatmul.mubr.f32.gmra.mxu0 %v192_v18 }
  0x3b   : > { %491 = vmatmul.mubr.f32.gmra.mxu1 %v194_v19  ;;  %847 = vmatpush3.msra.mxu0 %v280_v20  ;;  %v620_v19 = vsub.s32 1, %v286_v57 }
  0x3c   : > { %887 = vmatpush3.msra.mxu1 %v281_v15  ;;  %848 = vmatprep.subr.mxu0 %v912_v7 }
  0x3d   : > { %395 = vmatprep.mubr.f32.mxu0 %v198_v21  ;;  %495 = vmatprep.mubr.f32.mxu1 %v200_v22  ;;  %v631_v22 = vsub.s32 2, %v286_v57 }
  0x3e   : > { %880 = vmatprep.subr.mxu1 %v912_v7  ;;  %849 = vmatpush3.msra.mxu0 %v279_v23 }
  0x3f   : > { %496 = vmatmul.mubr.f32.gmra.mxu1 %v199_v24  ;;  %396 = vmatmul.mubr.f32.gmra.mxu0 %v197_v25 }
  0x40   : > { %888 = vmatpush3.msra.mxu1 %v280_v20  ;;  %850 = vmatprep.subr.mxu0 %v912_v7 }
  0x41   : > { %881 = vmatprep.subr.mxu1 %v912_v7  ;;  %400 = vmatprep.mubr.f32.mxu0 %v203_v26 }
  0x42   : > { %500 = vmatprep.mubr.f32.mxu1 %v205_v27  ;;  %889 = vmatpush3.msra.mxu1 %v279_v23 }
  0x43   : > { %851 = vmatpush3.msra.mxu0 %v278_v28  ;;  %501 = vmatmul.mubr.f32.gmra.mxu1 %v204_v30 }
  0x44   : > { %401 = vmatmul.mubr.f32.gmra.mxu0 %v202_v29  ;;  %852 = vmatprep.subr.mxu0 %v912_v7 }
  0x45   : > { %882 = vmatprep.subr.mxu1 %v912_v7  ;;  %853 = vmatpush3.msra.mxu0 %v277_v31 }
  0x46   : > { %405 = vmatprep.mubr.f32.mxu0 %v208_v32  ;;  %505 = vmatprep.mubr.f32.mxu1 %v210_v33  ;;  %v621_v32 = vrot.slane %v284_v0, %v620_v19 }
  0x47   : > { %890 = vmatpush3.msra.mxu1 %v278_v28  ;;  %854 = vmatprep.subr.mxu0 %v912_v7 }
  0x48   : > { %406 = vmatmul.mubr.f32.gmra.mxu0 %v207_v34  ;;  %506 = vmatmul.mubr.f32.gmra.mxu1 %v209_v35 }
  0x49   : > { %883 = vmatprep.subr.mxu1 %v912_v7  ;;  %855 = vmatpush3.msra.mxu0 %v276_v36 }
  0x4a   : > { %891 = vmatpush3.msra.mxu1 %v277_v31  ;;  %856 = vmatprep.mubr.msk.f32.mxu0 %vm913_vm1, %v912_v7 }
  0x4b   : > { %884 = vmatprep.subr.mxu1 %v912_v7  ;;  %868 = vmatprep.mubr.msk.f32.mxu1 %vm913_vm1, %v912_v7 }
  0x4c   : > { %892 = vmatpush3.msra.mxu1 %v276_v36  ;;  %857 = vmatmul.mubr.msk.f32.vlgmr.msra.gmra.mxu0 %vm289_vm0, %v181_v37  ;;  %v632_v36 = vrot.slane %v284_v0, %v631_v22 }
  0x4d   : > { %869 = vmatmul.mubr.msk.f32.vlgmr.msra.gmra.mxu1 %vm289_vm0, %v201_v38  ;;  %859 = vmatprep.mubr.msk.f32.mxu0 %vm913_vm1, %v912_v7 }
  0x4e   : > { %871 = vmatprep.mubr.msk.f32.mxu1 %vm913_vm1, %v912_v7 }
  0x50   : > { %860 = vmatmul.mubr.msk.f32.gmra.mxu0 %vm289_vm0, %v186_v39 }
  0x51   : > { %872 = vmatmul.mubr.msk.f32.gmra.mxu1 %vm289_vm0, %v206_v40  ;;  %862 = vmatprep.mubr.msk.f32.mxu0 %vm913_vm1, %v912_v7 }
  0x52   : > { %874 = vmatprep.mubr.msk.f32.mxu1 %vm913_vm1, %v912_v7 }
  0x54   : > { %863 = vmatmul.mubr.msk.f32.gmra.mxu0 %vm289_vm0, %v191_v41 }
  0x55   : > { %875 = vmatmul.mubr.msk.f32.gmra.mxu1 %vm289_vm0, %v211_v42  ;;  %865 = vmatprep.mubr.msk.f32.mxu0 %vm913_vm1, %v912_v7 }
  0x58   : > { %866 = vmatmul.mubr.msk.f32.gmra.mxu0 %vm289_vm0, %v196_v43 }
  0xee   : > { %v751_v44 = vpop.f32.mrf.mxu0 }
  0xef   : > { %v804_v45 = vpop.f32.mrf.mxu1 }
  0xf0   : > { %v752_v46 = vpop.f32.mrf.mxu0 }
  0xf1   : > { %v805_v47 = vpop.f32.mrf.mxu1  ;;  %v753_v5 = vadd.f32 %v752_v46, %v751_v44 }
  0xf2   : > { %v754_v48 = vpop.f32.mrf.mxu0  ;;  %v806_v12 = vadd.f32 %v805_v47, %v804_v45 }
  0xf3   : > { %v807_v49 = vpop.f32.mrf.mxu1  ;;  %v378_v11 = vadd.f32 %v753_v5, %v288_v4 }
  0xf4   : > { %v755_v50 = vpop.f32.mrf.mxu0 }
  0xf5   : > { %v808_v51 = vpop.f32.mrf.mxu1  ;;  %v756_v13 = vadd.f32 %v755_v50, %v754_v48  ;;  %v478_v26 = vadd.f32 %v806_v12, %v378_v11 }
  0xf6   : > { %v757_v53 = vpop.f32.mrf.mxu0  ;;  %v809_v23 = vadd.f32 %v808_v51, %v807_v49 }
  0xf7   : > { %v810_v54 = vpop.f32.mrf.mxu1  ;;  %v383_v27 = vadd.f32 %v756_v13, %v288_v4 }
  0xf8   : > { %v758_v55 = vpop.f32.mrf.mxu0 }
  0xf9   : > { %v811_v56 = vpop.f32.mrf.mxu1  ;;  %v759_v24 = vadd.f32 %v758_v55, %v757_v53  ;;  %v483_v46 = vadd.f32 %v809_v23, %v383_v27 }
  0xfa   : > { %v760_v58 = vpop.f32.mrf.mxu0  ;;  %v812_v34 = vadd.f32 %v811_v56, %v810_v54 }
  0xfb   : > { %v813_v59 = vpop.f32.mrf.mxu1  ;;  %v388_v38 = vadd.f32 %v759_v24, %v288_v4 }
  0xfc   : > { %v761_v60 = vpop.f32.mrf.mxu0 }
  0xfd   : > { %v814_v61 = vpop.f32.mrf.mxu1  ;;  %v762_v39 = vadd.f32 %v761_v60, %v760_v58  ;;  %v488_v58 = vadd.f32 %v812_v34, %v388_v38 }
  0xfe   : > { %v815_v55 = vadd.f32 %v814_v61, %v813_v59 }
  0xff   : > { %v816_v63 = vpop.f32.mrf.mxu1  ;;  %v763_v1 = vpop.f32.mrf.mxu0  ;;  %v393_v54 = vadd.f32 %v762_v39, %v288_v4 }
 0x101   : > { %v817_v2 = vpop.f32.mrf.mxu1  ;;  %v764_v3 = vpop.f32.mrf.mxu0 }
 0x102   : > { %v765_v6 = vadd.f32 %v764_v3, %v763_v1  ;;  %v818_v15 = vadd.f32 %v817_v2, %v816_v63 }
 0x103   : > { %v819_v8 = vpop.f32.mrf.mxu1 }
 0x104   : > { %v766_v7 = vpop.f32.mrf.mxu0  ;;  %v398_v14 = vadd.f32 %v765_v6, %v288_v4 }
 0x105   : > { %v820_v10 = vpop.f32.mrf.mxu1 }
 0x106   : > { %v767_v9 = vpop.f32.mrf.mxu0  ;;  %v821_v29 = vadd.f32 %v820_v10, %v819_v8  ;;  %v498_v30 = vadd.f32 %v818_v15, %v398_v14 }
 0x107   : > { %v768_v16 = vadd.f32 %v767_v9, %v766_v7  ;;  %v493_v7 = vadd.f32 %v815_v55, %v393_v54 }
 0x108   : > { %v769_v17 = vpop.f32.mrf.mxu0  ;;  %v822_v18 = vpop.f32.mrf.mxu1 }
 0x109   : > { %v403_v28 = vadd.f32 %v768_v16, %v288_v4 }
 0x10a   : > { %v770_v20 = vpop.f32.mrf.mxu0  ;;  %v823_v21 = vpop.f32.mrf.mxu1 }
 0x10b   : > { %v771_v25 = vadd.f32 %v770_v20, %v769_v17  ;;  %v824_v41 = vadd.f32 %v823_v21, %v822_v18  ;;  %v503_v47 = vadd.f32 %v821_v29, %v403_v28 }
 0x10c   : > { %v577_v31 = vpop.f32.mrf.mxu0 }
 0x10d   : > { %v597_v33 = vpop.f32.mrf.mxu1  ;;  %v578_v35 = vadd.f32 %v577_v31, %v478_v26  ;;  %v408_v40 = vadd.f32 %v771_v25, %v288_v4 }
 0x10e   : > { %v598_v37 = vadd.f32 %v597_v33, %v498_v30  ;;  %v858_v42 = vpop.f32.mrf.mxu0 }
 0x10f   : > { %v870_v43 = vpop.f32.mrf.mxu1  ;;  %v611_v44 = vmax.f32 %v578_v35, 0.0  ;;  %v508_v60 = vadd.f32 %v824_v41, %v408_v40 }
 0x110   : > { %v615_v45 = vmax.f32 %v598_v37, 0.0  ;;  %v582_v48 = vpop.f32.mrf.mxu0 }
 0x111   : > { %v602_v49 = vpop.f32.mrf.mxu1  ;;  %v622_v50 = vmul.f32 %v621_v32, %v611_v44  ;;  %v583_v52 = vadd.f32 %v582_v48, %v483_v46 }
 0x112   : > { %v626_v51 = vmul.f32 %v621_v32, %v615_v45  ;;  %v603_v53 = vadd.f32 %v602_v49, %v503_v47  ;;  %v861_v56 = vpop.f32.mrf.mxu0 }
 0x113   : > { %v873_v57 = vpop.f32.mrf.mxu1  ;;  %v633_v62 = vadd.f32 %v632_v36, %v622_v50  ;;  %v612_v0 = vmax.f32 %v583_v52, 0.0 }
 0x114   : > { %v637_v63 = vadd.f32 %v632_v36, %v626_v51  ;;  %v616_v1 = vmax.f32 %v603_v53, 0.0  ;;  %v587_v2 = vpop.f32.mrf.mxu0 }
 0x115   : > { %v607_v3 = vpop.f32.mrf.mxu1  ;;  %640 = vst.msk [vmem:[%s1253_s18] sm:$0xff] %vm289_vm0, %v633_v62  ;;  %v623_v59 = vmul.f32 %v621_v32, %v612_v0  ;;  %v588_v4 = vadd.f32 %v587_v2, %v488_v58 }
 0x116   : > { %644 = vst.msk [vmem:[%s1253_s18 + $0x20] sm:$0xff] %vm289_vm0, %v637_v63  ;;  %v627_v61 = vmul.f32 %v621_v32, %v616_v1  ;;  %v608_v5 = vadd.f32 %v607_v3, %v508_v60  ;;  %v864_v6 = vpop.f32.mrf.mxu0 }
 0x117   : > { %v876_v8 = vpop.f32.mrf.mxu1  ;;  %v634_v9 = vadd.f32 %v632_v36, %v623_v59  ;;  %v613_v11 = vmax.f32 %v588_v4, 0.0 }
 0x118   : > { %v638_v10 = vadd.f32 %v632_v36, %v627_v61  ;;  %v617_v12 = vmax.f32 %v608_v5, 0.0  ;;  %v592_v13 = vpop.f32.mrf.mxu0 }
 0x119   : > { %641 = vst.msk [vmem:[%s1253_s18 + $0x8] sm:$0xff] %vm289_vm0, %v634_v9  ;;  %v624_v14 = vmul.f32 %v621_v32, %v613_v11  ;;  %v593_v16 = vadd.f32 %v592_v13, %v493_v7 }
 0x11a   : > { %645 = vst.msk [vmem:[%s1253_s18 + $0x28] sm:$0xff] %vm289_vm0, %v638_v10  ;;  %v628_v15 = vmul.f32 %v621_v32, %v617_v12  ;;  %v867_v17 = vpop.f32.mrf.mxu0 }
 0x11b   : > { %v635_v18 = vadd.f32 %v632_v36, %v624_v14  ;;  %v614_v20 = vmax.f32 %v593_v16, 0.0 }
 0x11c   : > { %v639_v19 = vadd.f32 %v632_v36, %v628_v15 }
 0x11d   : > { %642 = vst.msk [vmem:[%s1253_s18 + $0x10] sm:$0xff] %vm289_vm0, %v635_v18  ;;  %v625_v21 = vmul.f32 %v621_v32, %v614_v20 }
 0x11e   : > { %646 = vst.msk [vmem:[%s1253_s18 + $0x30] sm:$0xff] %vm289_vm0, %v639_v19 }
 0x11f   : > { %v636_v22 = vadd.f32 %v632_v36, %v625_v21 }
 0x121   : > { %643 = vst.msk [vmem:[%s1253_s18 + $0x18] sm:$0xff] %vm289_vm0, %v636_v22 }
 0x122 PF: > { %s13_s12 = sadd.s32 1, %s910_s12  }
 0x123   : > { %p10_p4 = scmp.ge.s32.totalorder %s13_s12, 4  }
 0x125   :  { %12 = sbr.rel (!%p10_p4) target bundleno = 1 (0x1), region = 62 }

// kernel: reverse
= control target key start
LH: loop header
LB: loop body
LE: loop exit
PB: predicated region body
PF: predicated region fallthrough
CT: control target
= control target key end

     0   :  { %s872_s0 = inlined_call_operand.vmem [shape: f32[64,64,3,3], index: 0, kind: input, shape index: {}]   ;;  %s873_s1 = inlined_call_operand.vmem [shape: f32[64,64,3,3], index: 1, kind: output, shape index: {}]  }
   0x1   :  { %v288_v0 = vld [vmem:[%s872_s0 + $0x200] sm:$0xff]  ;;  %v304_v9 = vld [vmem:[%s872_s0 + $0x208] sm:$0xff]  ;;  %v322_v18 = vld [vmem:[%s872_s0 + $0x210] sm:$0xff] }
   0x2   :  { %v289_v1 = vld [vmem:[%s872_s0 + $0x140] sm:$0xff]  ;;  %4 = vst [vmem:[%s873_s1] sm:$0xff] %v288_v0  ;;  %v306_v10 = vld [vmem:[%s872_s0 + $0x148] sm:$0xff]  ;;  %305 = vst [vmem:[%s873_s1 + $0x8] sm:$0xff] %v304_v9 }
   0x3   :  { %v291_v2 = vld [vmem:[%s872_s0 + $0x80] sm:$0xff]  ;;  %290 = vst [vmem:[%s873_s1 + $0xc0] sm:$0xff] %v289_v1  ;;  %v308_v11 = vld [vmem:[%s872_s0 + $0x88] sm:$0xff]  ;;  %307 = vst [vmem:[%s873_s1 + $0xc8] sm:$0xff] %v306_v10 }
   0x4   :  { %292 = vst [vmem:[%s873_s1 + $0x180] sm:$0xff] %v291_v2  ;;  %v293_v3 = vld [vmem:[%s872_s0 + $0x1c0] sm:$0xff]  ;;  %309 = vst [vmem:[%s873_s1 + $0x188] sm:$0xff] %v308_v11  ;;  %v310_v12 = vld [vmem:[%s872_s0 + $0x1c8] sm:$0xff] }
   0x5   :  { %v295_v4 = vld [vmem:[%s872_s0 + $0x100] sm:$0xff]  ;;  %294 = vst [vmem:[%s873_s1 + $0x40] sm:$0xff] %v293_v3  ;;  %v312_v13 = vld [vmem:[%s872_s0 + $0x108] sm:$0xff]  ;;  %311 = vst [vmem:[%s873_s1 + $0x48] sm:$0xff] %v310_v12 }
   0x6   :  { %v297_v5 = vld [vmem:[%s872_s0 + $0x40] sm:$0xff]  ;;  %296 = vst [vmem:[%s873_s1 + $0x100] sm:$0xff] %v295_v4  ;;  %v314_v14 = vld [vmem:[%s872_s0 + $0x48] sm:$0xff]  ;;  %313 = vst [vmem:[%s873_s1 + $0x108] sm:$0xff] %v312_v13 }
   0x7   :  { %298 = vst [vmem:[%s873_s1 + $0x1c0] sm:$0xff] %v297_v5  ;;  %v299_v6 = vld [vmem:[%s872_s0 + $0x180] sm:$0xff]  ;;  %315 = vst [vmem:[%s873_s1 + $0x1c8] sm:$0xff] %v314_v14  ;;  %v316_v15 = vld [vmem:[%s872_s0 + $0x188] sm:$0xff] }
   0x8   :  { %v301_v7 = vld [vmem:[%s872_s0 + $0xc0] sm:$0xff]  ;;  %300 = vst [vmem:[%s873_s1 + $0x80] sm:$0xff] %v299_v6  ;;  %v318_v16 = vld [vmem:[%s872_s0 + $0xc8] sm:$0xff]  ;;  %317 = vst [vmem:[%s873_s1 + $0x88] sm:$0xff] %v316_v15 }
   0x9   :  { %v33_v8 = vld [vmem:[%s872_s0] sm:$0xff]  ;;  %302 = vst [vmem:[%s873_s1 + $0x140] sm:$0xff] %v301_v7  ;;  %v320_v17 = vld [vmem:[%s872_s0 + $0x8] sm:$0xff]  ;;  %319 = vst [vmem:[%s873_s1 + $0x148] sm:$0xff] %v318_v16 }
   0xa   :  { %303 = vst [vmem:[%s873_s1 + $0x200] sm:$0xff] %v33_v8  ;;  %321 = vst [vmem:[%s873_s1 + $0x208] sm:$0xff] %v320_v17  ;;  %v324_v19 = vld [vmem:[%s872_s0 + $0x150] sm:$0xff]  ;;  %v340_v27 = vld [vmem:[%s872_s0 + $0x218] sm:$0xff] }
   0xb   :  { %v326_v20 = vld [vmem:[%s872_s0 + $0x90] sm:$0xff]  ;;  %323 = vst [vmem:[%s873_s1 + $0x10] sm:$0xff] %v322_v18  ;;  %325 = vst [vmem:[%s873_s1 + $0xd0] sm:$0xff] %v324_v19  ;;  %v342_v28 = vld [vmem:[%s872_s0 + $0x158] sm:$0xff] }
   0xc   :  { %327 = vst [vmem:[%s873_s1 + $0x190] sm:$0xff] %v326_v20  ;;  %v328_v21 = vld [vmem:[%s872_s0 + $0x1d0] sm:$0xff]  ;;  %v344_v29 = vld [vmem:[%s872_s0 + $0x98] sm:$0xff]  ;;  %341 = vst [vmem:[%s873_s1 + $0x18] sm:$0xff] %v340_v27 }
   0xd   :  { %v330_v22 = vld [vmem:[%s872_s0 + $0x110] sm:$0xff]  ;;  %329 = vst [vmem:[%s873_s1 + $0x50] sm:$0xff] %v328_v21  ;;  %343 = vst [vmem:[%s873_s1 + $0xd8] sm:$0xff] %v342_v28  ;;  %v346_v30 = vld [vmem:[%s872_s0 + $0x1d8] sm:$0xff] }
   0xe   :  { %v332_v23 = vld [vmem:[%s872_s0 + $0x50] sm:$0xff]  ;;  %331 = vst [vmem:[%s873_s1 + $0x110] sm:$0xff] %v330_v22  ;;  %345 = vst [vmem:[%s873_s1 + $0x198] sm:$0xff] %v344_v29  ;;  %v348_v31 = vld [vmem:[%s872_s0 + $0x118] sm:$0xff] }
   0xf   :  { %333 = vst [vmem:[%s873_s1 + $0x1d0] sm:$0xff] %v332_v23  ;;  %v334_v24 = vld [vmem:[%s872_s0 + $0x190] sm:$0xff]  ;;  %v350_v32 = vld [vmem:[%s872_s0 + $0x58] sm:$0xff]  ;;  %347 = vst [vmem:[%s873_s1 + $0x58] sm:$0xff] %v346_v30 }
  0x10   :  { %v336_v25 = vld [vmem:[%s872_s0 + $0xd0] sm:$0xff]  ;;  %335 = vst [vmem:[%s873_s1 + $0x90] sm:$0xff] %v334_v24  ;;  %349 = vst [vmem:[%s873_s1 + $0x118] sm:$0xff] %v348_v31  ;;  %v352_v33 = vld [vmem:[%s872_s0 + $0x198] sm:$0xff] }
  0x11   :  { %v338_v26 = vld [vmem:[%s872_s0 + $0x10] sm:$0xff]  ;;  %337 = vst [vmem:[%s873_s1 + $0x150] sm:$0xff] %v336_v25  ;;  %351 = vst [vmem:[%s873_s1 + $0x1d8] sm:$0xff] %v350_v32  ;;  %v354_v34 = vld [vmem:[%s872_s0 + $0xd8] sm:$0xff] }
  0x12   :  { %339 = vst [vmem:[%s873_s1 + $0x210] sm:$0xff] %v338_v26  ;;  %v356_v35 = vld [vmem:[%s872_s0 + $0x18] sm:$0xff]  ;;  %353 = vst [vmem:[%s873_s1 + $0x98] sm:$0xff] %v352_v33  ;;  %v358_v36 = vld [vmem:[%s872_s0 + $0x220] sm:$0xff] }
  0x13   :  { %355 = vst [vmem:[%s873_s1 + $0x158] sm:$0xff] %v354_v34  ;;  %357 = vst [vmem:[%s873_s1 + $0x218] sm:$0xff] %v356_v35  ;;  %v360_v37 = vld [vmem:[%s872_s0 + $0x160] sm:$0xff]  ;;  %v376_v45 = vld [vmem:[%s872_s0 + $0x228] sm:$0xff] }
  0x14   :  { %v362_v38 = vld [vmem:[%s872_s0 + $0xa0] sm:$0xff]  ;;  %359 = vst [vmem:[%s873_s1 + $0x20] sm:$0xff] %v358_v36  ;;  %361 = vst [vmem:[%s873_s1 + $0xe0] sm:$0xff] %v360_v37  ;;  %v378_v46 = vld [vmem:[%s872_s0 + $0x168] sm:$0xff] }
  0x15   :  { %363 = vst [vmem:[%s873_s1 + $0x1a0] sm:$0xff] %v362_v38  ;;  %v364_v39 = vld [vmem:[%s872_s0 + $0x1e0] sm:$0xff]  ;;  %v380_v47 = vld [vmem:[%s872_s0 + $0xa8] sm:$0xff]  ;;  %377 = vst [vmem:[%s873_s1 + $0x28] sm:$0xff] %v376_v45 }
  0x16   :  { %v366_v40 = vld [vmem:[%s872_s0 + $0x120] sm:$0xff]  ;;  %365 = vst [vmem:[%s873_s1 + $0x60] sm:$0xff] %v364_v39  ;;  %379 = vst [vmem:[%s873_s1 + $0xe8] sm:$0xff] %v378_v46  ;;  %v382_v48 = vld [vmem:[%s872_s0 + $0x1e8] sm:$0xff] }
  0x17   :  { %v368_v41 = vld [vmem:[%s872_s0 + $0x60] sm:$0xff]  ;;  %367 = vst [vmem:[%s873_s1 + $0x120] sm:$0xff] %v366_v40  ;;  %381 = vst [vmem:[%s873_s1 + $0x1a8] sm:$0xff] %v380_v47  ;;  %v384_v49 = vld [vmem:[%s872_s0 + $0x128] sm:$0xff] }
  0x18   :  { %369 = vst [vmem:[%s873_s1 + $0x1e0] sm:$0xff] %v368_v41  ;;  %v370_v42 = vld [vmem:[%s872_s0 + $0x1a0] sm:$0xff]  ;;  %v386_v50 = vld [vmem:[%s872_s0 + $0x68] sm:$0xff]  ;;  %383 = vst [vmem:[%s873_s1 + $0x68] sm:$0xff] %v382_v48 }
  0x19   :  { %v372_v43 = vld [vmem:[%s872_s0 + $0xe0] sm:$0xff]  ;;  %371 = vst [vmem:[%s873_s1 + $0xa0] sm:$0xff] %v370_v42  ;;  %385 = vst [vmem:[%s873_s1 + $0x128] sm:$0xff] %v384_v49  ;;  %v388_v51 = vld [vmem:[%s872_s0 + $0x1a8] sm:$0xff] }
  0x1a   :  { %v374_v44 = vld [vmem:[%s872_s0 + $0x20] sm:$0xff]  ;;  %373 = vst [vmem:[%s873_s1 + $0x160] sm:$0xff] %v372_v43  ;;  %387 = vst [vmem:[%s873_s1 + $0x1e8] sm:$0xff] %v386_v50  ;;  %v390_v52 = vld [vmem:[%s872_s0 + $0xe8] sm:$0xff] }
  0x1b   :  { %375 = vst [vmem:[%s873_s1 + $0x220] sm:$0xff] %v374_v44  ;;  %v392_v53 = vld [vmem:[%s872_s0 + $0x28] sm:$0xff]  ;;  %389 = vst [vmem:[%s873_s1 + $0xa8] sm:$0xff] %v388_v51  ;;  %v394_v54 = vld [vmem:[%s872_s0 + $0x230] sm:$0xff] }
  0x1c   :  { %391 = vst [vmem:[%s873_s1 + $0x168] sm:$0xff] %v390_v52  ;;  %393 = vst [vmem:[%s873_s1 + $0x228] sm:$0xff] %v392_v53  ;;  %v396_v55 = vld [vmem:[%s872_s0 + $0x170] sm:$0xff]  ;;  %v412_v63 = vld [vmem:[%s872_s0 + $0x238] sm:$0xff] }
  0x1d   :  { %v398_v56 = vld [vmem:[%s872_s0 + $0xb0] sm:$0xff]  ;;  %395 = vst [vmem:[%s873_s1 + $0x30] sm:$0xff] %v394_v54  ;;  %397 = vst [vmem:[%s873_s1 + $0xf0] sm:$0xff] %v396_v55  ;;  %v414_v0 = vld [vmem:[%s872_s0 + $0x178] sm:$0xff] }
  0x1e   :  { %399 = vst [vmem:[%s873_s1 + $0x1b0] sm:$0xff] %v398_v56  ;;  %v400_v57 = vld [vmem:[%s872_s0 + $0x1f0] sm:$0xff]  ;;  %v416_v1 = vld [vmem:[%s872_s0 + $0xb8] sm:$0xff]  ;;  %413 = vst [vmem:[%s873_s1 + $0x38] sm:$0xff] %v412_v63 }
  0x1f   :  { %v402_v58 = vld [vmem:[%s872_s0 + $0x130] sm:$0xff]  ;;  %401 = vst [vmem:[%s873_s1 + $0x70] sm:$0xff] %v400_v57  ;;  %415 = vst [vmem:[%s873_s1 + $0xf8] sm:$0xff] %v414_v0  ;;  %v418_v2 = vld [vmem:[%s872_s0 + $0x1f8] sm:$0xff] }
  0x20   :  { %v404_v59 = vld [vmem:[%s872_s0 + $0x70] sm:$0xff]  ;;  %403 = vst [vmem:[%s873_s1 + $0x130] sm:$0xff] %v402_v58  ;;  %417 = vst [vmem:[%s873_s1 + $0x1b8] sm:$0xff] %v416_v1  ;;  %v420_v3 = vld [vmem:[%s872_s0 + $0x138] sm:$0xff] }
  0x21   :  { %405 = vst [vmem:[%s873_s1 + $0x1f0] sm:$0xff] %v404_v59  ;;  %v406_v60 = vld [vmem:[%s872_s0 + $0x1b0] sm:$0xff]  ;;  %v422_v4 = vld [vmem:[%s872_s0 + $0x78] sm:$0xff]  ;;  %419 = vst [vmem:[%s873_s1 + $0x78] sm:$0xff] %v418_v2 }
  0x22   :  { %v408_v61 = vld [vmem:[%s872_s0 + $0xf0] sm:$0xff]  ;;  %407 = vst [vmem:[%s873_s1 + $0xb0] sm:$0xff] %v406_v60  ;;  %421 = vst [vmem:[%s873_s1 + $0x138] sm:$0xff] %v420_v3  ;;  %v424_v5 = vld [vmem:[%s872_s0 + $0x1b8] sm:$0xff] }
  0x23   :  { %v410_v62 = vld [vmem:[%s872_s0 + $0x30] sm:$0xff]  ;;  %409 = vst [vmem:[%s873_s1 + $0x170] sm:$0xff] %v408_v61  ;;  %423 = vst [vmem:[%s873_s1 + $0x1f8] sm:$0xff] %v422_v4  ;;  %v426_v6 = vld [vmem:[%s872_s0 + $0xf8] sm:$0xff] }
  0x24   :  { %411 = vst [vmem:[%s873_s1 + $0x230] sm:$0xff] %v410_v62  ;;  %v428_v7 = vld [vmem:[%s872_s0 + $0x38] sm:$0xff]  ;;  %425 = vst [vmem:[%s873_s1 + $0xb8] sm:$0xff] %v424_v5 }
  0x25   :  { %427 = vst [vmem:[%s873_s1 + $0x178] sm:$0xff] %v426_v6  ;;  %429 = vst [vmem:[%s873_s1 + $0x238] sm:$0xff] %v428_v7 }

// kernel: gaze_prediction_forward.9
= control target key start
LH: loop header
LB: loop body
LE: loop exit
PB: predicated region body
PF: predicated region fallthrough
CT: control target
= control target key end

     0   :  { %s1086_s12 = smov 0   ;;  %s1536_s0 = inlined_call_operand.vmem [shape: f32[176,576], index: 0, kind: input, shape index: {}]   ;;  %s1537_s1 = inlined_call_operand.vmem [shape: f32[576,64], index: 1, kind: input, shape index: {}]   ;;  %s1538_s2 = inlined_call_operand.vmem [shape: f32[3,64], index: 2, kind: input, shape index: {}]   ;;  %s1539_s3 = inlined_call_operand.vmem [shape: f32[176,64], index: 3, kind: output, shape index: {}]  }
   0x1 LB: > { %s811_s13 = sadd.s32 4294967295, %s1062_s12   ;;  %p815_p0 = scmp.ge.s32.totalorder %s1062_s12, 1  ;;  %s1062_s12 = sphi %s1086_s12, %s13_s12  }
   0x2   : > { %p139_p1 = scmp.lt.s32.totalorder %s1062_s12, 3 }
   0x4   : > { %p140_p2 = pnand %p815_p0, %p139_p1 }
   0x5   : > { %s1174_s16 = smul.u32 (!%p140_p2), 11, %s811_s13 }
   0x6   : > { %143 = sbr.rel (%p140_p2) target bundleno = 312 (0x138), region = 32 }
   0x7   : > { %p165_p3 = scmp.lt.s32.totalorder (!%p140_p2), %s1174_s16, 21 }
   0xb   : > { %v263_v0 = vld [vmem:[%s1537_s1 + $0xf8] sm:$0xff]  ;;  %v262_v4 = vld [vmem:[%s1537_s1 + $0xf0] sm:$0xff]  ;;  %v261_v8 = vld [vmem:[%s1537_s1 + $0xe8] sm:$0xff]  ;;  %s1541_s16 = smov (!%p165_p3, %s1174_s16), 21  ;;  %vm1065_vm0 = vmmov 0   ;;  %vm309_vm1 = vcmask 523264  }
   0xc   : > { %v295_v1 = vld [vmem:[%s1537_s1 + $0x1f8] sm:$0xff]  ;;  %831 = vmatprep.subr.mxu0 %v263_v0  ;;  %v294_v5 = vld [vmem:[%s1537_s1 + $0x1f0] sm:$0xff]  ;;  %v293_v9 = vld [vmem:[%s1537_s1 + $0x1e8] sm:$0xff]  ;;  %s1045_s14 = smul.u32 40, %s1541_s16  ;;  %s817_s15 = sshll.u32 %s1541_s16, 3 }
   0xd   : > { %v247_v2 = vld [vmem:[%s1537_s1 + $0x78] sm:$0xff]  ;;  %896 = vmatprep.subr.mxu1 %v295_v1  ;;  %v246_v6 = vld [vmem:[%s1537_s1 + $0x70] sm:$0xff]  ;;  %v245_v10 = vld [vmem:[%s1537_s1 + $0x68] sm:$0xff]  ;;  %s1479_s17 = scalar_lea.vmem %s1539_s3, %s817_s15 }
   0xe   : > { %v279_v3 = vld [vmem:[%s1537_s1 + $0x178] sm:$0xff]  ;;  %832 = vmatpush3.msra.mxu0 %v247_v2  ;;  %v278_v7 = vld [vmem:[%s1537_s1 + $0x170] sm:$0xff]  ;;  %v277_v11 = vld [vmem:[%s1537_s1 + $0x168] sm:$0xff]  ;;  %s1282_s6 = scalar_lea.vmem %s1536_s0, %s1045_s14 }
   0xf   : > { %897 = vmatpush3.msra.mxu1 %v279_v3  ;;  %833 = vmatprep.subr.mxu0 %v262_v4  ;;  %v260_v12 = vld [vmem:[%s1537_s1 + $0xe0] sm:$0xff]  ;;  %v259_v16 = vld [vmem:[%s1537_s1 + $0xd8] sm:$0xff]  ;;  %v258_v20 = vld [vmem:[%s1537_s1 + $0xd0] sm:$0xff] }
  0x10   : > { %898 = vmatprep.subr.mxu1 %v294_v5  ;;  %834 = vmatpush3.msra.mxu0 %v246_v6  ;;  %v292_v13 = vld [vmem:[%s1537_s1 + $0x1e0] sm:$0xff]  ;;  %v291_v17 = vld [vmem:[%s1537_s1 + $0x1d8] sm:$0xff]  ;;  %v290_v21 = vld [vmem:[%s1537_s1 + $0x1d0] sm:$0xff] }
  0x11   : > { %899 = vmatpush3.msra.mxu1 %v278_v7  ;;  %835 = vmatprep.subr.mxu0 %v261_v8  ;;  %v244_v14 = vld [vmem:[%s1537_s1 + $0x60] sm:$0xff]  ;;  %v243_v18 = vld [vmem:[%s1537_s1 + $0x58] sm:$0xff]  ;;  %v242_v22 = vld [vmem:[%s1537_s1 + $0x50] sm:$0xff]  ;;  %v1064_v7 = vmov 0.0  }
  0x12   : > { %900 = vmatprep.subr.mxu1 %v293_v9  ;;  %v276_v15 = vld [vmem:[%s1537_s1 + $0x160] sm:$0xff]  ;;  %836 = vmatpush3.msra.mxu0 %v245_v10  ;;  %v275_v19 = vld [vmem:[%s1537_s1 + $0x158] sm:$0xff]  ;;  %v274_v23 = vld [vmem:[%s1537_s1 + $0x150] sm:$0xff] }
  0x13   : > { %901 = vmatpush3.msra.mxu1 %v277_v11  ;;  %837 = vmatprep.subr.mxu0 %v260_v12  ;;  %v257_v24 = vld [vmem:[%s1537_s1 + $0xc8] sm:$0xff]  ;;  %v256_v28 = vld [vmem:[%s1537_s1 + $0xc0] sm:$0xff]  ;;  %v255_v32 = vld [vmem:[%s1537_s1 + $0xb8] sm:$0xff] }
  0x14   : > { %902 = vmatprep.subr.mxu1 %v292_v13  ;;  %838 = vmatpush3.msra.mxu0 %v244_v14  ;;  %v289_v25 = vld [vmem:[%s1537_s1 + $0x1c8] sm:$0xff]  ;;  %v288_v29 = vld [vmem:[%s1537_s1 + $0x1c0] sm:$0xff]  ;;  %v287_v33 = vld [vmem:[%s1537_s1 + $0x1b8] sm:$0xff] }
  0x15   : > { %903 = vmatpush3.msra.mxu1 %v276_v15  ;;  %839 = vmatprep.subr.mxu0 %v259_v16  ;;  %v241_v26 = vld [vmem:[%s1537_s1 + $0x48] sm:$0xff]  ;;  %v240_v30 = vld [vmem:[%s1537_s1 + $0x40] sm:$0xff]  ;;  %v239_v34 = vld [vmem:[%s1537_s1 + $0x38] sm:$0xff] }
  0x16   : > { %904 = vmatprep.subr.mxu1 %v291_v17  ;;  %840 = vmatpush3.msra.mxu0 %v243_v18  ;;  %v273_v27 = vld [vmem:[%s1537_s1 + $0x148] sm:$0xff]  ;;  %v272_v31 = vld [vmem:[%s1537_s1 + $0x140] sm:$0xff]  ;;  %v271_v35 = vld [vmem:[%s1537_s1 + $0x138] sm:$0xff] }
  0x17   : > { %905 = vmatpush3.msra.mxu1 %v275_v19  ;;  %841 = vmatprep.subr.mxu0 %v258_v20  ;;  %v254_v36 = vld [vmem:[%s1537_s1 + $0xb0] sm:$0xff]  ;;  %v253_v40 = vld [vmem:[%s1537_s1 + $0xa8] sm:$0xff]  ;;  %v252_v44 = vld [vmem:[%s1537_s1 + $0xa0] sm:$0xff] }
  0x18   : > { %906 = vmatprep.subr.mxu1 %v290_v21  ;;  %842 = vmatpush3.msra.mxu0 %v242_v22  ;;  %v286_v37 = vld [vmem:[%s1537_s1 + $0x1b0] sm:$0xff]  ;;  %v285_v41 = vld [vmem:[%s1537_s1 + $0x1a8] sm:$0xff]  ;;  %v284_v45 = vld [vmem:[%s1537_s1 + $0x1a0] sm:$0xff] }
  0x19   : > { %907 = vmatpush3.msra.mxu1 %v274_v23  ;;  %843 = vmatprep.subr.mxu0 %v257_v24  ;;  %v238_v38 = vld [vmem:[%s1537_s1 + $0x30] sm:$0xff]  ;;  %v237_v42 = vld [vmem:[%s1537_s1 + $0x28] sm:$0xff]  ;;  %v236_v46 = vld [vmem:[%s1537_s1 + $0x20] sm:$0xff] }
  0x1a   : > { %908 = vmatprep.subr.mxu1 %v289_v25  ;;  %844 = vmatpush3.msra.mxu0 %v241_v26  ;;  %v270_v39 = vld [vmem:[%s1537_s1 + $0x130] sm:$0xff]  ;;  %v269_v43 = vld [vmem:[%s1537_s1 + $0x128] sm:$0xff]  ;;  %v268_v47 = vld [vmem:[%s1537_s1 + $0x120] sm:$0xff] }
  0x1b   : > { %909 = vmatpush3.msra.mxu1 %v273_v27  ;;  %845 = vmatprep.subr.mxu0 %v256_v28  ;;  %v251_v48 = vld [vmem:[%s1537_s1 + $0x98] sm:$0xff]  ;;  %v250_v52 = vld [vmem:[%s1537_s1 + $0x90] sm:$0xff]  ;;  %v249_v56 = vld [vmem:[%s1537_s1 + $0x88] sm:$0xff] }
  0x1c   : > { %910 = vmatprep.subr.mxu1 %v288_v29  ;;  %846 = vmatpush3.msra.mxu0 %v240_v30  ;;  %v283_v49 = vld [vmem:[%s1537_s1 + $0x198] sm:$0xff]  ;;  %v282_v53 = vld [vmem:[%s1537_s1 + $0x190] sm:$0xff]  ;;  %v281_v57 = vld [vmem:[%s1537_s1 + $0x188] sm:$0xff] }
  0x1d   : > { %911 = vmatpush3.msra.mxu1 %v272_v31  ;;  %847 = vmatprep.subr.mxu0 %v255_v32  ;;  %v235_v50 = vld [vmem:[%s1537_s1 + $0x18] sm:$0xff]  ;;  %v234_v54 = vld [vmem:[%s1537_s1 + $0x10] sm:$0xff]  ;;  %v233_v58 = vld [vmem:[%s1537_s1 + $0x8] sm:$0xff] }
  0x1e   : > { %912 = vmatprep.subr.mxu1 %v287_v33  ;;  %848 = vmatpush3.msra.mxu0 %v239_v34  ;;  %v267_v51 = vld [vmem:[%s1537_s1 + $0x118] sm:$0xff]  ;;  %v266_v55 = vld [vmem:[%s1537_s1 + $0x110] sm:$0xff]  ;;  %v265_v59 = vld [vmem:[%s1537_s1 + $0x108] sm:$0xff] }
  0x1f   : > { %913 = vmatpush3.msra.mxu1 %v271_v35  ;;  %849 = vmatprep.subr.mxu0 %v254_v36  ;;  %v248_v60 = vld [vmem:[%s1537_s1 + $0x80] sm:$0xff]  ;;  %v178_v63 = vld [vmem:[%s1282_s6 + $0x8] sm:$0xff]  ;;  %v180_v1 = vld [vmem:[%s1282_s6 + $0x18] sm:$0xff] }
  0x20   : > { %914 = vmatprep.subr.mxu1 %v286_v37  ;;  %850 = vmatpush3.msra.mxu0 %v238_v38  ;;  %v280_v61 = vld [vmem:[%s1537_s1 + $0x180] sm:$0xff]  ;;  %v179_v3 = vld [vmem:[%s1282_s6 + $0x10] sm:$0xff]  ;;  %v303_v5 = vld [vmem:[%s1537_s1 + $0x238] sm:$0xff] }
  0x21   : > { %915 = vmatpush3.msra.mxu1 %v270_v39  ;;  %851 = vmatprep.subr.mxu0 %v253_v40  ;;  %v232_v62 = vld [vmem:[%s1537_s1] sm:$0xff]  ;;  %v183_v4 = vld [vmem:[%s1282_s6 + $0x30] sm:$0xff]  ;;  %v182_v8 = vld [vmem:[%s1282_s6 + $0x28] sm:$0xff] }
  0x22   : > { %916 = vmatprep.subr.mxu1 %v285_v41  ;;  %852 = vmatpush3.msra.mxu0 %v237_v42  ;;  %v264_v0 = vld [vmem:[%s1537_s1 + $0x100] sm:$0xff]  ;;  %v184_v9 = vld [vmem:[%s1282_s6 + $0x38] sm:$0xff]  ;;  %v190_v11 = vld [vmem:[%s1282_s6 + $0x68] sm:$0xff] }
  0x23   : > { %917 = vmatpush3.msra.mxu1 %v269_v43  ;;  %853 = vmatprep.subr.mxu0 %v252_v44  ;;  %v177_v2 = vld [vmem:[%s1282_s6] sm:$0xff]  ;;  %v188_v10 = vld [vmem:[%s1282_s6 + $0x58] sm:$0xff]  ;;  %v302_v12 = vld [vmem:[%s1537_s1 + $0x230] sm:$0xff] }
  0x24   : > { %918 = vmatprep.subr.mxu1 %v284_v45  ;;  %854 = vmatpush3.msra.mxu0 %v236_v46  ;;  %v185_v6 = vld [vmem:[%s1282_s6 + $0x40] sm:$0xff]  ;;  %v187_v13 = vld [vmem:[%s1282_s6 + $0x50] sm:$0xff]  ;;  %v301_v17 = vld [vmem:[%s1537_s1 + $0x228] sm:$0xff] }
  0x25   : > { %919 = vmatpush3.msra.mxu1 %v268_v47  ;;  %855 = vmatprep.subr.mxu0 %v251_v48  ;;  %v189_v14 = vld [vmem:[%s1282_s6 + $0x60] sm:$0xff]  ;;  %v195_v16 = vld [vmem:[%s1282_s6 + $0x90] sm:$0xff]  ;;  %v192_v18 = vld [vmem:[%s1282_s6 + $0x78] sm:$0xff] }
  0x26   : > { %920 = vmatprep.subr.mxu1 %v283_v49  ;;  %856 = vmatpush3.msra.mxu0 %v235_v50  ;;  %v193_v15 = vld [vmem:[%s1282_s6 + $0x80] sm:$0xff]  ;;  %v194_v19 = vld [vmem:[%s1282_s6 + $0x88] sm:$0xff]  ;;  %v200_v21 = vld [vmem:[%s1282_s6 + $0xb8] sm:$0xff] }
  0x27   : > { %921 = vmatpush3.msra.mxu1 %v267_v51  ;;  %857 = vmatprep.subr.mxu0 %v250_v52  ;;  %v198_v20 = vld [vmem:[%s1282_s6 + $0xa8] sm:$0xff]  ;;  %v300_v22 = vld [vmem:[%s1537_s1 + $0x220] sm:$0xff]  ;;  %v199_v24 = vld [vmem:[%s1282_s6 + $0xb0] sm:$0xff] }
  0x28   : > { %922 = vmatprep.subr.mxu1 %v282_v53  ;;  %858 = vmatpush3.msra.mxu0 %v234_v54  ;;  %v197_v23 = vld [vmem:[%s1282_s6 + $0xa0] sm:$0xff]  ;;  %v203_v25 = vld [vmem:[%s1282_s6 + $0xd0] sm:$0xff]  ;;  %v299_v27 = vld [vmem:[%s1537_s1 + $0x218] sm:$0xff] }
  0x29   : > { %923 = vmatpush3.msra.mxu1 %v266_v55  ;;  %859 = vmatprep.subr.mxu0 %v249_v56  ;;  %v205_v26 = vld [vmem:[%s1282_s6 + $0xe0] sm:$0xff]  ;;  %v202_v28 = vld [vmem:[%s1282_s6 + $0xc8] sm:$0xff]  ;;  %v204_v29 = vld [vmem:[%s1282_s6 + $0xd8] sm:$0xff] }
  0x2a   : > { %924 = vmatprep.subr.mxu1 %v281_v57  ;;  %860 = vmatpush3.msra.mxu0 %v233_v58  ;;  %v208_v30 = vld [vmem:[%s1282_s6 + $0xf8] sm:$0xff]  ;;  %v210_v31 = vld [vmem:[%s1282_s6 + $0x108] sm:$0xff]  ;;  %v298_v32 = vld [vmem:[%s1537_s1 + $0x210] sm:$0xff] }
  0x2b   : > { %925 = vmatpush3.msra.mxu1 %v265_v59  ;;  %861 = vmatprep.subr.mxu0 %v248_v60  ;;  %v207_v33 = vld [vmem:[%s1282_s6 + $0xf0] sm:$0xff]  ;;  %v209_v34 = vld [vmem:[%s1282_s6 + $0x100] sm:$0xff]  ;;  %v297_v37 = vld [vmem:[%s1537_s1 + $0x208] sm:$0xff] }
  0x2c   : > { %926 = vmatprep.subr.mxu1 %v280_v61  ;;  %862 = vmatpush3.msra.mxu0 %v232_v62  ;;  %v213_v35 = vld [vmem:[%s1282_s6 + $0x120] sm:$0xff]  ;;  %v215_v36 = vld [vmem:[%s1282_s6 + $0x130] sm:$0xff]  ;;  %v212_v38 = vld [vmem:[%s1282_s6 + $0x118] sm:$0xff] }
  0x2d   : > { %407 = vmatprep.mubr.f32.mxu0 %v178_v63  ;;  %927 = vmatpush3.msra.mxu1 %v264_v0  ;;  %v214_v39 = vld [vmem:[%s1282_s6 + $0x128] sm:$0xff]  ;;  %v220_v41 = vld [vmem:[%s1282_s6 + $0x158] sm:$0xff]  ;;  %v296_v42 = vld [vmem:[%s1537_s1 + $0x200] sm:$0xff] }
  0x2e   : > { %527 = vmatprep.mubr.f32.mxu1 %v180_v1  ;;  %408 = vmatmul.mubr.f32.vlgmr.msra.gmra.mxu0 %v177_v2  ;;  %v218_v40 = vld [vmem:[%s1282_s6 + $0x148] sm:$0xff]  ;;  %v217_v43 = vld [vmem:[%s1282_s6 + $0x140] sm:$0xff]  ;;  %v219_v44 = vld [vmem:[%s1282_s6 + $0x150] sm:$0xff] }
  0x2f   : > { %528 = vmatmul.mubr.f32.vlgmr.msra.gmra.mxu1 %v179_v3  ;;  %980 = vmatprep.subr.mxu0 %v1064_v7  ;;  %v223_v45 = vld [vmem:[%s1282_s6 + $0x170] sm:$0xff]  ;;  %v225_v46 = vld [vmem:[%s1282_s6 + $0x180] sm:$0xff]  ;;  %v222_v47 = vld [vmem:[%s1282_s6 + $0x168] sm:$0xff] }
  0x30   : > { %412 = vmatprep.mubr.f32.mxu0 %v183_v4  ;;  %981 = vmatpush3.msra.mxu0 %v303_v5  ;;  %v224_v48 = vld [vmem:[%s1282_s6 + $0x178] sm:$0xff]  ;;  %v230_v50 = vld [vmem:[%s1282_s6 + $0x1a8] sm:$0xff]  ;;  %v227_v51 = vld [vmem:[%s1282_s6 + $0x190] sm:$0xff] }
  0x31   : > { %532 = vmatprep.mubr.f32.mxu1 %v185_v6  ;;  %1029 = vmatprep.subr.mxu1 %v1064_v7  ;;  %v228_v49 = vld [vmem:[%s1282_s6 + $0x198] sm:$0xff]  ;;  %v229_v52 = vld [vmem:[%s1282_s6 + $0x1a0] sm:$0xff]  ;;  %v211_v54 = vld [vmem:[%s1282_s6 + $0x110] sm:$0xff] }
  0x32   : > { %982 = vmatprep.subr.mxu0 %v1064_v7  ;;  %413 = vmatmul.mubr.f32.gmra.mxu0 %v182_v8  ;;  %v181_v53 = vld [vmem:[%s1282_s6 + $0x20] sm:$0xff]  ;;  %v186_v55 = vld [vmem:[%s1282_s6 + $0x48] sm:$0xff]  ;;  %v216_v56 = vld [vmem:[%s1282_s6 + $0x138] sm:$0xff] }
  0x33   : > { %533 = vmatmul.mubr.f32.gmra.mxu1 %v184_v9  ;;  %417 = vmatprep.mubr.f32.mxu0 %v188_v10  ;;  %v191_v57 = vld [vmem:[%s1282_s6 + $0x70] sm:$0xff]  ;;  %v221_v58 = vld [vmem:[%s1282_s6 + $0x160] sm:$0xff]  ;;  %v196_v59 = vld [vmem:[%s1282_s6 + $0x98] sm:$0xff] }
  0x34   : > { %1037 = vmatpush3.msra.mxu1 %v303_v5  ;;  %537 = vmatprep.mubr.f32.mxu1 %v190_v11  ;;  %v226_v60 = vld [vmem:[%s1282_s6 + $0x188] sm:$0xff]  ;;  %v201_v61 = vld [vmem:[%s1282_s6 + $0xc0] sm:$0xff]  ;;  %v231_v62 = vld [vmem:[%s1282_s6 + $0x1b0] sm:$0xff] }
  0x35   : > { %983 = vmatpush3.msra.mxu0 %v302_v12  ;;  %1030 = vmatprep.subr.mxu1 %v1064_v7  ;;  %v206_v63 = vld [vmem:[%s1282_s6 + $0xe8] sm:$0xff] }
  0x36   : > { %984 = vmatprep.subr.mxu0 %v1064_v7  ;;  %418 = vmatmul.mubr.f32.gmra.mxu0 %v187_v13 }
  0x37   : > { %538 = vmatmul.mubr.f32.gmra.mxu1 %v189_v14  ;;  %422 = vmatprep.mubr.f32.mxu0 %v193_v15 }
  0x38   : > { %542 = vmatprep.mubr.f32.mxu1 %v195_v16  ;;  %1038 = vmatpush3.msra.mxu1 %v302_v12 }
  0x39   : > { %985 = vmatpush3.msra.mxu0 %v301_v17  ;;  %1031 = vmatprep.subr.mxu1 %v1064_v7 }
  0x3a   : > { %986 = vmatprep.subr.mxu0 %v1064_v7  ;;  %423 = vmatmul.mubr.f32.gmra.mxu0 %v192_v18 }
  0x3b   : > { %543 = vmatmul.mubr.f32.gmra.mxu1 %v194_v19  ;;  %427 = vmatprep.mubr.f32.mxu0 %v198_v20 }
  0x3c   : > { %547 = vmatprep.mubr.f32.mxu1 %v200_v21  ;;  %1039 = vmatpush3.msra.mxu1 %v301_v17 }
  0x3d   : > { %987 = vmatpush3.msra.mxu0 %v300_v22  ;;  %1032 = vmatprep.subr.mxu1 %v1064_v7 }
  0x3e   : > { %988 = vmatprep.subr.mxu0 %v1064_v7  ;;  %428 = vmatmul.mubr.f32.gmra.mxu0 %v197_v23 }
  0x3f   : > { %548 = vmatmul.mubr.f32.gmra.mxu1 %v199_v24  ;;  %432 = vmatprep.mubr.f32.mxu0 %v203_v25 }
  0x40   : > { %552 = vmatprep.mubr.f32.mxu1 %v205_v26  ;;  %1040 = vmatpush3.msra.mxu1 %v300_v22  ;;  %v305_v22 = vlaneseq }
  0x41   : > { %989 = vmatpush3.msra.mxu0 %v299_v27  ;;  %1033 = vmatprep.subr.mxu1 %v1064_v7 }
  0x42   : > { %990 = vmatprep.subr.mxu0 %v1064_v7  ;;  %433 = vmatmul.mubr.f32.gmra.mxu0 %v202_v28 }
  0x43   : > { %553 = vmatmul.mubr.f32.gmra.mxu1 %v204_v29  ;;  %437 = vmatprep.mubr.f32.mxu0 %v208_v30 }
  0x44   : > { %557 = vmatprep.mubr.f32.mxu1 %v210_v31  ;;  %1041 = vmatpush3.msra.mxu1 %v299_v27  ;;  %v306_v27 = vshrl.u32 %v305_v22, 7 }
  0x45   : > { %991 = vmatpush3.msra.mxu0 %v298_v32  ;;  %1034 = vmatprep.subr.mxu1 %v1064_v7 }
  0x46   : > { %992 = vmatprep.subr.mxu0 %v1064_v7  ;;  %438 = vmatmul.mubr.f32.gmra.mxu0 %v207_v33 }
  0x47   : > { %558 = vmatmul.mubr.f32.gmra.mxu1 %v209_v34  ;;  %442 = vmatprep.mubr.f32.mxu0 %v213_v35  ;;  %v304_v35 = vld [vmem:[%s1538_s2] sm:$0x7] }
  0x48   : > { %562 = vmatprep.mubr.f32.mxu1 %v215_v36  ;;  %1042 = vmatpush3.msra.mxu1 %v298_v32  ;;  %v307_v32 = vsub.s32 0, %v306_v27 }
  0x49   : > { %993 = vmatpush3.msra.mxu0 %v297_v37  ;;  %1035 = vmatprep.subr.mxu1 %v1064_v7 }
  0x4a   : > { %994 = vmatprep.subr.mxu0 %v1064_v7  ;;  %443 = vmatmul.mubr.f32.gmra.mxu0 %v212_v38  ;;  %v1453_v38 = vrot.slane %v304_v35, %v307_v32 }
  0x4b   : > { %563 = vmatmul.mubr.f32.gmra.mxu1 %v214_v39  ;;  %447 = vmatprep.mubr.f32.mxu0 %v218_v40 }
  0x4c   : > { %567 = vmatprep.mubr.f32.mxu1 %v220_v41  ;;  %1043 = vmatpush3.msra.mxu1 %v297_v37 }
  0x4d   : > { %995 = vmatpush3.msra.mxu0 %v296_v42  ;;  %1036 = vmatprep.subr.mxu1 %v1064_v7 }
  0x4e   : > { %448 = vmatmul.mubr.f32.gmra.mxu0 %v217_v43  ;;  %1044 = vmatpush3.msra.mxu1 %v296_v42 }
  0x4f   : > { %568 = vmatmul.mubr.f32.gmra.mxu1 %v219_v44  ;;  %452 = vmatprep.mubr.f32.mxu0 %v223_v45 }
  0x50   : > { %572 = vmatprep.mubr.f32.mxu1 %v225_v46 }
  0x52   : > { %453 = vmatmul.mubr.f32.gmra.mxu0 %v222_v47 }
  0x53   : > { %573 = vmatmul.mubr.f32.gmra.mxu1 %v224_v48  ;;  %457 = vmatprep.mubr.f32.mxu0 %v228_v49 }
  0x54   : > { %577 = vmatprep.mubr.f32.mxu1 %v230_v50 }
  0x56   : > { %458 = vmatmul.mubr.f32.gmra.mxu0 %v227_v51 }
  0x57   : > { %578 = vmatmul.mubr.f32.gmra.mxu1 %v229_v52  ;;  %996 = vmatprep.mubr.msk.f32.mxu0 %vm1065_vm0, %v1064_v7 }
  0x58   : > { %1014 = vmatprep.mubr.msk.f32.mxu1 %vm1065_vm0, %v1064_v7 }
  0x5a   : > { %997 = vmatmul.mubr.msk.f32.vlgmr.msra.gmra.mxu0 %vm309_vm1, %v181_v53 }
  0x5b   : > { %1015 = vmatmul.mubr.msk.f32.vlgmr.msra.gmra.mxu1 %vm309_vm1, %v211_v54  ;;  %999 = vmatprep.mubr.msk.f32.mxu0 %vm1065_vm0, %v1064_v7 }
  0x5c   : > { %1017 = vmatprep.mubr.msk.f32.mxu1 %vm1065_vm0, %v1064_v7 }
  0x5e   : > { %1000 = vmatmul.mubr.msk.f32.gmra.mxu0 %vm309_vm1, %v186_v55 }
  0x5f   : > { %1018 = vmatmul.mubr.msk.f32.gmra.mxu1 %vm309_vm1, %v216_v56  ;;  %1002 = vmatprep.mubr.msk.f32.mxu0 %vm1065_vm0, %v1064_v7  ;;  %v716_v56 = vsub.s32 1, %v306_v27 }
  0x60   : > { %1020 = vmatprep.mubr.msk.f32.mxu1 %vm1065_vm0, %v1064_v7 }
  0x62   : > { %1003 = vmatmul.mubr.msk.f32.gmra.mxu0 %vm309_vm1, %v191_v57 }
  0x63   : > { %1021 = vmatmul.mubr.msk.f32.gmra.mxu1 %vm309_vm1, %v221_v58  ;;  %1005 = vmatprep.mubr.msk.f32.mxu0 %vm1065_vm0, %v1064_v7 }
  0x64   : > { %1023 = vmatprep.mubr.msk.f32.mxu1 %vm1065_vm0, %v1064_v7 }
  0x66   : > { %1006 = vmatmul.mubr.msk.f32.gmra.mxu0 %vm309_vm1, %v196_v59 }
  0x67   : > { %1024 = vmatmul.mubr.msk.f32.gmra.mxu1 %vm309_vm1, %v226_v60  ;;  %1008 = vmatprep.mubr.msk.f32.mxu0 %vm1065_vm0, %v1064_v7 }
  0x68   : > { %1026 = vmatprep.mubr.msk.f32.mxu1 %vm1065_vm0, %v1064_v7 }
  0x6a   : > { %1009 = vmatmul.mubr.msk.f32.gmra.mxu0 %vm309_vm1, %v201_v61 }
  0x6b   : > { %1027 = vmatmul.mubr.msk.f32.gmra.mxu1 %vm309_vm1, %v231_v62  ;;  %1011 = vmatprep.mubr.msk.f32.mxu0 %vm1065_vm0, %v1064_v7  ;;  %v731_v62 = vsub.s32 2, %v306_v27 }
  0x6e   : > { %1012 = vmatmul.mubr.msk.f32.gmra.mxu0 %vm309_vm1, %v206_v63 }
  0xee   : > { %v863_v0 = vpop.f32.mrf.mxu0 }
  0xef   : > { %v928_v1 = vpop.f32.mrf.mxu1 }
  0xf0   : > { %v864_v2 = vpop.f32.mrf.mxu0 }
  0xf1   : > { %v929_v3 = vpop.f32.mrf.mxu1  ;;  %v865_v39 = vadd.f32 %v864_v2, %v863_v0 }
  0xf2   : > { %v866_v4 = vpop.f32.mrf.mxu0  ;;  %v930_v46 = vadd.f32 %v929_v3, %v928_v1 }
  0xf3   : > { %v931_v5 = vpop.f32.mrf.mxu1  ;;  %v410_v45 = vadd.f32 %v865_v39, %v1453_v38 }
  0xf4   : > { %v867_v6 = vpop.f32.mrf.mxu0 }
  0xf5   : > { %v932_v8 = vpop.f32.mrf.mxu1  ;;  %v868_v49 = vadd.f32 %v867_v6, %v866_v4  ;;  %v530_v61 = vadd.f32 %v930_v46, %v410_v45 }
  0xf6   : > { %v869_v9 = vpop.f32.mrf.mxu0  ;;  %v933_v57 = vadd.f32 %v932_v8, %v931_v5  ;;  %v1462_v5 = vrot.slane %v304_v35, %v716_v56 }
  0xf7   : > { %v934_v10 = vpop.f32.mrf.mxu1  ;;  %v415_v63 = vadd.f32 %v868_v49, %v1453_v38 }
  0xf8   : > { %v870_v11 = vpop.f32.mrf.mxu0 }
  0xf9   : > { %v935_v12 = vpop.f32.mrf.mxu1  ;;  %v871_v53 = vadd.f32 %v870_v11, %v869_v9 }
  0xfa   : > { %v872_v13 = vpop.f32.mrf.mxu0  ;;  %v936_v4 = vadd.f32 %v935_v12, %v934_v10 }
  0xfb   : > { %v1430_v14 = vpop.f32.mrf.mxu1  ;;  %v420_v3 = vadd.f32 %v871_v53, %v1453_v38 }
  0xfc   : > { %v873_v15 = vpop.f32.mrf.mxu0 }
  0xfd   : > { %v1432_v7 = vpop.f32.mrf.mxu1  ;;  %v874_v6 = vadd.f32 %v873_v15, %v872_v13 }
  0xfe   : > { %v1434_v16 = vpop.f32.mrf.mxu0  ;;  %v939_v13 = vadd.f32 %v1432_v7, %v1430_v14 }
  0xff   : > { %v1436_v17 = vpop.f32.mrf.mxu1  ;;  %v425_v12 = vadd.f32 %v874_v6, %v1453_v38 }
 0x100   : > { %v1438_v18 = vpop.f32.mrf.mxu0 }
 0x101   : > { %v1440_v19 = vpop.f32.mrf.mxu1  ;;  %v877_v15 = vadd.f32 %v1438_v18, %v1434_v16 }
 0x102   : > { %v1442_v20 = vpop.f32.mrf.mxu0 }
 0x103   : > { %v1444_v21 = vpop.f32.mrf.mxu1 }
 0x104   : > { %v1446_v23 = vpop.f32.mrf.mxu0 }
 0x105   : > { %v1448_v24 = vpop.f32.mrf.mxu1 }
 0x106   : > { %v881_v25 = vpop.f32.mrf.mxu0 }
 0x107   : > { %v946_v26 = vpop.f32.mrf.mxu1 }
 0x108   : > { %v882_v28 = vpop.f32.mrf.mxu0 }
 0x109   : > { %v947_v29 = vpop.f32.mrf.mxu1  ;;  %v883_v42 = vadd.f32 %v882_v28, %v881_v25  ;;  %v1465_v28 = vrot.slane %v304_v35, %v731_v62 }
 0x10a   : > { %v884_v30 = vpop.f32.mrf.mxu0  ;;  %v948_v51 = vadd.f32 %v947_v29, %v946_v26 }
 0x10b   : > { %v949_v31 = vpop.f32.mrf.mxu1  ;;  %v440_v50 = vadd.f32 %v883_v42, %v1453_v38 }
 0x10c   : > { %v885_v33 = vpop.f32.mrf.mxu0 }
 0x10d   : > { %v950_v34 = vpop.f32.mrf.mxu1  ;;  %v886_v52 = vadd.f32 %v885_v33, %v884_v30  ;;  %v560_v2 = vadd.f32 %v948_v51, %v440_v50  ;;  %v535_v33 = vadd.f32 %v933_v57, %v415_v63  ;;  %v430_v50 = vadd.f32 %v877_v15, %v1453_v38 }
 0x10e   : > { %v887_v36 = vpop.f32.mrf.mxu0  ;;  %v951_v1 = vadd.f32 %v950_v34, %v949_v31 }
 0x10f   : > { %v952_v37 = vpop.f32.mrf.mxu1  ;;  %v445_v0 = vadd.f32 %v886_v52, %v1453_v38  ;;  %v545_v52 = vadd.f32 %v939_v13, %v425_v12 }
 0x110   : > { %v888_v40 = vpop.f32.mrf.mxu0 }
 0x111   : > { %v953_v41 = vpop.f32.mrf.mxu1  ;;  %v889_v58 = vadd.f32 %v888_v40, %v887_v36  ;;  %v565_v10 = vadd.f32 %v951_v1, %v445_v0 }
 0x112   : > { %v890_v43 = vpop.f32.mrf.mxu0  ;;  %v954_v26 = vadd.f32 %v953_v41, %v952_v37  ;;  %v540_v37 = vadd.f32 %v936_v4, %v420_v3 }
 0x113   : > { %v955_v44 = vpop.f32.mrf.mxu1  ;;  %v450_v25 = vadd.f32 %v889_v58, %v1453_v38  ;;  %v880_v58 = vadd.f32 %v1446_v23, %v1442_v20 }
 0x114   : > { %v891_v47 = vpop.f32.mrf.mxu0 }
 0x115   : > { %v956_v48 = vpop.f32.mrf.mxu1  ;;  %v892_v27 = vadd.f32 %v891_v47, %v890_v43  ;;  %v570_v16 = vadd.f32 %v954_v26, %v450_v25  ;;  %v435_v6 = vadd.f32 %v880_v58, %v1453_v38 }
 0x116   : > { %v893_v54 = vpop.f32.mrf.mxu0  ;;  %v957_v43 = vadd.f32 %v956_v48, %v955_v44  ;;  %v942_v44 = vadd.f32 %v1440_v19, %v1436_v17 }
 0x117   : > { %v1457_v55 = vpop.f32.mrf.mxu1  ;;  %v455_v42 = vadd.f32 %v892_v27, %v1453_v38 }
 0x118   : > { %v894_v59 = vpop.f32.mrf.mxu0 }
 0x119   : > { %v959_v60 = vpop.f32.mrf.mxu1  ;;  %v895_v45 = vadd.f32 %v894_v59, %v893_v54  ;;  %v575_v62 = vadd.f32 %v957_v43, %v455_v42 }
 0x11a   : > { %v649_v9 = vpop.f32.mrf.mxu0  ;;  %v960_v19 = vadd.f32 %v959_v60, %v1457_v55 }
 0x11b   : > { %v679_v11 = vpop.f32.mrf.mxu1  ;;  %v650_v22 = vadd.f32 %v649_v9, %v530_v61  ;;  %v460_v17 = vadd.f32 %v895_v45, %v1453_v38  ;;  %v945_v9 = vadd.f32 %v1448_v24, %v1444_v21 }
 0x11c   : > { %v680_v8 = vadd.f32 %v679_v11, %v560_v2  ;;  %v998_v29 = vpop.f32.mrf.mxu0 }
 0x11d   : > { %v1016_v30 = vpop.f32.mrf.mxu1  ;;  %v703_v31 = vmax.f32 %v650_v22, 0.0  ;;  %v580_v25 = vadd.f32 %v960_v19, %v460_v17  ;;  %v555_v12 = vadd.f32 %v945_v9, %v435_v6 }
 0x11e   : > { %v709_v32 = vmax.f32 %v680_v8, 0.0  ;;  %v654_v34 = vpop.f32.mrf.mxu0  ;;  %v550_v8 = vadd.f32 %v942_v44, %v430_v50 }
 0x11f   : > { %v684_v36 = vpop.f32.mrf.mxu1  ;;  %v718_v35 = vmul.f32 %v1462_v5, %v703_v31  ;;  %v655_v40 = vadd.f32 %v654_v34, %v535_v33 }
 0x120   : > { %v724_v39 = vmul.f32 %v1462_v5, %v709_v32  ;;  %v685_v41 = vadd.f32 %v684_v36, %v565_v10  ;;  %v1001_v14 = vpop.f32.mrf.mxu0 }
 0x121   : > { %v1019_v7 = vpop.f32.mrf.mxu1  ;;  %v733_v18 = vadd.f32 %v1465_v28, %v718_v35  ;;  %v704_v47 = vmax.f32 %v655_v40, 0.0 }
 0x122   : > { %v739_v46 = vadd.f32 %v1465_v28, %v724_v39  ;;  %v710_v49 = vmax.f32 %v685_v41, 0.0  ;;  %v659_v48 = vpop.f32.mrf.mxu0 }
 0x123   : > { %v689_v51 = vpop.f32.mrf.mxu1  ;;  %744 = vst.msk [vmem:[%s1479_s17] sm:$0xff] %vm309_vm1, %v733_v18  ;;  %v719_v53 = vmul.f32 %v1462_v5, %v704_v47  ;;  %v660_v56 = vadd.f32 %v659_v48, %v540_v37 }
 0x124   : > { %750 = vst.msk [vmem:[%s1479_s17 + $0x30] sm:$0xff] %vm309_vm1, %v739_v46  ;;  %v725_v54 = vmul.f32 %v1462_v5, %v710_v49  ;;  %v690_v57 = vadd.f32 %v689_v51, %v570_v16  ;;  %v1004_v59 = vpop.f32.mrf.mxu0 }
 0x125   : > { %v1022_v61 = vpop.f32.mrf.mxu1  ;;  %v734_v63 = vadd.f32 %v1465_v28, %v719_v53  ;;  %v705_v1 = vmax.f32 %v660_v56, 0.0 }
 0x126   : > { %v740_v0 = vadd.f32 %v1465_v28, %v725_v54  ;;  %v711_v2 = vmax.f32 %v690_v57, 0.0  ;;  %v664_v3 = vpop.f32.mrf.mxu0 }
 0x127   : > { %v694_v4 = vpop.f32.mrf.mxu1  ;;  %745 = vst.msk [vmem:[%s1479_s17 + $0x8] sm:$0xff] %vm309_vm1, %v734_v63  ;;  %v720_v20 = vmul.f32 %v1462_v5, %v705_v1  ;;  %v665_v55 = vadd.f32 %v664_v3, %v545_v52 }
 0x128   : > { %751 = vst.msk [vmem:[%s1479_s17 + $0x38] sm:$0xff] %vm309_vm1, %v740_v0  ;;  %v726_v23 = vmul.f32 %v1462_v5, %v711_v2  ;;  %v695_v60 = vadd.f32 %v694_v4, %v575_v62  ;;  %v1007_v11 = vpop.f32.mrf.mxu0 }
 0x129   : > { %v1025_v22 = vpop.f32.mrf.mxu1  ;;  %v735_v26 = vadd.f32 %v1465_v28, %v720_v20  ;;  %v706_v29 = vmax.f32 %v665_v55, 0.0 }
 0x12a   : > { %v741_v27 = vadd.f32 %v1465_v28, %v726_v23  ;;  %v712_v30 = vmax.f32 %v695_v60, 0.0  ;;  %v669_v31 = vpop.f32.mrf.mxu0 }
 0x12b   : > { %v699_v32 = vpop.f32.mrf.mxu1  ;;  %746 = vst.msk [vmem:[%s1479_s17 + $0x10] sm:$0xff] %vm309_vm1, %v735_v26  ;;  %v721_v21 = vmul.f32 %v1462_v5, %v706_v29  ;;  %v670_v38 = vadd.f32 %v669_v31, %v550_v8 }
 0x12c   : > { %752 = vst.msk [vmem:[%s1479_s17 + $0x40] sm:$0xff] %vm309_vm1, %v741_v27  ;;  %v727_v24 = vmul.f32 %v1462_v5, %v712_v30  ;;  %v700_v33 = vadd.f32 %v699_v32, %v580_v25  ;;  %v1010_v10 = vpop.f32.mrf.mxu0 }
 0x12d   : > { %v1028_v13 = vpop.f32.mrf.mxu1  ;;  %v736_v15 = vadd.f32 %v1465_v28, %v721_v21  ;;  %v707_v36 = vmax.f32 %v670_v38, 0.0 }
 0x12e   : > { %v742_v34 = vadd.f32 %v1465_v28, %v727_v24  ;;  %v713_v37 = vmax.f32 %v700_v33, 0.0  ;;  %v674_v35 = vpop.f32.mrf.mxu0 }
 0x12f   : > { %747 = vst.msk [vmem:[%s1479_s17 + $0x18] sm:$0xff] %vm309_vm1, %v736_v15  ;;  %v722_v39 = vmul.f32 %v1462_v5, %v707_v36  ;;  %v675_v41 = vadd.f32 %v674_v35, %v555_v12 }
 0x130   : > { %753 = vst.msk [vmem:[%s1479_s17 + $0x48] sm:$0xff] %vm309_vm1, %v742_v34  ;;  %v728_v40 = vmul.f32 %v1462_v5, %v713_v37  ;;  %v1013_v42 = vpop.f32.mrf.mxu0 }
 0x131   : > { %v737_v43 = vadd.f32 %v1465_v28, %v722_v39  ;;  %v708_v14 = vmax.f32 %v675_v41, 0.0 }
 0x132   : > { %v743_v45 = vadd.f32 %v1465_v28, %v728_v40 }
 0x133   : > { %748 = vst.msk [vmem:[%s1479_s17 + $0x20] sm:$0xff] %vm309_vm1, %v737_v43  ;;  %v723_v7 = vmul.f32 %v1462_v5, %v708_v14 }
 0x134   : > { %754 = vst.msk [vmem:[%s1479_s17 + $0x50] sm:$0xff] %vm309_vm1, %v743_v45 }
 0x135   : > { %v738_v16 = vadd.f32 %v1465_v28, %v723_v7 }
 0x137   : > { %749 = vst.msk [vmem:[%s1479_s17 + $0x28] sm:$0xff] %vm309_vm1, %v738_v16 }
 0x138 PF: > { %s13_s12 = sadd.s32 1, %s1062_s12  }
 0x139   : > { %p10_p4 = scmp.ge.s32.totalorder %s13_s12, 4  }
 0x13b   :  { %12 = sbr.rel (!%p10_p4) target bundleno = 1 (0x1), region = 62 }

// kernel: tile.51
= control target key start
LH: loop header
LB: loop body
LE: loop exit
PB: predicated region body
PF: predicated region fallthrough
CT: control target
= control target key end

     0   :  { %s22_s0 = inlined_call_operand.vmem [shape: f32[32], index: 0, kind: input, shape index: {}]   ;;  %s23_s1 = inlined_call_operand.vmem [shape: f32[4,32], index: 1, kind: output, shape index: {}]  }
   0x1   :  { %v4_v0 = vld [vmem:[%s22_s0] ss:$0 sm:$0xff] }
   0x2   :  { %5 = vst [vmem:[%s23_s1] sm:$0xf] %v4_v0 }

// kernel: tile.57
= control target key start
LH: loop header
LB: loop body
LE: loop exit
PB: predicated region body
PF: predicated region fallthrough
CT: control target
= control target key end

     0   :  { %vm8_vm0 = vcmask 261120   ;;  %s40_s8 = smov 32   ;;  %s41_s9 = smov 64   ;;  %vm14_vm1 = vcmask 1048320   ;;  %vm20_vm2 = vcmask 785920   ;;  %vm26_vm3 = vcmask 523520   ;;  %s58_s0 = inlined_call_operand.vmem [shape: f32[4,32], index: 0, kind: input, shape index: {}]   ;;  %s59_s1 = inlined_call_operand.vmem [shape: f32[1,128], index: 1, kind: output, shape index: {}]  }
   0x1   :  { %v5_v0 = vld [vmem:[%s58_s0] sm:$0xf]  ;;  %s39_s0 = smov 96  }
   0x2   :  { %6 = vst [vmem:[#allocation1] sm:$0xf] %v5_v0 }
   0x9   :  { %v11_v1 = vld [vmem:[#allocation1 + $0x3] sm:$0x1]   ;;  %v23_v2 = vld [vmem:[#allocation1 + $0x1] sm:$0x1]   ;;  %v7_v3 = vld [vmem:[#allocation1] sm:$0x1]  }
   0xa   :  { %12 = vrot.lane.b32.xlu0 %v11_v1, %s39_s0  ;;  %24 = vrot.lane.b32.xlu1 %v23_v2, %s40_s8  ;;  %v17_v4 = vld [vmem:[#allocation1 + $0x2] sm:$0x1]   ;;  %9 = vst.msk [vmem:[#allocation0] sm:$0x1] %vm8_vm0, %v7_v3  }
   0xe   :  { %18 = vrot.lane.b32.xlu0 %v17_v4, %s41_s9 }
  0x7c   :  { %v13_v5 = vpop.permute.xlu0 %12   ;;  %v25_v6 = vpop.permute.xlu1 %24  }
  0x7d   :  { %15 = vst.msk [vmem:[#allocation0] sm:$0x1] %vm14_vm1, %v13_v5  }
  0x80   :  { %v19_v7 = vpop.permute.xlu0 %18  }
  0x81   :  { %21 = vst.msk [vmem:[#allocation0] sm:$0x1] %vm20_vm2, %v19_v7  }
  0x82   :  { %27 = vst.msk [vmem:[#allocation0] sm:$0x1] %vm26_vm3, %v25_v6  }
  0x89   :  { %v32_v8 = vld [vmem:[#allocation0] sm:$0x1] }
  0x8a   :  { %35 = vst [vmem:[%s59_s1] sm:$0x1] %v32_v8 }

// kernel: gaze_prediction_forward.10
= control target key start
LH: loop header
LB: loop body
LE: loop exit
PB: predicated region body
PF: predicated region fallthrough
CT: control target
= control target key end

     0   :  { %s636_s12 = smov 0   ;;  %s846_s0 = inlined_call_operand.vmem [shape: f32[208,256], index: 0, kind: input, shape index: {}]   ;;  %s847_s1 = inlined_call_operand.vmem [shape: f32[256,128], index: 1, kind: input, shape index: {}]   ;;  %s848_s2 = inlined_call_operand.vmem [shape: f32[3,128], index: 2, kind: input, shape index: {}]   ;;  %s849_s3 = inlined_call_operand.vmem [shape: f32[208,128], index: 3, kind: output, shape index: {}]  }
   0x1 LB: > { %s486_s13 = sadd.s32 4294967295, %s614_s12   ;;  %p490_p0 = scmp.ge.s32.totalorder %s614_s12, 1  ;;  %s614_s12 = sphi %s636_s12, %s13_s12  }
   0x2   : > { %p139_p1 = scmp.lt.s32.totalorder %s614_s12, 3 }
   0x4   : > { %p140_p2 = pnand %p490_p0, %p139_p1 }
   0x5   : > { %s164_s15 = smul.u32 (!%p140_p2), 13, %s486_s13 }
   0x6   : > { %143 = sbr.rel (%p140_p2) target bundleno = 274 (0x112), region = 32 }
   0x7   : > { %p165_p3 = scmp.lt.s32.totalorder (!%p140_p2), %s164_s15, 25 }
   0xb   : > { %v234_v0 = vld [vmem:[%s847_s1 + $0xf8] sm:$0xff]  ;;  %v233_v2 = vld [vmem:[%s847_s1 + $0xf0] sm:$0xff]  ;;  %v232_v4 = vld [vmem:[%s847_s1 + $0xe8] sm:$0xff]  ;;  %s851_s15 = smov (!%p165_p3, %s164_s15), 25  ;;  %v236_v58 = vlaneseq }
   0xc   : > { %v218_v1 = vld [vmem:[%s847_s1 + $0x78] sm:$0xff]  ;;  %497 = vmatprep.subr.mxu0 %v234_v0  ;;  %568 = vmatprep.subr.mxu1 %v234_v0  ;;  %v217_v3 = vld [vmem:[%s847_s1 + $0x70] sm:$0xff]  ;;  %v216_v5 = vld [vmem:[%s847_s1 + $0x68] sm:$0xff]  ;;  %s496_s14 = sshll.u32 %s851_s15, 4  ;;  %s493_s7 = sshll.u32 %s851_s15, 3 }
   0xd   : > { %498 = vmatpush3.msra.mxu0 %v218_v1  ;;  %584 = vmatpush3.msra.mxu1 %v218_v1  ;;  %v231_v6 = vld [vmem:[%s847_s1 + $0xe0] sm:$0xff]  ;;  %v230_v8 = vld [vmem:[%s847_s1 + $0xd8] sm:$0xff]  ;;  %v229_v10 = vld [vmem:[%s847_s1 + $0xd0] sm:$0xff]  ;;  %s736_s23 = scalar_lea.vmem %s846_s0, %s496_s14  ;;  %v237_v59 = vshrl.u32 %v236_v58, 7  ;;  %s793_s10 = scalar_lea.vmem %s849_s3, %s493_s7 }
   0xe   : > { %499 = vmatprep.subr.mxu0 %v233_v2  ;;  %569 = vmatprep.subr.mxu1 %v233_v2  ;;  %v215_v7 = vld [vmem:[%s847_s1 + $0x60] sm:$0xff]  ;;  %v214_v9 = vld [vmem:[%s847_s1 + $0x58] sm:$0xff]  ;;  %v213_v11 = vld [vmem:[%s847_s1 + $0x50] sm:$0xff] }
   0xf   : > { %500 = vmatpush3.msra.mxu0 %v217_v3  ;;  %585 = vmatpush3.msra.mxu1 %v217_v3  ;;  %v228_v12 = vld [vmem:[%s847_s1 + $0xc8] sm:$0xff]  ;;  %v227_v14 = vld [vmem:[%s847_s1 + $0xc0] sm:$0xff]  ;;  %v226_v16 = vld [vmem:[%s847_s1 + $0xb8] sm:$0xff]  ;;  %v238_v60 = vsub.s32 0, %v237_v59  ;;  %v385_v0 = vsub.s32 1, %v237_v59 }
  0x10   : > { %501 = vmatprep.subr.mxu0 %v232_v4  ;;  %570 = vmatprep.subr.mxu1 %v232_v4  ;;  %v212_v13 = vld [vmem:[%s847_s1 + $0x48] sm:$0xff]  ;;  %v211_v15 = vld [vmem:[%s847_s1 + $0x40] sm:$0xff]  ;;  %v210_v17 = vld [vmem:[%s847_s1 + $0x38] sm:$0xff]  ;;  %v402_v4 = vsub.s32 2, %v237_v59 }
  0x11   : > { %502 = vmatpush3.msra.mxu0 %v216_v5  ;;  %586 = vmatpush3.msra.mxu1 %v216_v5  ;;  %v225_v18 = vld [vmem:[%s847_s1 + $0xb0] sm:$0xff]  ;;  %v224_v20 = vld [vmem:[%s847_s1 + $0xa8] sm:$0xff]  ;;  %v223_v22 = vld [vmem:[%s847_s1 + $0xa0] sm:$0xff] }
  0x12   : > { %503 = vmatprep.subr.mxu0 %v231_v6  ;;  %571 = vmatprep.subr.mxu1 %v231_v6  ;;  %v209_v19 = vld [vmem:[%s847_s1 + $0x30] sm:$0xff]  ;;  %v208_v21 = vld [vmem:[%s847_s1 + $0x28] sm:$0xff]  ;;  %v207_v23 = vld [vmem:[%s847_s1 + $0x20] sm:$0xff] }
  0x13   : > { %504 = vmatpush3.msra.mxu0 %v215_v7  ;;  %587 = vmatpush3.msra.mxu1 %v215_v7  ;;  %v222_v24 = vld [vmem:[%s847_s1 + $0x98] sm:$0xff]  ;;  %v221_v26 = vld [vmem:[%s847_s1 + $0x90] sm:$0xff]  ;;  %v220_v28 = vld [vmem:[%s847_s1 + $0x88] sm:$0xff] }
  0x14   : > { %505 = vmatprep.subr.mxu0 %v230_v8  ;;  %572 = vmatprep.subr.mxu1 %v230_v8  ;;  %v206_v25 = vld [vmem:[%s847_s1 + $0x18] sm:$0xff]  ;;  %v205_v27 = vld [vmem:[%s847_s1 + $0x10] sm:$0xff]  ;;  %v204_v29 = vld [vmem:[%s847_s1 + $0x8] sm:$0xff] }
  0x15   : > { %506 = vmatpush3.msra.mxu0 %v214_v9  ;;  %588 = vmatpush3.msra.mxu1 %v214_v9  ;;  %v219_v30 = vld [vmem:[%s847_s1 + $0x80] sm:$0xff]  ;;  %v178_v31 = vld [vmem:[%s736_s23 + $0x8] sm:$0xff]  ;;  %v192_v34 = vld [vmem:[%s736_s23 + $0x78] sm:$0xff] }
  0x16   : > { %507 = vmatprep.subr.mxu0 %v229_v10  ;;  %573 = vmatprep.subr.mxu1 %v229_v10  ;;  %v203_v32 = vld [vmem:[%s847_s1] sm:$0xff]  ;;  %v180_v35 = vld [vmem:[%s736_s23 + $0x18] sm:$0xff]  ;;  %v191_v36 = vld [vmem:[%s736_s23 + $0x70] sm:$0xff] }
  0x17   : > { %508 = vmatpush3.msra.mxu0 %v213_v11  ;;  %589 = vmatpush3.msra.mxu1 %v213_v11  ;;  %v177_v33 = vld [vmem:[%s736_s23] sm:$0xff]  ;;  %v194_v37 = vld [vmem:[%s736_s23 + $0x88] sm:$0xff]  ;;  %v179_v38 = vld [vmem:[%s736_s23 + $0x10] sm:$0xff] }
  0x18   : > { %509 = vmatprep.subr.mxu0 %v228_v12  ;;  %574 = vmatprep.subr.mxu1 %v228_v12  ;;  %v182_v39 = vld [vmem:[%s736_s23 + $0x28] sm:$0xff]  ;;  %v193_v40 = vld [vmem:[%s736_s23 + $0x80] sm:$0xff]  ;;  %v196_v41 = vld [vmem:[%s736_s23 + $0x98] sm:$0xff] }
  0x19   : > { %510 = vmatpush3.msra.mxu0 %v212_v13  ;;  %590 = vmatpush3.msra.mxu1 %v212_v13  ;;  %v181_v42 = vld [vmem:[%s736_s23 + $0x20] sm:$0xff]  ;;  %v184_v43 = vld [vmem:[%s736_s23 + $0x38] sm:$0xff]  ;;  %v195_v44 = vld [vmem:[%s736_s23 + $0x90] sm:$0xff] }
  0x1a   : > { %511 = vmatprep.subr.mxu0 %v227_v14  ;;  %575 = vmatprep.subr.mxu1 %v227_v14  ;;  %v198_v45 = vld [vmem:[%s736_s23 + $0xa8] sm:$0xff]  ;;  %v183_v46 = vld [vmem:[%s736_s23 + $0x30] sm:$0xff]  ;;  %v197_v48 = vld [vmem:[%s736_s23 + $0xa0] sm:$0xff] }
  0x1b   : > { %512 = vmatpush3.msra.mxu0 %v211_v15  ;;  %591 = vmatpush3.msra.mxu1 %v211_v15  ;;  %v186_v47 = vld [vmem:[%s736_s23 + $0x48] sm:$0xff]  ;;  %v200_v49 = vld [vmem:[%s736_s23 + $0xb8] sm:$0xff]  ;;  %v185_v50 = vld [vmem:[%s736_s23 + $0x40] sm:$0xff] }
  0x1c   : > { %513 = vmatprep.subr.mxu0 %v226_v16  ;;  %576 = vmatprep.subr.mxu1 %v226_v16  ;;  %v188_v51 = vld [vmem:[%s736_s23 + $0x58] sm:$0xff]  ;;  %v199_v52 = vld [vmem:[%s736_s23 + $0xb0] sm:$0xff]  ;;  %v202_v53 = vld [vmem:[%s736_s23 + $0xc8] sm:$0xff] }
  0x1d   : > { %514 = vmatpush3.msra.mxu0 %v210_v17  ;;  %592 = vmatpush3.msra.mxu1 %v210_v17  ;;  %v187_v54 = vld [vmem:[%s736_s23 + $0x50] sm:$0xff]  ;;  %v190_v55 = vld [vmem:[%s736_s23 + $0x68] sm:$0xff]  ;;  %v201_v56 = vld [vmem:[%s736_s23 + $0xc0] sm:$0xff] }
  0x1e   : > { %515 = vmatprep.subr.mxu0 %v225_v18  ;;  %577 = vmatprep.subr.mxu1 %v225_v18  ;;  %v189_v57 = vld [vmem:[%s736_s23 + $0x60] sm:$0xff] }
  0x1f   : > { %516 = vmatpush3.msra.mxu0 %v209_v19  ;;  %593 = vmatpush3.msra.mxu1 %v209_v19  ;;  %v235_v61 = vld [vmem:[%s848_s2] sm:$0x7] }
  0x20   : > { %517 = vmatprep.subr.mxu0 %v224_v20  ;;  %578 = vmatprep.subr.mxu1 %v224_v20  ;;  %v779_v63 = vrot.slane %v235_v61, %v238_v60  ;;  %v782_v8 = vrot.slane %v235_v61, %v385_v0  ;;  %v785_v13 = vrot.slane %v235_v61, %v402_v4 }
  0x21   : > { %518 = vmatpush3.msra.mxu0 %v208_v21  ;;  %594 = vmatpush3.msra.mxu1 %v208_v21 }
  0x22   : > { %519 = vmatprep.subr.mxu0 %v223_v22  ;;  %579 = vmatprep.subr.mxu1 %v223_v22 }
  0x23   : > { %520 = vmatpush3.msra.mxu0 %v207_v23  ;;  %595 = vmatpush3.msra.mxu1 %v207_v23 }
  0x24   : > { %521 = vmatprep.subr.mxu0 %v222_v24  ;;  %580 = vmatprep.subr.mxu1 %v222_v24 }
  0x25   : > { %522 = vmatpush3.msra.mxu0 %v206_v25  ;;  %596 = vmatpush3.msra.mxu1 %v206_v25 }
  0x26   : > { %523 = vmatprep.subr.mxu0 %v221_v26  ;;  %581 = vmatprep.subr.mxu1 %v221_v26 }
  0x27   : > { %524 = vmatpush3.msra.mxu0 %v205_v27  ;;  %597 = vmatpush3.msra.mxu1 %v205_v27 }
  0x28   : > { %525 = vmatprep.subr.mxu0 %v220_v28  ;;  %582 = vmatprep.subr.mxu1 %v220_v28 }
  0x29   : > { %526 = vmatpush3.msra.mxu0 %v204_v29  ;;  %598 = vmatpush3.msra.mxu1 %v204_v29 }
  0x2a   : > { %527 = vmatprep.subr.mxu0 %v219_v30  ;;  %304 = vmatprep.mubr.f32.mxu0 %v178_v31 }
  0x2b   : > { %528 = vmatpush3.msra.mxu0 %v203_v32  ;;  %583 = vmatprep.subr.mxu1 %v219_v30 }
  0x2c   : > { %305 = vmatmul.mubr.f32.vlgmr.msra.gmra.mxu0 %v177_v33  ;;  %599 = vmatpush3.msra.mxu1 %v203_v32 }
  0x2d   : > { %339 = vmatprep.mubr.f32.mxu1 %v192_v34  ;;  %309 = vmatprep.mubr.f32.mxu0 %v180_v35 }
  0x2e   : > { %340 = vmatmul.mubr.f32.vlgmr.msra.gmra.mxu1 %v191_v36 }
  0x2f   : > { %344 = vmatprep.mubr.f32.mxu1 %v194_v37 }
  0x30   : > { %310 = vmatmul.mubr.f32.gmra.mxu0 %v179_v38 }
  0x31   : > { %314 = vmatprep.mubr.f32.mxu0 %v182_v39 }
  0x32   : > { %345 = vmatmul.mubr.f32.gmra.mxu1 %v193_v40 }
  0x33   : > { %349 = vmatprep.mubr.f32.mxu1 %v196_v41 }
  0x34   : > { %315 = vmatmul.mubr.f32.gmra.mxu0 %v181_v42 }
  0x35   : > { %319 = vmatprep.mubr.f32.mxu0 %v184_v43 }
  0x36   : > { %350 = vmatmul.mubr.f32.gmra.mxu1 %v195_v44 }
  0x37   : > { %354 = vmatprep.mubr.f32.mxu1 %v198_v45 }
  0x38   : > { %320 = vmatmul.mubr.f32.gmra.mxu0 %v183_v46 }
  0x39   : > { %324 = vmatprep.mubr.f32.mxu0 %v186_v47 }
  0x3a   : > { %355 = vmatmul.mubr.f32.gmra.mxu1 %v197_v48 }
  0x3b   : > { %359 = vmatprep.mubr.f32.mxu1 %v200_v49 }
  0x3c   : > { %325 = vmatmul.mubr.f32.gmra.mxu0 %v185_v50 }
  0x3d   : > { %329 = vmatprep.mubr.f32.mxu0 %v188_v51 }
  0x3e   : > { %360 = vmatmul.mubr.f32.gmra.mxu1 %v199_v52 }
  0x3f   : > { %364 = vmatprep.mubr.f32.mxu1 %v202_v53 }
  0x40   : > { %330 = vmatmul.mubr.f32.gmra.mxu0 %v187_v54 }
  0x41   : > { %334 = vmatprep.mubr.f32.mxu0 %v190_v55 }
  0x42   : > { %365 = vmatmul.mubr.f32.gmra.mxu1 %v201_v56 }
  0x44   : > { %335 = vmatmul.mubr.f32.gmra.mxu0 %v189_v57 }
  0xec   : > { %v529_v62 = vpop.f32.mrf.mxu0 }
  0xee   : > { %v530_v1 = vpop.f32.mrf.mxu0  ;;  %v550_v2 = vpop.f32.mrf.mxu1 }
  0xef   : > { %v531_v3 = vadd.f32 %v530_v1, %v529_v62 }
  0xf0   : > { %v532_v5 = vpop.f32.mrf.mxu0  ;;  %v551_v6 = vpop.f32.mrf.mxu1 }
  0xf1   : > { %v307_v7 = vadd.f32 %v531_v3, %v779_v63  ;;  %v552_v9 = vadd.f32 %v551_v6, %v550_v2 }
  0xf2   : > { %v533_v10 = vpop.f32.mrf.mxu0  ;;  %v553_v11 = vpop.f32.mrf.mxu1 }
  0xf3   : > { %v370_v12 = vmax.f32 %v307_v7, 0.0  ;;  %v342_v14 = vadd.f32 %v552_v9, %v779_v63  ;;  %v534_v15 = vadd.f32 %v533_v10, %v532_v5 }
  0xf4   : > { %v535_v16 = vpop.f32.mrf.mxu0  ;;  %v554_v17 = vpop.f32.mrf.mxu1 }
  0xf5   : > { %v387_v18 = vmul.f32 %v782_v8, %v370_v12  ;;  %v377_v19 = vmax.f32 %v342_v14, 0.0  ;;  %v312_v20 = vadd.f32 %v534_v15, %v779_v63  ;;  %v555_v21 = vadd.f32 %v554_v17, %v553_v11 }
  0xf6   : > { %v536_v22 = vpop.f32.mrf.mxu0  ;;  %v556_v23 = vpop.f32.mrf.mxu1 }
  0xf7   : > { %v404_v24 = vadd.f32 %v785_v13, %v387_v18  ;;  %v394_v25 = vmul.f32 %v782_v8, %v377_v19  ;;  %v371_v26 = vmax.f32 %v312_v20, 0.0  ;;  %v347_v27 = vadd.f32 %v555_v21, %v779_v63 }
  0xf8   : > { %v537_v28 = vadd.f32 %v536_v22, %v535_v16  ;;  %v538_v29 = vpop.f32.mrf.mxu0  ;;  %v557_v30 = vpop.f32.mrf.mxu1 }
  0xf9   : > { %417 = vst [vmem:[%s793_s10] sm:$0xff] %v404_v24  ;;  %v411_v31 = vadd.f32 %v785_v13, %v394_v25  ;;  %v388_v32 = vmul.f32 %v782_v8, %v371_v26  ;;  %v378_v33 = vmax.f32 %v347_v27, 0.0  ;;  %v558_v34 = vadd.f32 %v557_v30, %v556_v23 }
  0xfa   : > { %v317_v35 = vadd.f32 %v537_v28, %v779_v63  ;;  %v539_v36 = vpop.f32.mrf.mxu0  ;;  %v559_v37 = vpop.f32.mrf.mxu1 }
  0xfb   : > { %424 = vst [vmem:[%s793_s10 + $0x38] sm:$0xff] %v411_v31  ;;  %v405_v38 = vadd.f32 %v785_v13, %v388_v32  ;;  %v395_v39 = vmul.f32 %v782_v8, %v378_v33  ;;  %v352_v40 = vadd.f32 %v558_v34, %v779_v63  ;;  %v540_v41 = vadd.f32 %v539_v36, %v538_v29 }
  0xfc   : > { %v372_v42 = vmax.f32 %v317_v35, 0.0  ;;  %v541_v43 = vpop.f32.mrf.mxu0  ;;  %v560_v44 = vpop.f32.mrf.mxu1 }
  0xfd   : > { %418 = vst [vmem:[%s793_s10 + $0x8] sm:$0xff] %v405_v38  ;;  %v412_v45 = vadd.f32 %v785_v13, %v395_v39  ;;  %v379_v46 = vmax.f32 %v352_v40, 0.0  ;;  %v322_v47 = vadd.f32 %v540_v41, %v779_v63  ;;  %v561_v48 = vadd.f32 %v560_v44, %v559_v37 }
  0xfe   : > { %v389_v49 = vmul.f32 %v782_v8, %v372_v42  ;;  %v542_v50 = vpop.f32.mrf.mxu0  ;;  %v562_v51 = vpop.f32.mrf.mxu1 }
  0xff   : > { %425 = vst [vmem:[%s793_s10 + $0x40] sm:$0xff] %v412_v45  ;;  %v396_v52 = vmul.f32 %v782_v8, %v379_v46  ;;  %v373_v53 = vmax.f32 %v322_v47, 0.0  ;;  %v357_v54 = vadd.f32 %v561_v48, %v779_v63  ;;  %v543_v55 = vadd.f32 %v542_v50, %v541_v43 }
 0x100   : > { %v406_v56 = vadd.f32 %v785_v13, %v389_v49  ;;  %v544_v57 = vpop.f32.mrf.mxu0  ;;  %v563_v58 = vpop.f32.mrf.mxu1 }
 0x101   : > { %v413_v59 = vadd.f32 %v785_v13, %v396_v52  ;;  %v390_v60 = vmul.f32 %v782_v8, %v373_v53  ;;  %v380_v61 = vmax.f32 %v357_v54, 0.0  ;;  %v327_v62 = vadd.f32 %v543_v55, %v779_v63 }
 0x102   : > { %419 = vst [vmem:[%s793_s10 + $0x10] sm:$0xff] %v406_v56  ;;  %v564_v0 = vadd.f32 %v563_v58, %v562_v51  ;;  %v545_v1 = vpop.f32.mrf.mxu0  ;;  %v565_v2 = vpop.f32.mrf.mxu1 }
 0x103   : > { %426 = vst [vmem:[%s793_s10 + $0x48] sm:$0xff] %v413_v59  ;;  %v407_v3 = vadd.f32 %v785_v13, %v390_v60  ;;  %v397_v4 = vmul.f32 %v782_v8, %v380_v61  ;;  %v374_v5 = vmax.f32 %v327_v62, 0.0  ;;  %v546_v6 = vadd.f32 %v545_v1, %v544_v57 }
 0x104   : > { %v362_v7 = vadd.f32 %v564_v0, %v779_v63  ;;  %v547_v9 = vpop.f32.mrf.mxu0  ;;  %v566_v10 = vpop.f32.mrf.mxu1 }
 0x105   : > { %420 = vst [vmem:[%s793_s10 + $0x18] sm:$0xff] %v407_v3  ;;  %v414_v11 = vadd.f32 %v785_v13, %v397_v4  ;;  %v391_v12 = vmul.f32 %v782_v8, %v374_v5  ;;  %v332_v14 = vadd.f32 %v546_v6, %v779_v63  ;;  %v567_v15 = vadd.f32 %v566_v10, %v565_v2 }
 0x106   : > { %v381_v16 = vmax.f32 %v362_v7, 0.0  ;;  %v548_v17 = vpop.f32.mrf.mxu0 }
 0x107   : > { %427 = vst [vmem:[%s793_s10 + $0x50] sm:$0xff] %v414_v11  ;;  %v408_v18 = vadd.f32 %v785_v13, %v391_v12  ;;  %v375_v19 = vmax.f32 %v332_v14, 0.0  ;;  %v367_v20 = vadd.f32 %v567_v15, %v779_v63  ;;  %v549_v21 = vadd.f32 %v548_v17, %v547_v9 }
 0x108   : > { %v398_v22 = vmul.f32 %v782_v8, %v381_v16 }
 0x109   : > { %421 = vst [vmem:[%s793_s10 + $0x20] sm:$0xff] %v408_v18  ;;  %v392_v23 = vmul.f32 %v782_v8, %v375_v19  ;;  %v382_v24 = vmax.f32 %v367_v20, 0.0  ;;  %v337_v25 = vadd.f32 %v549_v21, %v779_v63 }
 0x10a   : > { %v415_v26 = vadd.f32 %v785_v13, %v398_v22 }
 0x10b   : > { %v409_v27 = vadd.f32 %v785_v13, %v392_v23  ;;  %v399_v28 = vmul.f32 %v782_v8, %v382_v24  ;;  %v376_v29 = vmax.f32 %v337_v25, 0.0 }
 0x10c   : > { %428 = vst [vmem:[%s793_s10 + $0x58] sm:$0xff] %v415_v26 }
 0x10d   : > { %422 = vst [vmem:[%s793_s10 + $0x28] sm:$0xff] %v409_v27  ;;  %v416_v30 = vadd.f32 %v785_v13, %v399_v28  ;;  %v393_v31 = vmul.f32 %v782_v8, %v376_v29 }
 0x10f   : > { %429 = vst [vmem:[%s793_s10 + $0x60] sm:$0xff] %v416_v30  ;;  %v410_v32 = vadd.f32 %v785_v13, %v393_v31 }
 0x111   : > { %423 = vst [vmem:[%s793_s10 + $0x30] sm:$0xff] %v410_v32 }
 0x112 PF: > { %s13_s12 = sadd.s32 1, %s614_s12  }
 0x113   : > { %p10_p4 = scmp.ge.s32.totalorder %s13_s12, 4  }
 0x115   :  { %12 = sbr.rel (!%p10_p4) target bundleno = 1 (0x1), region = 62 }

// kernel: gaze_prediction_forward.11
= control target key start
LH: loop header
LB: loop body
LE: loop exit
PB: predicated region body
PF: predicated region fallthrough
CT: control target
= control target key end

     0   :  { %s1997_s12 = smov 0   ;;  %s3025_s0 = inlined_call_operand.vmem [shape: f32[2,448,128], index: 0, kind: input, shape index: {}]   ;;  %s3026_s1 = inlined_call_operand.vmem [shape: f32[128,16], index: 1, kind: input, shape index: {}]   ;;  %s3027_s2 = inlined_call_operand.vmem [shape: f32[1,16], index: 2, kind: input, shape index: {}]   ;;  %s3028_s3 = inlined_call_operand.vmem [shape: f32[2,448,16], index: 3, kind: output, shape index: {}]  }
   0x1 LB: > { %s1616_s13 = sadd.s32 4294967295, %s1975_s12   ;;  %p1620_p0 = scmp.ge.s32.totalorder %s1975_s12, 1  ;;  %s1975_s12 = sphi %s1997_s12, %s13_s12  }
   0x2   : > { %p137_p1 = scmp.lt.s32.totalorder %s1975_s12, 3 }
   0x4   : > { %p138_p2 = pnand %p1620_p0, %p137_p1 }
   0x6   : > { %141 = sbr.rel (%p138_p2) target bundleno = 834 (0x342), region = 32 }
   0xb   : > { %v242_v0 = vld [vmem:[%s3026_s1 + $0x78] sm:$0xff]  ;;  %v241_v1 = vld [vmem:[%s3026_s1 + $0x70] sm:$0xff]  ;;  %v240_v2 = vld [vmem:[%s3026_s1 + $0x68] sm:$0xff]  ;;  %p161_p3 = scmp.lt.s32.totalorder %s1616_s13, 1  ;;  %vm764_vm0 = vcmask 130048  }
   0xc   : > { %1698 = vmatprep.subr.mxu0 %v242_v0  ;;  %1814 = vmatprep.subr.mxu1 %v242_v0  ;;  %v239_v3 = vld [vmem:[%s3026_s1 + $0x60] sm:$0xff]  ;;  %v238_v4 = vld [vmem:[%s3026_s1 + $0x58] sm:$0xff]  ;;  %v237_v5 = vld [vmem:[%s3026_s1 + $0x50] sm:$0xff] }
   0xd   : > { %1699 = vmatpush3.msra.mxu0 %v242_v0  ;;  %1830 = vmatpush3.msra.mxu1 %v242_v0  ;;  %v236_v6 = vld [vmem:[%s3026_s1 + $0x48] sm:$0xff]  ;;  %v235_v7 = vld [vmem:[%s3026_s1 + $0x40] sm:$0xff]  ;;  %v234_v8 = vld [vmem:[%s3026_s1 + $0x38] sm:$0xff]  ;;  %s3234_s13 = smov (!%p161_p3, %s1616_s13), 1 }
   0xe   : > { %1700 = vmatprep.subr.mxu0 %v241_v1  ;;  %1815 = vmatprep.subr.mxu1 %v241_v1  ;;  %v233_v9 = vld [vmem:[%s3026_s1 + $0x30] sm:$0xff]  ;;  %v232_v10 = vld [vmem:[%s3026_s1 + $0x28] sm:$0xff]  ;;  %v231_v11 = vld [vmem:[%s3026_s1 + $0x20] sm:$0xff]  ;;  %s1846_s15 = smul.u32 448, %s3234_s13 }
   0xf   : > { %1701 = vmatpush3.msra.mxu0 %v241_v1  ;;  %1831 = vmatpush3.msra.mxu1 %v241_v1  ;;  %v230_v12 = vld [vmem:[%s3026_s1 + $0x18] sm:$0xff]  ;;  %v229_v13 = vld [vmem:[%s3026_s1 + $0x10] sm:$0xff]  ;;  %v228_v14 = vld [vmem:[%s3026_s1 + $0x8] sm:$0xff] }
  0x10   : > { %1702 = vmatprep.subr.mxu0 %v240_v2  ;;  %1816 = vmatprep.subr.mxu1 %v240_v2  ;;  %s2062_s22 = scalar_lea.vmem %s3025_s0, %s1846_s15  ;;  %v227_v15 = vld [vmem:[%s3026_s1] sm:$0xff]  ;;  %s2796_s29 = scalar_lea.vmem %s3028_s3, %s1846_s15 }
  0x11   : > { %1703 = vmatpush3.msra.mxu0 %v240_v2  ;;  %1832 = vmatpush3.msra.mxu1 %v240_v2  ;;  %v171_v16 = vld [vmem:[%s2062_s22] sm:$0xff]  ;;  %v172_v18 = vld [vmem:[%s2062_s22 + $0x8] sm:$0xff]  ;;  %v173_v20 = vld [vmem:[%s2062_s22 + $0x10] sm:$0xff] }
  0x12   : > { %1704 = vmatprep.subr.mxu0 %v239_v3  ;;  %1817 = vmatprep.subr.mxu1 %v239_v3  ;;  %v199_v17 = vld [vmem:[%s2062_s22 + $0xe0] sm:$0xff]  ;;  %v200_v19 = vld [vmem:[%s2062_s22 + $0xe8] sm:$0xff]  ;;  %v201_v21 = vld [vmem:[%s2062_s22 + $0xf0] sm:$0xff] }
  0x13   : > { %1705 = vmatpush3.msra.mxu0 %v239_v3  ;;  %1833 = vmatpush3.msra.mxu1 %v239_v3  ;;  %v174_v22 = vld [vmem:[%s2062_s22 + $0x18] sm:$0xff]  ;;  %v175_v24 = vld [vmem:[%s2062_s22 + $0x20] sm:$0xff]  ;;  %v176_v26 = vld [vmem:[%s2062_s22 + $0x28] sm:$0xff] }
  0x14   : > { %1706 = vmatprep.subr.mxu0 %v238_v4  ;;  %1818 = vmatprep.subr.mxu1 %v238_v4  ;;  %v202_v23 = vld [vmem:[%s2062_s22 + $0xf8] sm:$0xff]  ;;  %v203_v25 = vld [vmem:[%s2062_s22 + $0x100] sm:$0xff]  ;;  %v204_v27 = vld [vmem:[%s2062_s22 + $0x108] sm:$0xff] }
  0x15   : > { %1707 = vmatpush3.msra.mxu0 %v238_v4  ;;  %1834 = vmatpush3.msra.mxu1 %v238_v4  ;;  %v177_v28 = vld [vmem:[%s2062_s22 + $0x30] sm:$0xff]  ;;  %v178_v30 = vld [vmem:[%s2062_s22 + $0x38] sm:$0xff]  ;;  %v179_v32 = vld [vmem:[%s2062_s22 + $0x40] sm:$0xff] }
  0x16   : > { %1708 = vmatprep.subr.mxu0 %v237_v5  ;;  %1819 = vmatprep.subr.mxu1 %v237_v5  ;;  %v205_v29 = vld [vmem:[%s2062_s22 + $0x110] sm:$0xff]  ;;  %v206_v31 = vld [vmem:[%s2062_s22 + $0x118] sm:$0xff]  ;;  %v207_v33 = vld [vmem:[%s2062_s22 + $0x120] sm:$0xff] }
  0x17   : > { %1709 = vmatpush3.msra.mxu0 %v237_v5  ;;  %1835 = vmatpush3.msra.mxu1 %v237_v5  ;;  %v180_v34 = vld [vmem:[%s2062_s22 + $0x48] sm:$0xff]  ;;  %v181_v36 = vld [vmem:[%s2062_s22 + $0x50] sm:$0xff]  ;;  %v182_v38 = vld [vmem:[%s2062_s22 + $0x58] sm:$0xff] }
  0x18   : > { %1710 = vmatprep.subr.mxu0 %v236_v6  ;;  %1820 = vmatprep.subr.mxu1 %v236_v6  ;;  %v208_v35 = vld [vmem:[%s2062_s22 + $0x128] sm:$0xff]  ;;  %v209_v37 = vld [vmem:[%s2062_s22 + $0x130] sm:$0xff]  ;;  %v210_v39 = vld [vmem:[%s2062_s22 + $0x138] sm:$0xff] }
  0x19   : > { %1711 = vmatpush3.msra.mxu0 %v236_v6  ;;  %1836 = vmatpush3.msra.mxu1 %v236_v6  ;;  %v183_v40 = vld [vmem:[%s2062_s22 + $0x60] sm:$0xff]  ;;  %v184_v42 = vld [vmem:[%s2062_s22 + $0x68] sm:$0xff]  ;;  %v185_v44 = vld [vmem:[%s2062_s22 + $0x70] sm:$0xff] }
  0x1a   : > { %1712 = vmatprep.subr.mxu0 %v235_v7  ;;  %1821 = vmatprep.subr.mxu1 %v235_v7  ;;  %v211_v41 = vld [vmem:[%s2062_s22 + $0x140] sm:$0xff]  ;;  %v212_v43 = vld [vmem:[%s2062_s22 + $0x148] sm:$0xff]  ;;  %v213_v45 = vld [vmem:[%s2062_s22 + $0x150] sm:$0xff] }
  0x1b   : > { %1713 = vmatpush3.msra.mxu0 %v235_v7  ;;  %1837 = vmatpush3.msra.mxu1 %v235_v7  ;;  %v186_v46 = vld [vmem:[%s2062_s22 + $0x78] sm:$0xff]  ;;  %v187_v48 = vld [vmem:[%s2062_s22 + $0x80] sm:$0xff]  ;;  %v188_v50 = vld [vmem:[%s2062_s22 + $0x88] sm:$0xff] }
  0x1c   : > { %1714 = vmatprep.subr.mxu0 %v234_v8  ;;  %1822 = vmatprep.subr.mxu1 %v234_v8  ;;  %v214_v47 = vld [vmem:[%s2062_s22 + $0x158] sm:$0xff]  ;;  %v215_v49 = vld [vmem:[%s2062_s22 + $0x160] sm:$0xff]  ;;  %v216_v51 = vld [vmem:[%s2062_s22 + $0x168] sm:$0xff] }
  0x1d   : > { %1715 = vmatpush3.msra.mxu0 %v234_v8  ;;  %1838 = vmatpush3.msra.mxu1 %v234_v8  ;;  %v189_v52 = vld [vmem:[%s2062_s22 + $0x90] sm:$0xff]  ;;  %v190_v54 = vld [vmem:[%s2062_s22 + $0x98] sm:$0xff]  ;;  %v191_v56 = vld [vmem:[%s2062_s22 + $0xa0] sm:$0xff] }
  0x1e   : > { %1716 = vmatprep.subr.mxu0 %v233_v9  ;;  %1823 = vmatprep.subr.mxu1 %v233_v9  ;;  %v217_v53 = vld [vmem:[%s2062_s22 + $0x170] sm:$0xff]  ;;  %v218_v55 = vld [vmem:[%s2062_s22 + $0x178] sm:$0xff]  ;;  %v219_v57 = vld [vmem:[%s2062_s22 + $0x180] sm:$0xff] }
  0x1f   : > { %1717 = vmatpush3.msra.mxu0 %v233_v9  ;;  %1839 = vmatpush3.msra.mxu1 %v233_v9  ;;  %v192_v58 = vld [vmem:[%s2062_s22 + $0xa8] sm:$0xff]  ;;  %v193_v60 = vld [vmem:[%s2062_s22 + $0xb0] sm:$0xff]  ;;  %v194_v62 = vld [vmem:[%s2062_s22 + $0xb8] sm:$0xff] }
  0x20   : > { %1718 = vmatprep.subr.mxu0 %v232_v10  ;;  %1824 = vmatprep.subr.mxu1 %v232_v10  ;;  %v220_v59 = vld [vmem:[%s2062_s22 + $0x188] sm:$0xff]  ;;  %v221_v61 = vld [vmem:[%s2062_s22 + $0x190] sm:$0xff]  ;;  %v222_v63 = vld [vmem:[%s2062_s22 + $0x198] sm:$0xff] }
  0x21   : > { %1719 = vmatpush3.msra.mxu0 %v232_v10  ;;  %1840 = vmatpush3.msra.mxu1 %v232_v10  ;;  %v195_v0 = vld [vmem:[%s2062_s22 + $0xc0] sm:$0xff]  ;;  %v196_v2 = vld [vmem:[%s2062_s22 + $0xc8] sm:$0xff]  ;;  %v197_v4 = vld [vmem:[%s2062_s22 + $0xd0] sm:$0xff] }
  0x22   : > { %1720 = vmatprep.subr.mxu0 %v231_v11  ;;  %1825 = vmatprep.subr.mxu1 %v231_v11  ;;  %v223_v1 = vld [vmem:[%s2062_s22 + $0x1a0] sm:$0xff]  ;;  %v224_v3 = vld [vmem:[%s2062_s22 + $0x1a8] sm:$0xff]  ;;  %v225_v5 = vld [vmem:[%s2062_s22 + $0x1b0] sm:$0xff] }
  0x23   : > { %1721 = vmatpush3.msra.mxu0 %v231_v11  ;;  %1841 = vmatpush3.msra.mxu1 %v231_v11  ;;  %v198_v6 = vld [vmem:[%s2062_s22 + $0xd8] sm:$0xff]  ;;  %v2126_v8 = vld [vmem:[%s3027_s2] ss:$0 sm:$0xff] }
  0x24   : > { %1722 = vmatprep.subr.mxu0 %v230_v12  ;;  %1826 = vmatprep.subr.mxu1 %v230_v12  ;;  %v226_v7 = vld [vmem:[%s2062_s22 + $0x1b8] sm:$0xff] }
  0x25   : > { %1723 = vmatpush3.msra.mxu0 %v230_v12  ;;  %1842 = vmatpush3.msra.mxu1 %v230_v12 }
  0x26   : > { %1724 = vmatprep.subr.mxu0 %v229_v13  ;;  %1827 = vmatprep.subr.mxu1 %v229_v13 }
  0x27   : > { %1725 = vmatpush3.msra.mxu0 %v229_v13  ;;  %1843 = vmatpush3.msra.mxu1 %v229_v13 }
  0x28   : > { %1726 = vmatprep.subr.mxu0 %v228_v14  ;;  %1828 = vmatprep.subr.mxu1 %v228_v14 }
  0x29   : > { %1727 = vmatpush3.msra.mxu0 %v228_v14  ;;  %1844 = vmatpush3.msra.mxu1 %v228_v14 }
  0x2a   : > { %1728 = vmatprep.subr.mxu0 %v227_v15  ;;  %1829 = vmatprep.subr.mxu1 %v227_v15 }
  0x2b   : > { %1729 = vmatpush3.msra.mxu0 %v227_v15  ;;  %1845 = vmatpush3.msra.mxu1 %v227_v15 }
  0x2c   : > { %1730 = vmatprep.mubr.f32.mxu0 %v171_v16  ;;  %1772 = vmatprep.mubr.f32.mxu1 %v199_v17 }
  0x2d   : > { %1731 = vmatmul.mubr.f32.vlgmr.msra.gmra.mxu0 %v172_v18  ;;  %1773 = vmatmul.mubr.f32.vlgmr.msra.gmra.mxu1 %v200_v19 }
  0x2e   : > { %1733 = vmatprep.mubr.f32.mxu0 %v173_v20  ;;  %1775 = vmatprep.mubr.f32.mxu1 %v201_v21 }
  0x31   : > { %1734 = vmatmul.mubr.f32.gmra.mxu0 %v174_v22  ;;  %1776 = vmatmul.mubr.f32.gmra.mxu1 %v202_v23 }
  0x32   : > { %1736 = vmatprep.mubr.f32.mxu0 %v175_v24  ;;  %1778 = vmatprep.mubr.f32.mxu1 %v203_v25 }
  0x35   : > { %1737 = vmatmul.mubr.f32.gmra.mxu0 %v176_v26  ;;  %1779 = vmatmul.mubr.f32.gmra.mxu1 %v204_v27 }
  0x36   : > { %1739 = vmatprep.mubr.f32.mxu0 %v177_v28  ;;  %1781 = vmatprep.mubr.f32.mxu1 %v205_v29 }
  0x39   : > { %1740 = vmatmul.mubr.f32.gmra.mxu0 %v178_v30  ;;  %1782 = vmatmul.mubr.f32.gmra.mxu1 %v206_v31 }
  0x3a   : > { %1742 = vmatprep.mubr.f32.mxu0 %v179_v32  ;;  %1784 = vmatprep.mubr.f32.mxu1 %v207_v33 }
  0x3d   : > { %1743 = vmatmul.mubr.f32.gmra.mxu0 %v180_v34  ;;  %1785 = vmatmul.mubr.f32.gmra.mxu1 %v208_v35 }
  0x3e   : > { %1745 = vmatprep.mubr.f32.mxu0 %v181_v36  ;;  %1787 = vmatprep.mubr.f32.mxu1 %v209_v37 }
  0x41   : > { %1746 = vmatmul.mubr.f32.gmra.mxu0 %v182_v38  ;;  %1788 = vmatmul.mubr.f32.gmra.mxu1 %v210_v39 }
  0x42   : > { %1748 = vmatprep.mubr.f32.mxu0 %v183_v40  ;;  %1790 = vmatprep.mubr.f32.mxu1 %v211_v41 }
  0x45   : > { %1749 = vmatmul.mubr.f32.gmra.mxu0 %v184_v42  ;;  %1791 = vmatmul.mubr.f32.gmra.mxu1 %v212_v43 }
  0x46   : > { %1751 = vmatprep.mubr.f32.mxu0 %v185_v44  ;;  %1793 = vmatprep.mubr.f32.mxu1 %v213_v45 }
  0x49   : > { %1752 = vmatmul.mubr.f32.gmra.mxu0 %v186_v46  ;;  %1794 = vmatmul.mubr.f32.gmra.mxu1 %v214_v47 }
  0x4a   : > { %1754 = vmatprep.mubr.f32.mxu0 %v187_v48  ;;  %1796 = vmatprep.mubr.f32.mxu1 %v215_v49 }
  0x4d   : > { %1755 = vmatmul.mubr.f32.gmra.mxu0 %v188_v50  ;;  %1797 = vmatmul.mubr.f32.gmra.mxu1 %v216_v51 }
  0x4e   : > { %1757 = vmatprep.mubr.f32.mxu0 %v189_v52  ;;  %1799 = vmatprep.mubr.f32.mxu1 %v217_v53 }
  0x51   : > { %1758 = vmatmul.mubr.f32.gmra.mxu0 %v190_v54  ;;  %1800 = vmatmul.mubr.f32.gmra.mxu1 %v218_v55 }
  0x52   : > { %1760 = vmatprep.mubr.f32.mxu0 %v191_v56  ;;  %1802 = vmatprep.mubr.f32.mxu1 %v219_v57 }
  0x55   : > { %1761 = vmatmul.mubr.f32.gmra.mxu0 %v192_v58  ;;  %1803 = vmatmul.mubr.f32.gmra.mxu1 %v220_v59 }
  0x56   : > { %1763 = vmatprep.mubr.f32.mxu0 %v193_v60  ;;  %1805 = vmatprep.mubr.f32.mxu1 %v221_v61 }
  0x59   : > { %1764 = vmatmul.mubr.f32.gmra.mxu0 %v194_v62  ;;  %1806 = vmatmul.mubr.f32.gmra.mxu1 %v222_v63 }
  0x5a   : > { %1766 = vmatprep.mubr.f32.mxu0 %v195_v0  ;;  %1808 = vmatprep.mubr.f32.mxu1 %v223_v1 }
  0x5d   : > { %1767 = vmatmul.mubr.f32.gmra.mxu0 %v196_v2  ;;  %1809 = vmatmul.mubr.f32.gmra.mxu1 %v224_v3 }
  0x5e   : > { %1769 = vmatprep.mubr.f32.mxu0 %v197_v4  ;;  %1811 = vmatprep.mubr.f32.mxu1 %v225_v5 }
  0x61   : > { %1770 = vmatmul.mubr.f32.gmra.mxu0 %v198_v6  ;;  %1812 = vmatmul.mubr.f32.gmra.mxu1 %v226_v7 }
  0xed   : > { %v1732_v9 = vpop.f32.mrf.mxu0  ;;  %v1774_v10 = vpop.f32.mrf.mxu1 }
  0xee   : > { %v2129_v11 = vadd.f32 %v1732_v9, %v2126_v8  ;;  %v2132_v12 = vadd.f32 %v1774_v10, %v2126_v8 }
  0xef   : > { %v316_v13 = vpop.f32.mrf.mxu0  ;;  %v456_v14 = vpop.f32.mrf.mxu1 }
  0xf0   : > { %3097 = vst [vmem:[#allocation2_spill] sm:$0xff] %v2132_v12  ;;  %v2135_v15 = vadd.f32 %v2126_v8, %v316_v13  ;;  %v852_v16 = vsel %vm764_vm0, %v2132_v12, -inf  ;;  %v768_v17 = vsel %vm764_vm0, %v2129_v11, -inf  ;;  %v2148_v23 = vadd.f32 %v2126_v8, %v456_v14 }
  0xf1   : > { %853 = vmax.xlane.f32.xlu1 %v852_v16  ;;  %769 = vmax.xlane.f32.xlu0 %v768_v17  ;;  %v1735_v18 = vpop.f32.mrf.mxu0  ;;  %v1777_v19 = vpop.f32.mrf.mxu1 }
  0xf2   : > { %v2142_v20 = vadd.f32 %v1735_v18, %v2126_v8  ;;  %v2145_v21 = vadd.f32 %v1777_v19, %v2126_v8  ;;  %3099 = vst [vmem:[#allocation4_spill] sm:$0xff] %v2148_v23  ;;  %v765_v25 = vsel %vm764_vm0, %v2135_v15, -inf  ;;  %v849_v31 = vsel %vm764_vm0, %v2148_v23, -inf }
  0xf3   : > { %v326_v22 = vpop.f32.mrf.mxu0  ;;  %v466_v26 = vpop.f32.mrf.mxu1 }
  0xf4   : > { %3098 = vst [vmem:[#allocation3_spill] sm:$0xff] %v2145_v21  ;;  %v774_v24 = vsel %vm764_vm0, %v2142_v20, -inf  ;;  %v858_v28 = vsel %vm764_vm0, %v2145_v21, -inf  ;;  %v2157_v29 = vadd.f32 %v2126_v8, %v326_v22  ;;  %v2160_v30 = vadd.f32 %v2126_v8, %v466_v26 }
  0xf5   : > { %775 = vmax.xlane.f32.xlu1 %v774_v24  ;;  %766 = vmax.xlane.f32.xlu0 %v765_v25  ;;  %v1738_v27 = vpop.f32.mrf.mxu0  ;;  %v1780_v33 = vpop.f32.mrf.mxu1 }
  0xf6   : > { %3100 = vst [vmem:[#allocation5_spill] sm:$0xff] %v2160_v30  ;;  %v2165_v34 = vadd.f32 %v1738_v27, %v2126_v8  ;;  %v771_v36 = vsel %vm764_vm0, %v2157_v29, -inf  ;;  %v855_v37 = vsel %vm764_vm0, %v2160_v30, -inf  ;;  %v2175_v40 = vadd.f32 %v1780_v33, %v2126_v8 }
  0xf7   : > { %v336_v32 = vpop.f32.mrf.mxu0  ;;  %v476_v38 = vpop.f32.mrf.mxu1 }
  0xf8   : > { %3101 = vst [vmem:[#allocation6_spill] sm:$0xff] %v2165_v34  ;;  %v2168_v35 = vadd.f32 %v2126_v8, %v336_v32  ;;  %3103 = vst [vmem:[#allocation8_spill] sm:$0xff] %v2175_v40  ;;  %v2178_v41 = vadd.f32 %v2126_v8, %v476_v38  ;;  %v780_v42 = vsel %vm764_vm0, %v2165_v34, -inf  ;;  %v864_v48 = vsel %vm764_vm0, %v2175_v40, -inf }
  0xf9   : > { %859 = vmax.xlane.f32.xlu1 %v858_v28  ;;  %850 = vmax.xlane.f32.xlu0 %v849_v31  ;;  %v1741_v39 = vpop.f32.mrf.mxu0  ;;  %v1783_v45 = vpop.f32.mrf.mxu1 }
  0xfa   : > { %3102 = vst [vmem:[#allocation7_spill] sm:$0xff] %v2168_v35  ;;  %3104 = vst [vmem:[#allocation9_spill] sm:$0xff] %v2178_v41  ;;  %v777_v43 = vsel %vm764_vm0, %v2168_v35, -inf  ;;  %v2185_v46 = vadd.f32 %v1741_v39, %v2126_v8  ;;  %v861_v49 = vsel %vm764_vm0, %v2178_v41, -inf  ;;  %v2195_v52 = vadd.f32 %v1783_v45, %v2126_v8 }
  0xfb   : > { %v346_v44 = vpop.f32.mrf.mxu0  ;;  %v486_v50 = vpop.f32.mrf.mxu1 }
  0xfc   : > { %3105 = vst [vmem:[#allocation10_spill] sm:$0xff] %v2185_v46  ;;  %v2188_v47 = vadd.f32 %v2126_v8, %v346_v44  ;;  %3107 = vst [vmem:[#allocation12_spill] sm:$0xff] %v2195_v52  ;;  %v2198_v53 = vadd.f32 %v2126_v8, %v486_v50  ;;  %v786_v54 = vsel %vm764_vm0, %v2185_v46, -inf  ;;  %v870_v61 = vsel %vm764_vm0, %v2195_v52, -inf }
  0xfd   : > { %772 = vmax.xlane.f32.xlu1 %v771_v36  ;;  %856 = vmax.xlane.f32.xlu0 %v855_v37  ;;  %v1744_v51 = vpop.f32.mrf.mxu0  ;;  %v1786_v57 = vpop.f32.mrf.mxu1 }
  0xfe   : > { %3106 = vst [vmem:[#allocation11_spill] sm:$0xff] %v2188_v47  ;;  %3108 = vst [vmem:[#allocation13_spill] sm:$0xff] %v2198_v53  ;;  %v783_v55 = vsel %vm764_vm0, %v2188_v47, -inf  ;;  %v2205_v59 = vadd.f32 %v1744_v51, %v2126_v8  ;;  %v867_v62 = vsel %vm764_vm0, %v2198_v53, -inf  ;;  %v2215_v1 = vadd.f32 %v1786_v57, %v2126_v8 }
  0xff   : > { %v356_v56 = vpop.f32.mrf.mxu0  ;;  %v496_v63 = vpop.f32.mrf.mxu1 }
 0x100   : > { %3109 = vst [vmem:[#allocation14_spill] sm:$0xff] %v2205_v59  ;;  %v2208_v60 = vadd.f32 %v2126_v8, %v356_v56  ;;  %3111 = vst [vmem:[#allocation16_spill] sm:$0xff] %v2215_v1  ;;  %v2218_v2 = vadd.f32 %v2126_v8, %v496_v63  ;;  %v792_v3 = vsel %vm764_vm0, %v2205_v59, -inf  ;;  %v876_v10 = vsel %vm764_vm0, %v2215_v1, -inf }
 0x101   : > { %781 = vmax.xlane.f32.xlu1 %v780_v42  ;;  %778 = vmax.xlane.f32.xlu0 %v777_v43  ;;  %v1747_v58 = vpop.f32.mrf.mxu0  ;;  %v1789_v5 = vpop.f32.mrf.mxu1 }
 0x102   : > { %3110 = vst [vmem:[#allocation15_spill] sm:$0xff] %v2208_v60  ;;  %3112 = vst [vmem:[#allocation17_spill] sm:$0xff] %v2218_v2  ;;  %v789_v4 = vsel %vm764_vm0, %v2208_v60, -inf  ;;  %v2225_v7 = vadd.f32 %v1747_v58, %v2126_v8  ;;  %v873_v13 = vsel %vm764_vm0, %v2218_v2, -inf  ;;  %v2235_v18 = vadd.f32 %v1789_v5, %v2126_v8 }
 0x103   : > { %v366_v0 = vpop.f32.mrf.mxu0  ;;  %v506_v14 = vpop.f32.mrf.mxu1 }
 0x104   : > { %3113 = vst [vmem:[#allocation18_spill] sm:$0xff] %v2225_v7  ;;  %v2228_v9 = vadd.f32 %v2126_v8, %v366_v0  ;;  %3115 = vst [vmem:[#allocation20_spill] sm:$0xff] %v2235_v18  ;;  %v2238_v19 = vadd.f32 %v2126_v8, %v506_v14  ;;  %v798_v22 = vsel %vm764_vm0, %v2225_v7, -inf  ;;  %v882_v31 = vsel %vm764_vm0, %v2235_v18, -inf }
 0x105   : > { %865 = vmax.xlane.f32.xlu1 %v864_v48  ;;  %862 = vmax.xlane.f32.xlu0 %v861_v49  ;;  %v1750_v6 = vpop.f32.mrf.mxu0  ;;  %v1792_v25 = vpop.f32.mrf.mxu1 }
 0x106   : > { %3114 = vst [vmem:[#allocation19_spill] sm:$0xff] %v2228_v9  ;;  %3116 = vst [vmem:[#allocation21_spill] sm:$0xff] %v2238_v19  ;;  %v795_v24 = vsel %vm764_vm0, %v2228_v9, -inf  ;;  %v2245_v27 = vadd.f32 %v1750_v6, %v2126_v8  ;;  %v879_v32 = vsel %vm764_vm0, %v2238_v19, -inf  ;;  %v2255_v37 = vadd.f32 %v1792_v25, %v2126_v8 }
 0x107   : > { %v376_v16 = vpop.f32.mrf.mxu0  ;;  %v516_v33 = vpop.f32.mrf.mxu1 }
 0x108   : > { %3117 = vst [vmem:[#allocation22_spill] sm:$0xff] %v2245_v27  ;;  %v2248_v28 = vadd.f32 %v2126_v8, %v376_v16  ;;  %3119 = vst [vmem:[#allocation24_spill] sm:$0xff] %v2255_v37  ;;  %v2258_v38 = vadd.f32 %v2126_v8, %v516_v33  ;;  %v804_v39 = vsel %vm764_vm0, %v2245_v27, -inf  ;;  %v888_v50 = vsel %vm764_vm0, %v2255_v37, -inf }
 0x109   : > { %787 = vmax.xlane.f32.xlu1 %v786_v54  ;;  %784 = vmax.xlane.f32.xlu0 %v783_v55  ;;  %v1753_v17 = vpop.f32.mrf.mxu0  ;;  %v1795_v43 = vpop.f32.mrf.mxu1 }
 0x10a   : > { %3118 = vst [vmem:[#allocation23_spill] sm:$0xff] %v2248_v28  ;;  %3120 = vst [vmem:[#allocation25_spill] sm:$0xff] %v2258_v38  ;;  %v801_v42 = vsel %vm764_vm0, %v2248_v28, -inf  ;;  %v2265_v48 = vadd.f32 %v1753_v17, %v2126_v8  ;;  %v885_v51 = vsel %vm764_vm0, %v2258_v38, -inf  ;;  %v2275_v56 = vadd.f32 %v1795_v43, %v2126_v8 }
 0x10b   : > { %v386_v26 = vpop.f32.mrf.mxu0  ;;  %v526_v54 = vpop.f32.mrf.mxu1 }
 0x10c   : > { %3121 = vst [vmem:[#allocation26_spill] sm:$0xff] %v2265_v48  ;;  %v2268_v49 = vadd.f32 %v2126_v8, %v386_v26  ;;  %3123 = vst [vmem:[#allocation28_spill] sm:$0xff] %v2275_v56  ;;  %v2278_v57 = vadd.f32 %v2126_v8, %v526_v54  ;;  %v810_v58 = vsel %vm764_vm0, %v2265_v48, -inf }
 0x10d   : > { %871 = vmax.xlane.f32.xlu1 %v870_v61  ;;  %868 = vmax.xlane.f32.xlu0 %v867_v62  ;;  %v1756_v36 = vpop.f32.mrf.mxu0  ;;  %v1798_v62 = vpop.f32.mrf.mxu1 }
 0x10e   : > { %3122 = vst [vmem:[#allocation27_spill] sm:$0xff] %v2268_v49  ;;  %3124 = vst [vmem:[#allocation29_spill] sm:$0xff] %v2278_v57  ;;  %v807_v61 = vsel %vm764_vm0, %v2268_v49, -inf  ;;  %v2285_v0 = vadd.f32 %v1756_v36, %v2126_v8  ;;  %v891_v5 = vsel %vm764_vm0, %v2278_v57, -inf }
 0x10f   : > { %v396_v44 = vpop.f32.mrf.mxu0  ;;  %v536_v6 = vpop.f32.mrf.mxu1 }
 0x110   : > { %3125 = vst [vmem:[#allocation30_spill] sm:$0xff] %v2285_v0  ;;  %v2298_v14 = vadd.f32 %v2126_v8, %v536_v6  ;;  %v816_v16 = vsel %vm764_vm0, %v2285_v0, -inf }
 0x111   : > { %793 = vmax.xlane.f32.xlu1 %v792_v3  ;;  %790 = vmax.xlane.f32.xlu0 %v789_v4  ;;  %v1759_v45 = vpop.f32.mrf.mxu0  ;;  %v2288_v3 = vadd.f32 %v2126_v8, %v396_v44  ;;  %v894_v4 = vsel %vm764_vm0, %v2275_v56, -inf }
 0x112   : > { %3128 = vst [vmem:[#allocation33_spill] sm:$0xff] %v2298_v14  ;;  %v2305_v25 = vadd.f32 %v1759_v45, %v2126_v8 }
 0x113   : > { %v406_v55 = vpop.f32.mrf.mxu0  ;;  %3126 = vst [vmem:[#allocation31_spill] sm:$0xff] %v2288_v3  ;;  %v813_v17 = vsel %vm764_vm0, %v2288_v3, -inf }
 0x114   : > { %3129 = vst [vmem:[#allocation34_spill] sm:$0xff] %v2305_v25  ;;  %v2308_v26 = vadd.f32 %v2126_v8, %v406_v55  ;;  %v822_v43 = vsel %vm764_vm0, %v2305_v25, -inf }
 0x115   : > { %877 = vmax.xlane.f32.xlu1 %v876_v10  ;;  %874 = vmax.xlane.f32.xlu0 %v873_v13  ;;  %v1762_v63 = vpop.f32.mrf.mxu0  ;;  %v2295_v13 = vadd.f32 %v1798_v62, %v2126_v8 }
 0x116   : > { %3130 = vst [vmem:[#allocation35_spill] sm:$0xff] %v2308_v26  ;;  %v819_v44 = vsel %vm764_vm0, %v2308_v26, -inf }
 0x117   : > { %v416_v10 = vpop.f32.mrf.mxu0  ;;  %3127 = vst [vmem:[#allocation32_spill] sm:$0xff] %v2295_v13 }
 0x118   : > { %v2328_v54 = vadd.f32 %v2126_v8, %v416_v10 }
 0x119   : > { %799 = vmax.xlane.f32.xlu1 %v798_v22  ;;  %796 = vmax.xlane.f32.xlu0 %v795_v24  ;;  %v1801_v22 = vpop.f32.mrf.mxu1  ;;  %v1765_v24 = vpop.f32.mrf.mxu0 }
 0x11a   : > { %3134 = vst [vmem:[#allocation39_spill] sm:$0xff] %v2328_v54  ;;  %v825_v6 = vsel %vm764_vm0, %v2328_v54, -inf }
 0x11b   : > { %v546_v33 = vpop.f32.mrf.mxu1  ;;  %v426_v36 = vpop.f32.mrf.mxu0 }
 0x11d   : > { %883 = vmax.xlane.f32.xlu1 %v882_v31  ;;  %880 = vmax.xlane.f32.xlu0 %v879_v32  ;;  %v900_v31 = vsel %vm764_vm0, %v2295_v13, -inf  ;;  %v897_v32 = vsel %vm764_vm0, %v2298_v14, -inf  ;;  %v1768_v45 = vpop.f32.mrf.mxu0 }
 0x121   : > { %805 = vmax.xlane.f32.xlu1 %v804_v39  ;;  %802 = vmax.xlane.f32.xlu0 %v801_v42  ;;  %v2315_v39 = vadd.f32 %v1801_v22, %v2126_v8  ;;  %v2318_v42 = vadd.f32 %v2126_v8, %v546_v33 }
 0x123   : > { %3131 = vst [vmem:[#allocation36_spill] sm:$0xff] %v2315_v39  ;;  %3132 = vst [vmem:[#allocation37_spill] sm:$0xff] %v2318_v42  ;;  %v906_v55 = vsel %vm764_vm0, %v2315_v39, -inf }
 0x125   : > { %889 = vmax.xlane.f32.xlu1 %v888_v50  ;;  %886 = vmax.xlane.f32.xlu0 %v885_v51  ;;  %v1804_v50 = vpop.f32.mrf.mxu1  ;;  %v2325_v51 = vadd.f32 %v1762_v63, %v2126_v8 }
 0x127   : > { %3133 = vst [vmem:[#allocation38_spill] sm:$0xff] %v2325_v51  ;;  %v556_v62 = vpop.f32.mrf.mxu1  ;;  %v828_v63 = vsel %vm764_vm0, %v2325_v51, -inf }
 0x129   : > { %811 = vmax.xlane.f32.xlu1 %v810_v58  ;;  %808 = vmax.xlane.f32.xlu0 %v807_v61  ;;  %v903_v58 = vsel %vm764_vm0, %v2318_v42, -inf  ;;  %v436_v61 = vpop.f32.mrf.mxu0 }
 0x12a   : > { %v2348_v22 = vadd.f32 %v2126_v8, %v436_v61 }
 0x12b   : > { %v1771_v10 = vpop.f32.mrf.mxu0 }
 0x12c   : > { %3138 = vst [vmem:[#allocation43_spill] sm:$0xff] %v2348_v22 }
 0x12d   : > { %895 = vmax.xlane.f32.xlu1 %v894_v4  ;;  %892 = vmax.xlane.f32.xlu0 %v891_v5  ;;  %v2335_v4 = vadd.f32 %v1765_v24, %v2126_v8  ;;  %v2338_v5 = vadd.f32 %v2126_v8, %v426_v36  ;;  %v595_v36 = vlaneseq }
 0x12f   : > { %3135 = vst [vmem:[#allocation40_spill] sm:$0xff] %v2335_v4  ;;  %3136 = vst [vmem:[#allocation41_spill] sm:$0xff] %v2338_v5  ;;  %v834_v24 = vsel %vm764_vm0, %v2335_v4, -inf  ;;  %v596_v61 = vshrl.u32 %v595_v36, 7 }
 0x131   : > { %817 = vmax.xlane.f32.xlu1 %v816_v16  ;;  %814 = vmax.xlane.f32.xlu0 %v813_v17  ;;  %v1807_v16 = vpop.f32.mrf.mxu1  ;;  %v2345_v17 = vadd.f32 %v1768_v45, %v2126_v8 }
 0x133   : > { %3137 = vst [vmem:[#allocation42_spill] sm:$0xff] %v2345_v17  ;;  %v566_v33 = vpop.f32.mrf.mxu1  ;;  %v840_v45 = vsel %vm764_vm0, %v2345_v17, -inf }
 0x135   : > { %901 = vmax.xlane.f32.xlu1 %v900_v31  ;;  %898 = vmax.xlane.f32.xlu0 %v897_v32  ;;  %v831_v31 = vsel %vm764_vm0, %v2338_v5, -inf  ;;  %v446_v32 = vpop.f32.mrf.mxu0 }
 0x139   : > { %823 = vmax.xlane.f32.xlu1 %v822_v43  ;;  %820 = vmax.xlane.f32.xlu0 %v819_v44  ;;  %v2355_v43 = vadd.f32 %v1771_v10, %v2126_v8  ;;  %v2358_v44 = vadd.f32 %v2126_v8, %v446_v32  ;;  %v2374_v32 = vadd.s32 440, %v596_v61 }
 0x13b   : > { %3139 = vst [vmem:[#allocation44_spill] sm:$0xff] %v2355_v43  ;;  %3140 = vst [vmem:[#allocation45_spill] sm:$0xff] %v2358_v44  ;;  %v846_v10 = vsel %vm764_vm0, %v2355_v43, -inf  ;;  %vm707_vm1 = vcmp.lt.s32.totalorder %v2374_v32, 441 }
 0x13c   : > { %3143 = vst [vmem:[#allocation48_spill] sm:$0xff] %v2374_v32 }
 0x13d   : > { %907 = vmax.xlane.f32.xlu1 %v906_v55  ;;  %904 = vmax.xlane.f32.xlu0 %v903_v58  ;;  %v837_v55 = vsel %vm764_vm0, %v2348_v22, -inf  ;;  %v1810_v58 = vpop.f32.mrf.mxu1 }
 0x141   : > { %829 = vmax.xlane.f32.xlu1 %v828_v63  ;;  %826 = vmax.xlane.f32.xlu0 %v825_v6  ;;  %v2365_v63 = vadd.f32 %v1804_v50, %v2126_v8  ;;  %v2368_v6 = vadd.f32 %v2126_v8, %v556_v62  ;;  %v2380_v50 = vadd.f32 %v2126_v8, %v566_v33 }
 0x143   : > { %3141 = vst [vmem:[#allocation46_spill] sm:$0xff] %v2365_v63  ;;  %3142 = vst [vmem:[#allocation47_spill] sm:$0xff] %v2368_v6  ;;  %v912_v62 = vsel %vm764_vm0, %v2365_v63, -inf  ;;  %v909_v36 = vsel %vm764_vm0, %v2368_v6, -inf }
 0x144   : > { %3145 = vst [vmem:[#allocation50_spill] sm:$0xff] %v2380_v50 }
 0x145   : > { %835 = vmax.xlane.f32.xlu1 %v834_v24  ;;  %832 = vmax.xlane.f32.xlu0 %v831_v31  ;;  %v843_v24 = vsel %vm764_vm0, %v2358_v44, -inf  ;;  %v576_v31 = vpop.f32.mrf.mxu1 }
 0x146   : > { %v2394_v33 = vadd.f32 %v2126_v8, %v576_v31 }
 0x148   : > { %3148 = vst [vmem:[#allocation53_spill] sm:$0xff] %v2394_v33  ;;  %v921_v31 = vsel %vm764_vm0, %v2394_v33, -inf }
 0x149   : > { %841 = vmax.xlane.f32.xlu1 %v840_v45  ;;  %838 = vmax.xlane.f32.xlu0 %v837_v55  ;;  %v2377_v45 = vadd.f32 %v1807_v16, %v2126_v8  ;;  %v1813_v55 = vpop.f32.mrf.mxu1  ;;  %v2391_v16 = vadd.f32 %v1810_v58, %v2126_v8 }
 0x14b   : > { %3144 = vst [vmem:[#allocation49_spill] sm:$0xff] %v2377_v45  ;;  %3147 = vst [vmem:[#allocation52_spill] sm:$0xff] %v2391_v16  ;;  %v918_v61 = vsel %vm764_vm0, %v2377_v45, -inf  ;;  %v924_v58 = vsel %vm764_vm0, %v2391_v16, -inf }
 0x14d   : > { %847 = vmax.xlane.f32.xlu1 %v846_v10  ;;  %844 = vmax.xlane.f32.xlu0 %v843_v24  ;;  %v2387_v10 = vadd.f32 %v1813_v55, %v2126_v8  ;;  %v915_v24 = vsel %vm764_vm0, %v2380_v50, -inf }
 0x14f   : > { %3146 = vst [vmem:[#allocation51_spill] sm:$0xff] %v2387_v10 }
 0x151   : > { %913 = vmax.xlane.f32.xlu1 %v912_v62  ;;  %910 = vmax.xlane.f32.xlu0 %v909_v36  ;;  %v586_v62 = vpop.f32.mrf.mxu1  ;;  %v763_v36 = vsel %vm707_vm1, %v2387_v10, -1e+30 }
 0x152   : > { %v2404_v55 = vadd.f32 %v2126_v8, %v586_v62  ;;  %v930_v50 = vsel %vm764_vm0, %v763_v36, -inf }
 0x154   : > { %3149 = vst [vmem:[#allocation54_spill] sm:$0xff] %v2404_v55 }
 0x155   : > { %919 = vmax.xlane.f32.xlu1 %v918_v61  ;;  %916 = vmax.xlane.f32.xlu0 %v915_v24  ;;  %v927_v61 = vsel %vm764_vm0, %v2404_v55, -inf }
 0x159   : > { %925 = vmax.xlane.f32.xlu1 %v924_v58  ;;  %922 = vmax.xlane.f32.xlu0 %v921_v31 }
 0x15d   : > { %931 = vmax.xlane.f32.xlu1 %v930_v50  ;;  %928 = vmax.xlane.f32.xlu0 %v927_v61 }
 0x17a   : > { %v2413_v24 = vpop.xlane.xlu1 %853  ;;  %v770_v32 = vpop.xlane.xlu0 %769 }
 0x17e   : > { %v776_v8 = vpop.xlane.xlu1 %775  ;;  %v767_v62 = vpop.xlane.xlu0 %766 }
 0x182   : > { %v2415_v10 = vpop.xlane.xlu1 %859  ;;  %v2417_v16 = vpop.xlane.xlu0 %850 }
 0x186   : > { %v773_v45 = vpop.xlane.xlu1 %772  ;;  %v2419_v33 = vpop.xlane.xlu0 %856 }
 0x18a   : > { %v782_v58 = vpop.xlane.xlu1 %781  ;;  %v779_v31 = vpop.xlane.xlu0 %778 }
 0x18b   : > { %v934_v5 = vmax.f32 %v770_v32, %v782_v58  ;;  %v933_v4 = vmax.f32 %v767_v62, %v779_v31 }
 0x18e   : > { %v866_v36 = vpop.xlane.xlu1 %865  ;;  %v863_v6 = vpop.xlane.xlu0 %862 }
 0x192   : > { %v788_v63 = vpop.xlane.xlu1 %787  ;;  %v785_v55 = vpop.xlane.xlu0 %784 }
 0x193   : > { %v936_v3 = vmax.f32 %v776_v8, %v788_v63  ;;  %v935_v0 = vmax.f32 %v773_v45, %v785_v55 }
 0x196   : > { %v2421_v50 = vpop.xlane.xlu1 %871  ;;  %v2423_v61 = vpop.xlane.xlu0 %868 }
 0x19a   : > { %v794_v42 = vpop.xlane.xlu1 %793  ;;  %v791_v39 = vpop.xlane.xlu0 %790 }
 0x19b   : > { %v938_v26 = vmax.f32 %v934_v5, %v794_v42  ;;  %v937_v25 = vmax.f32 %v933_v4, %v791_v39 }
 0x19e   : > { %v2425_v14 = vpop.xlane.xlu1 %877  ;;  %v2427_v13 = vpop.xlane.xlu0 %874 }
 0x1a2   : > { %v800_v57 = vpop.xlane.xlu1 %799  ;;  %v797_v56 = vpop.xlane.xlu0 %796 }
 0x1a3   : > { %v940_v9 = vmax.f32 %v936_v3, %v800_v57  ;;  %v939_v7 = vmax.f32 %v935_v0, %v797_v56 }
 0x1a6   : > { %v2429_v38 = vpop.xlane.xlu1 %883  ;;  %v2431_v37 = vpop.xlane.xlu0 %880 }
 0x1aa   : > { %v806_v19 = vpop.xlane.xlu1 %805  ;;  %v803_v18 = vpop.xlane.xlu0 %802 }
 0x1ab   : > { %v942_v49 = vmax.f32 %v938_v26, %v806_v19  ;;  %v941_v48 = vmax.f32 %v937_v25, %v803_v18 }
 0x1ae   : > { %v890_v2 = vpop.xlane.xlu1 %889  ;;  %v887_v1 = vpop.xlane.xlu0 %886 }
 0x1b2   : > { %v812_v53 = vpop.xlane.xlu1 %811  ;;  %v809_v52 = vpop.xlane.xlu0 %808 }
 0x1b3   : > { %v944_v47 = vmax.f32 %v940_v9, %v812_v53  ;;  %v943_v46 = vmax.f32 %v939_v7, %v809_v52 }
 0x1b6   : > { %v896_v41 = vpop.xlane.xlu1 %895  ;;  %v893_v40 = vpop.xlane.xlu0 %892 }
 0x1ba   : > { %v818_v30 = vpop.xlane.xlu1 %817  ;;  %v815_v21 = vpop.xlane.xlu0 %814 }
 0x1bb   : > { %v946_v60 = vmax.f32 %v942_v49, %v818_v30  ;;  %v945_v59 = vmax.f32 %v941_v48, %v815_v21 }
 0x1be   : > { %v902_v23 = vpop.xlane.xlu1 %901  ;;  %v899_v12 = vpop.xlane.xlu0 %898 }
 0x1c2   : > { %v824_v44 = vpop.xlane.xlu1 %823  ;;  %v821_v43 = vpop.xlane.xlu0 %820 }
 0x1c3   : > { %v948_v58 = vmax.f32 %v944_v47, %v824_v44  ;;  %v947_v31 = vmax.f32 %v943_v46, %v821_v43 }
 0x1c6   : > { %v2433_v22 = vpop.xlane.xlu1 %907  ;;  %v2435_v17 = vpop.xlane.xlu0 %904 }
 0x1ca   : > { %v830_v54 = vpop.xlane.xlu1 %829  ;;  %v827_v51 = vpop.xlane.xlu0 %826 }
 0x1cb   : > { %v950_v35 = vmax.f32 %v946_v60, %v830_v54  ;;  %v949_v34 = vmax.f32 %v945_v59, %v827_v51 }
 0x1ce   : > { %v836_v28 = vpop.xlane.xlu1 %835  ;;  %v833_v27 = vpop.xlane.xlu0 %832 }
 0x1cf   : > { %v952_v4 = vmax.f32 %v948_v58, %v836_v28  ;;  %v951_v5 = vmax.f32 %v947_v31, %v833_v27 }
 0x1d2   : > { %v842_v32 = vpop.xlane.xlu1 %841  ;;  %v839_v62 = vpop.xlane.xlu0 %838 }
 0x1d3   : > { %v954_v42 = vmax.f32 %v950_v35, %v842_v32  ;;  %v953_v39 = vmax.f32 %v949_v34, %v839_v62  ;;  %v3150_v62 = vld [vmem:[#allocation6_spill] sm:$0xff] }
 0x1d5   : > { %v958_v18 = vmax.f32 %v954_v42, %v2413_v24  ;;  %v957_v19 = vmax.f32 %v953_v39, %v2417_v16 }
 0x1d6   : > { %v848_v57 = vpop.xlane.xlu1 %847  ;;  %v845_v56 = vpop.xlane.xlu0 %844 }
 0x1d7   : > { %v962_v30 = vmax.f32 %v958_v18, %v866_v36  ;;  %v961_v21 = vmax.f32 %v957_v19, %v863_v6  ;;  %v956_v53 = vmax.f32 %v952_v4, %v848_v57  ;;  %v955_v52 = vmax.f32 %v951_v5, %v845_v56  ;;  %v3153_v18 = vld [vmem:[#allocation11_spill] sm:$0xff]  ;;  %v3154_v56 = vld [vmem:[#allocation14_spill] sm:$0xff] }
 0x1d9   : > { %v960_v59 = vmax.f32 %v956_v53, %v2415_v10  ;;  %v959_v60 = vmax.f32 %v955_v52, %v2419_v33  ;;  %v966_v46 = vmax.f32 %v962_v30, %v2425_v14  ;;  %v965_v34 = vmax.f32 %v961_v21, %v2427_v13  ;;  %v3155_v53 = vld [vmem:[#allocation15_spill] sm:$0xff] }
 0x1da   : > { %v914_v35 = vpop.xlane.xlu1 %913  ;;  %v911_v47 = vpop.xlane.xlu0 %910 }
 0x1db   : > { %v964_v7 = vmax.f32 %v960_v59, %v2421_v50  ;;  %v963_v9 = vmax.f32 %v959_v60, %v2423_v61  ;;  %v970_v27 = vmax.f32 %v966_v46, %v890_v2  ;;  %v969_v28 = vmax.f32 %v965_v34, %v887_v1  ;;  %v3156_v60 = vld [vmem:[#allocation18_spill] sm:$0xff] }
 0x1dd   : > { %v974_v48 = vmax.f32 %v970_v27, %v902_v23  ;;  %v973_v49 = vmax.f32 %v969_v28, %v899_v12  ;;  %v968_v0 = vmax.f32 %v964_v7, %v2429_v38  ;;  %v967_v3 = vmax.f32 %v963_v9, %v2431_v37  ;;  %v3158_v28 = vld [vmem:[#allocation22_spill] sm:$0xff] }
 0x1de   : > { %v920_v25 = vpop.xlane.xlu1 %919  ;;  %v917_v26 = vpop.xlane.xlu0 %916 }
 0x1df   : > { %v972_v51 = vmax.f32 %v968_v0, %v896_v41  ;;  %v971_v14 = vmax.f32 %v967_v3, %v893_v40  ;;  %v978_v54 = vmax.f32 %v974_v48, %v914_v35  ;;  %v977_v13 = vmax.f32 %v973_v49, %v911_v47  ;;  %v3157_v47 = vld [vmem:[#allocation19_spill] sm:$0xff] }
 0x1e1   : > { %v976_v43 = vmax.f32 %v972_v51, %v2433_v22  ;;  %v975_v44 = vmax.f32 %v971_v14, %v2435_v17 }
 0x1e2   : > { %v926_v63 = vpop.xlane.xlu1 %925  ;;  %v923_v6 = vpop.xlane.xlu0 %922 }
 0x1e3   : > { %v982_v2 = vmax.f32 %v978_v54, %v926_v63  ;;  %v981_v1 = vmax.f32 %v977_v13, %v923_v6  ;;  %v980_v23 = vmax.f32 %v976_v43, %v920_v25  ;;  %v979_v12 = vmax.f32 %v975_v44, %v917_v26  ;;  %v3159_v25 = vld [vmem:[#allocation23_spill] sm:$0xff]  ;;  %v3160_v13 = vld [vmem:[#allocation26_spill] sm:$0xff] }
 0x1e5   : > { %v985_v45 = vmax.f32 %v981_v1, %v982_v2  ;;  %v3161_v2 = vld [vmem:[#allocation27_spill] sm:$0xff] }
 0x1e6   : > { %v932_v38 = vpop.xlane.xlu1 %931  ;;  %v929_v10 = vpop.xlane.xlu0 %928 }
 0x1e7   : > { %v984_v37 = vmax.f32 %v980_v23, %v932_v38  ;;  %v983_v16 = vmax.f32 %v979_v12, %v929_v10  ;;  %v3162_v38 = vld [vmem:[#allocation30_spill] sm:$0xff] }
 0x1e9   : > { %v986_v33 = vmax.f32 %v983_v16, %v984_v37 }
 0x1eb   : > { %v987_v41 = vmax.f32 %v985_v45, %v986_v33 }
 0x1ed   : > { %v988_v40 = vrot.slane %v987_v41, 4 }
 0x1ef   : > { %v989_v55 = vmax.f32 %v987_v41, %v988_v40  ;;  %v3163_v41 = vld [vmem:[#allocation31_spill] sm:$0xff] }
 0x1f1   : > { %v990_v24 = vrot.slane %v989_v55, 2 }
 0x1f3   : > { %v991_v8 = vmax.f32 %v989_v55, %v990_v24 }
 0x1f5   : > { %v992_v22 = vrot.slane %v991_v8, 1 }
 0x1f7   : > { %v2449_v36 = vmax.f32 %v991_v8, %v992_v22  ;;  %v3164_v22 = vld [vmem:[#allocation34_spill] sm:$0xff] }
 0x1f9   : > { %v2453_v17 = vsub.f32 %v2135_v15, %v2449_v36  ;;  %v2457_v50 = vsub.f32 %v2129_v11, %v2449_v36  ;;  %v2461_v61 = vsub.f32 %v2142_v20, %v2449_v36  ;;  %v2465_v32 = vsub.f32 %v2157_v29, %v2449_v36  ;;  %v3151_v11 = vld [vmem:[#allocation7_spill] sm:$0xff]  ;;  %v3152_v29 = vld [vmem:[#allocation10_spill] sm:$0xff] }
 0x1fa   : > { %v2469_v58 = vsub.f32 %v3150_v62, %v2449_v36  ;;  %v2476_v39 = vsub.f32 %v3151_v11, %v2449_v36  ;;  %v2481_v4 = vsub.f32 %v3152_v29, %v2449_v36  ;;  %v2486_v19 = vsub.f32 %v3153_v18, %v2449_v36  ;;  %v3165_v11 = vld [vmem:[#allocation35_spill] sm:$0xff] }
 0x1fb   : > { %v1052_v31 = vmul.f32 1.442695, %v2457_v50  ;;  %v1050_v15 = vmul.f32 1.442695, %v2453_v17  ;;  %v1056_v42 = vmul.f32 1.442695, %v2461_v61  ;;  %v2491_v30 = vsub.f32 %v3154_v56, %v2449_v36 }
 0x1fc   : > { %v1054_v20 = vmul.f32 1.442695, %v2465_v32  ;;  %v1060_v5 = vmul.f32 1.442695, %v2469_v58  ;;  %v1058_v57 = vmul.f32 1.442695, %v2476_v39  ;;  %v2496_v52 = vsub.f32 %v3155_v53, %v2449_v36 }
 0x1fd   : > { %1855 = vpow2.f32 %v1052_v31  ;;  %v1064_v21 = vmul.f32 1.442695, %v2481_v4  ;;  %v1062_v59 = vmul.f32 1.442695, %v2486_v19  ;;  %v2501_v46 = vsub.f32 %v3156_v60, %v2449_v36  ;;  %v3167_v60 = vld [vmem:[#allocation39_spill] sm:$0xff] }
 0x1fe   : > { %1857 = vpow2.f32 %v1050_v15  ;;  %v1068_v34 = vmul.f32 1.442695, %v2491_v30  ;;  %v2506_v7 = vsub.f32 %v3157_v47, %v2449_v36  ;;  %v1066_v9 = vmul.f32 1.442695, %v2496_v52 }
 0x1ff   : > { %1859 = vpow2.f32 %v1056_v42  ;;  %v2511_v48 = vsub.f32 %v3158_v28, %v2449_v36  ;;  %v1072_v0 = vmul.f32 1.442695, %v2501_v46  ;;  %v2517_v26 = vsub.f32 %v3159_v25, %v2449_v36  ;;  %v3169_v25 = vld [vmem:[#allocation41_spill] sm:$0xff] }
 0x200   : > { %1861 = vpow2.f32 %v1054_v20  ;;  %v1070_v51 = vmul.f32 1.442695, %v2506_v7  ;;  %v2523_v43 = vsub.f32 %v3160_v13, %v2449_v36  ;;  %v2529_v1 = vsub.f32 %v3161_v2, %v2449_v36 }
 0x201   : > { %1863 = vpow2.f32 %v1060_v5  ;;  %v1076_v44 = vmul.f32 1.442695, %v2511_v48  ;;  %v1074_v23 = vmul.f32 1.442695, %v2517_v26  ;;  %v2535_v10 = vsub.f32 %v3162_v38, %v2449_v36 }
 0x202   : > { %1865 = vpow2.f32 %v1058_v57  ;;  %v1080_v37 = vmul.f32 1.442695, %v2523_v43  ;;  %v2541_v40 = vsub.f32 %v3163_v41, %v2449_v36  ;;  %v1078_v55 = vmul.f32 1.442695, %v2529_v1  ;;  %v3166_v57 = vld [vmem:[#allocation38_spill] sm:$0xff] }
 0x203   : > { %1867 = vpow2.f32 %v1064_v21  ;;  %v2547_v62 = vsub.f32 %v3164_v22, %v2449_v36  ;;  %v1084_v31 = vmul.f32 1.442695, %v2535_v10  ;;  %v2553_v20 = vsub.f32 %v3165_v11, %v2449_v36  ;;  %v3173_v22 = vld [vmem:[#allocation45_spill] sm:$0xff] }
 0x204   : > { %1869 = vpow2.f32 %v1062_v59  ;;  %v1082_v29 = vmul.f32 1.442695, %v2541_v40  ;;  %v2559_v56 = vsub.f32 %v3166_v57, %v2449_v36 }
 0x205   : > { %1871 = vpow2.f32 %v1068_v34  ;;  %v1088_v21 = vmul.f32 1.442695, %v2547_v62  ;;  %v2565_v34 = vsub.f32 %v3167_v60, %v2449_v36 }
 0x206   : > { %1873 = vpow2.f32 %v1066_v9 }
 0x207   : > { %1875 = vpow2.f32 %v1072_v0 }
 0x208   : > { %1877 = vpow2.f32 %v1070_v51  ;;  %v2577_v51 = vsub.f32 %v3169_v25, %v2449_v36  ;;  %v3177_v25 = vld [vmem:[#allocation5_spill] sm:$0xff] }
 0x209   : > { %1879 = vpow2.f32 %v1076_v44  ;;  %v3170_v44 = vld [vmem:[#allocation42_spill] sm:$0xff] }
 0x20a   : > { %v1856_v35 = vpop.eup %1855  ;;  %1881 = vpow2.f32 %v1074_v23  ;;  %v1094_v38 = vmul.f32 1.442695, %v2577_v51 }
 0x20b   : > { %v1858_v27 = vpop.eup %1857  ;;  %v1221_v49 = vsel %vm764_vm0, %v1856_v35, 0.0  ;;  %1883 = vpow2.f32 %v1080_v37  ;;  %v1086_v35 = vmul.f32 1.442695, %v2553_v20 }
 0x20c   : > { %1222 = vadd.xlane.f32.xlu1 %v1221_v49  ;;  %v1860_v3 = vpop.eup %1859  ;;  %v1218_v14 = vsel %vm764_vm0, %v1858_v27, 0.0  ;;  %1885 = vpow2.f32 %v1078_v55  ;;  %v3168_v27 = vld [vmem:[#allocation40_spill] sm:$0xff]  ;;  %v1092_v49 = vmul.f32 1.442695, %v2559_v56 }
 0x20d   : > { %v1862_v54 = vpop.eup %1861  ;;  %1219 = vadd.xlane.f32.xlu0 %v1218_v14  ;;  %v1227_v63 = vsel %vm764_vm0, %v1860_v3, 0.0  ;;  %1887 = vpow2.f32 %v1084_v31  ;;  %v2571_v28 = vsub.f32 %v3168_v27, %v2449_v36  ;;  %v1090_v14 = vmul.f32 1.442695, %v2565_v34 }
 0x20e   : > { %v1864_v6 = vpop.eup %1863  ;;  %v1224_v12 = vsel %vm764_vm0, %v1862_v54, 0.0  ;;  %1889 = vpow2.f32 %v1082_v29  ;;  %v2601_v31 = vsub.f32 %v3173_v22, %v2449_v36  ;;  %v3174_v29 = vld [vmem:[#allocation2_spill] sm:$0xff] }
 0x20f   : > { %v1866_v45 = vpop.eup %1865  ;;  %v1233_v16 = vsel %vm764_vm0, %v1864_v6, 0.0  ;;  %1891 = vpow2.f32 %v1088_v21  ;;  %v1096_v6 = vmul.f32 1.442695, %v2571_v28 }
 0x210   : > { %1228 = vadd.xlane.f32.xlu1 %v1227_v63  ;;  %v1868_v33 = vpop.eup %1867  ;;  %v1230_v24 = vsel %vm764_vm0, %v1866_v45, 0.0  ;;  %1893 = vpow2.f32 %v1086_v35  ;;  %v2583_v63 = vsub.f32 %v3170_v44, %v2449_v36  ;;  %v1102_v60 = vmul.f32 1.442695, %v2601_v31 }
 0x211   : > { %1225 = vadd.xlane.f32.xlu0 %v1224_v12  ;;  %v1870_v8 = vpop.eup %1869  ;;  %v1239_v15 = vsel %vm764_vm0, %v1868_v33, 0.0  ;;  %1895 = vpow2.f32 %v1092_v49  ;;  %v3171_v12 = vld [vmem:[#allocation43_spill] sm:$0xff]  ;;  %v3172_v33 = vld [vmem:[#allocation44_spill] sm:$0xff] }
 0x212   : > { %v1872_v42 = vpop.eup %1871  ;;  %v1236_v5 = vsel %vm764_vm0, %v1870_v8, 0.0  ;;  %v2589_v45 = vsub.f32 %v3171_v12, %v2449_v36  ;;  %1897 = vpow2.f32 %v1090_v14  ;;  %v2595_v41 = vsub.f32 %v3172_v33, %v2449_v36 }
 0x213   : > { %v1874_v18 = vpop.eup %1873  ;;  %v1245_v53 = vsel %vm764_vm0, %v1872_v42, 0.0  ;;  %v1100_v55 = vmul.f32 1.442695, %v2583_v63  ;;  %1899 = vpow2.f32 %v1096_v6  ;;  %v2625_v14 = vsub.f32 %v3177_v25, %v2449_v36  ;;  %v3178_v6 = vld [vmem:[#allocation8_spill] sm:$0xff] }
 0x214   : > { %1234 = vadd.xlane.f32.xlu1 %v1233_v16  ;;  %v1876_v59 = vpop.eup %1875  ;;  %v1242_v47 = vsel %vm764_vm0, %v1874_v18, 0.0  ;;  %1901 = vpow2.f32 %v1094_v38  ;;  %v1104_v18 = vmul.f32 1.442695, %v2595_v41 }
 0x215   : > { %1231 = vadd.xlane.f32.xlu0 %v1230_v24  ;;  %v1878_v9 = vpop.eup %1877  ;;  %v1251_v0 = vsel %vm764_vm0, %v1876_v59, 0.0  ;;  %1903 = vpow2.f32 %v1100_v55  ;;  %v1110_v33 = vmul.f32 1.442695, %v2625_v14 }
 0x216   : > { %v1880_v3 = vpop.eup %1879  ;;  %v1248_v54 = vsel %vm764_vm0, %v1878_v9, 0.0  ;;  %v3176_v9 = vld [vmem:[#allocation3_spill] sm:$0xff] }
 0x217   : > { %v1882_v13 = vpop.eup %1881  ;;  %v1257_v2 = vsel %vm764_vm0, %v1880_v3, 0.0  ;;  %v2619_v27 = vsub.f32 %v3176_v9, %v2449_v36 }
 0x218   : > { %1240 = vadd.xlane.f32.xlu1 %v1239_v15  ;;  %v1884_v23 = vpop.eup %1883  ;;  %v1254_v37 = vsel %vm764_vm0, %v1882_v13, 0.0  ;;  %v1098_v15 = vmul.f32 1.442695, %v2589_v45 }
 0x219   : > { %1237 = vadd.xlane.f32.xlu0 %v1236_v5  ;;  %v1886_v16 = vpop.eup %1885  ;;  %v1263_v24 = vsel %vm764_vm0, %v1884_v23, 0.0  ;;  %v2607_v5 = vsub.f32 %v3174_v29, %v2449_v36  ;;  %v1112_v23 = vmul.f32 1.442695, %v2619_v27  ;;  %v3181_v29 = vld [vmem:[#allocation13_spill] sm:$0xff] }
 0x21a   : > { %v1888_v8 = vpop.eup %1887  ;;  %v1260_v42 = vsel %vm764_vm0, %v1886_v16, 0.0  ;;  %1905 = vpow2.f32 %v1098_v15 }
 0x21b   : > { %v1890_v11 = vpop.eup %1889  ;;  %v1269_v57 = vsel %vm764_vm0, %v1888_v8, 0.0  ;;  %v1108_v49 = vmul.f32 1.442695, %v2607_v5  ;;  %1907 = vpow2.f32 %v1104_v18  ;;  %v3180_v8 = vld [vmem:[#allocation12_spill] sm:$0xff]  ;;  %v2649_v18 = vsub.f32 %v3181_v29, %v2449_v36 }
 0x21c   : > { %1246 = vadd.xlane.f32.xlu1 %v1245_v53  ;;  %v1892_v21 = vpop.eup %1891  ;;  %v3175_v53 = vld [vmem:[#allocation4_spill] sm:$0xff]  ;;  %v1266_v35 = vsel %vm764_vm0, %v1890_v11, 0.0  ;;  %1909 = vpow2.f32 %v1102_v60  ;;  %v2643_v22 = vsub.f32 %v3180_v8, %v2449_v36 }
 0x21d   : > { %1243 = vadd.xlane.f32.xlu0 %v1242_v47  ;;  %v2613_v59 = vsub.f32 %v3175_v53, %v2449_v36  ;;  %v1894_v47 = vpop.eup %1893  ;;  %1911 = vpow2.f32 %v1108_v49  ;;  %v3182_v60 = vld [vmem:[#allocation16_spill] sm:$0xff]  ;;  %v1118_v25 = vmul.f32 1.442695, %v2649_v18 }
 0x21e   : > { %v1896_v3 = vpop.eup %1895  ;;  %v1272_v13 = vsel %vm764_vm0, %v1894_v47, 0.0  ;;  %v1120_v47 = vmul.f32 1.442695, %v2643_v22 }
 0x21f   : > { %v1898_v44 = vpop.eup %1897  ;;  %v1281_v12 = vsel %vm764_vm0, %v1896_v3, 0.0 }
 0x220   : > { %1252 = vadd.xlane.f32.xlu1 %v1251_v0  ;;  %v1275_v0 = vsel %vm764_vm0, %v1892_v21, 0.0  ;;  %v1900_v38 = vpop.eup %1899  ;;  %v1278_v55 = vsel %vm764_vm0, %v1898_v44, 0.0  ;;  %v3184_v44 = vld [vmem:[#allocation20_spill] sm:$0xff] }
 0x221   : > { %1249 = vadd.xlane.f32.xlu0 %v1248_v54  ;;  %v1106_v54 = vmul.f32 1.442695, %v2613_v59 }
 0x223   : > { %1913 = vpow2.f32 %v1106_v54 }
 0x224   : > { %1258 = vadd.xlane.f32.xlu1 %v1257_v2  ;;  %v2631_v2 = vsub.f32 %v3178_v6, %v2449_v36  ;;  %1915 = vpow2.f32 %v1112_v23  ;;  %v2667_v6 = vsub.f32 %v3184_v44, %v2449_v36  ;;  %v3191_v44 = vld [vmem:[#allocation29_spill] sm:$0xff] }
 0x225   : > { %1255 = vadd.xlane.f32.xlu0 %v1254_v37  ;;  %v3179_v37 = vld [vmem:[#allocation9_spill] sm:$0xff]  ;;  %1917 = vpow2.f32 %v1110_v33 }
 0x226   : > { %v2637_v16 = vsub.f32 %v3179_v37, %v2449_v36  ;;  %v1116_v15 = vmul.f32 1.442695, %v2631_v2  ;;  %v3185_v37 = vld [vmem:[#allocation21_spill] sm:$0xff] }
 0x227   : > { %v2673_v33 = vsub.f32 %v3185_v37, %v2449_v36 }
 0x228   : > { %1264 = vadd.xlane.f32.xlu1 %v1263_v24  ;;  %v1902_v24 = vpop.eup %1901  ;;  %1919 = vpow2.f32 %v1116_v15  ;;  %v3186_v15 = vld [vmem:[#allocation24_spill] sm:$0xff] }
 0x229   : > { %1261 = vadd.xlane.f32.xlu0 %v1260_v42  ;;  %v1287_v42 = vsel %vm764_vm0, %v1900_v38, 0.0  ;;  %v1904_v11 = vpop.eup %1903  ;;  %v1284_v21 = vsel %vm764_vm0, %v1902_v24, 0.0 }
 0x22a   : > { %v1906_v53 = vpop.eup %1905  ;;  %v1293_v9 = vsel %vm764_vm0, %v1904_v11, 0.0  ;;  %v1128_v11 = vmul.f32 1.442695, %v2667_v6 }
 0x22b   : > { %v1908_v49 = vpop.eup %1907  ;;  %v1290_v54 = vsel %vm764_vm0, %v1906_v53, 0.0 }
 0x22c   : > { %1270 = vadd.xlane.f32.xlu1 %v1269_v57  ;;  %v1114_v57 = vmul.f32 1.442695, %v2637_v16 }
 0x22d   : > { %1267 = vadd.xlane.f32.xlu0 %v1266_v35  ;;  %v2655_v35 = vsub.f32 %v3182_v60, %v2449_v36  ;;  %v1126_v60 = vmul.f32 1.442695, %v2673_v33 }
 0x22e   : > { %1921 = vpow2.f32 %v1114_v57 }
 0x22f   : > { %v1124_v23 = vmul.f32 1.442695, %v2655_v35  ;;  %1923 = vpow2.f32 %v1120_v47 }
 0x230   : > { %1276 = vadd.xlane.f32.xlu1 %v1275_v0  ;;  %v3183_v0 = vld [vmem:[#allocation17_spill] sm:$0xff]  ;;  %1925 = vpow2.f32 %v1118_v25 }
 0x231   : > { %1273 = vadd.xlane.f32.xlu0 %v1272_v13  ;;  %v2661_v3 = vsub.f32 %v3183_v0, %v2449_v36  ;;  %v1910_v13 = vpop.eup %1909  ;;  %1927 = vpow2.f32 %v1124_v23  ;;  %v2697_v23 = vsub.f32 %v3191_v44, %v2449_v36  ;;  %v3199_v44 = vld [vmem:[#allocation37_spill] sm:$0xff] }
 0x232   : > { %v1912_v38 = vpop.eup %1911  ;;  %v1296_v24 = vsel %vm764_vm0, %v1910_v13, 0.0 }
 0x233   : > { %v1914_v8 = vpop.eup %1913  ;;  %v1305_v29 = vsel %vm764_vm0, %v1912_v38, 0.0  ;;  %3192 = vst [vmem:[#allocation10_spill] sm:$0xff] %v2697_v23 }
 0x234   : > { %1282 = vadd.xlane.f32.xlu1 %v1281_v12  ;;  %v1299_v12 = vsel %vm764_vm0, %v1908_v49, 0.0  ;;  %v1916_v57 = vpop.eup %1915  ;;  %v1302_v47 = vsel %vm764_vm0, %v1914_v8, 0.0  ;;  %v3189_v49 = vld [vmem:[#allocation28_spill] sm:$0xff] }
 0x235   : > { %1279 = vadd.xlane.f32.xlu0 %v1278_v55  ;;  %v1122_v55 = vmul.f32 1.442695, %v2661_v3  ;;  %v2691_v0 = vsub.f32 %v3189_v49, %v2449_v36 }
 0x237   : > { %1929 = vpow2.f32 %v1122_v55  ;;  %3190 = vst [vmem:[#allocation7_spill] sm:$0xff] %v2691_v0  ;;  %v3193_v55 = vld [vmem:[#allocation32_spill] sm:$0xff]  ;;  %v1136_v8 = vmul.f32 1.442695, %v2691_v0 }
 0x238   : > { %1288 = vadd.xlane.f32.xlu1 %v1287_v42  ;;  %v2679_v42 = vsub.f32 %v3186_v15, %v2449_v36  ;;  %1931 = vpow2.f32 %v1128_v11 }
 0x239   : > { %1285 = vadd.xlane.f32.xlu0 %v1284_v21  ;;  %v3188_v21 = vld [vmem:[#allocation25_spill] sm:$0xff]  ;;  %1933 = vpow2.f32 %v1126_v60 }
 0x23a   : > { %3187 = vst [vmem:[#allocation6_spill] sm:$0xff] %v2679_v42  ;;  %v2685_v53 = vsub.f32 %v3188_v21, %v2449_v36  ;;  %v1132_v25 = vmul.f32 1.442695, %v2679_v42  ;;  %v1134_v21 = vmul.f32 1.442695, %v2697_v23 }
 0x23c   : > { %1294 = vadd.xlane.f32.xlu1 %v1293_v9  ;;  %v1918_v9 = vpop.eup %1917  ;;  %1935 = vpow2.f32 %v1132_v25 }
 0x23d   : > { %1291 = vadd.xlane.f32.xlu0 %v1290_v54  ;;  %v1311_v54 = vsel %vm764_vm0, %v1916_v57, 0.0  ;;  %v1920_v13 = vpop.eup %1919  ;;  %v1308_v38 = vsel %vm764_vm0, %v1918_v9, 0.0  ;;  %v3197_v9 = vld [vmem:[#allocation36_spill] sm:$0xff] }
 0x23e   : > { %v1922_v37 = vpop.eup %1921  ;;  %v1317_v15 = vsel %vm764_vm0, %v1920_v13, 0.0  ;;  %v2715_v49 = vsub.f32 %v3197_v9, %v2449_v36  ;;  %v3203_v9 = vld [vmem:[#allocation47_spill] sm:$0xff] }
 0x23f   : > { %v1924_v11 = vpop.eup %1923  ;;  %v1314_v60 = vsel %vm764_vm0, %v1922_v37, 0.0 }
 0x240   : > { %1300 = vadd.xlane.f32.xlu1 %v1299_v12  ;;  %v1130_v12 = vmul.f32 1.442695, %v2685_v53  ;;  %3198 = vst [vmem:[#allocation15_spill] sm:$0xff] %v2715_v49 }
 0x241   : > { %1297 = vadd.xlane.f32.xlu0 %v1296_v24  ;;  %v2703_v24 = vsub.f32 %v3193_v55, %v2449_v36 }
 0x242   : > { %1937 = vpow2.f32 %v1130_v12 }
 0x243   : > { %3194 = vst [vmem:[#allocation11_spill] sm:$0xff] %v2703_v24  ;;  %v1140_v25 = vmul.f32 1.442695, %v2703_v24  ;;  %1939 = vpow2.f32 %v1136_v8  ;;  %v1144_v8 = vmul.f32 1.442695, %v2715_v49 }
 0x244   : > { %1306 = vadd.xlane.f32.xlu1 %v1305_v29  ;;  %v3195_v29 = vld [vmem:[#allocation33_spill] sm:$0xff]  ;;  %1941 = vpow2.f32 %v1134_v21 }
 0x245   : > { %1303 = vadd.xlane.f32.xlu0 %v1302_v47  ;;  %v2709_v57 = vsub.f32 %v3195_v29, %v2449_v36  ;;  %v1926_v47 = vpop.eup %1925  ;;  %1943 = vpow2.f32 %v1140_v25 }
 0x246   : > { %v1928_v13 = vpop.eup %1927  ;;  %v1320_v37 = vsel %vm764_vm0, %v1926_v47, 0.0 }
 0x247   : > { %3196 = vst [vmem:[#allocation14_spill] sm:$0xff] %v2709_v57  ;;  %v1138_v12 = vmul.f32 1.442695, %v2709_v57  ;;  %v1930_v55 = vpop.eup %1929 }
 0x248   : > { %1312 = vadd.xlane.f32.xlu1 %v1311_v54  ;;  %v1323_v54 = vsel %vm764_vm0, %v1924_v11, 0.0  ;;  %v1329_v11 = vsel %vm764_vm0, %v1928_v13, 0.0  ;;  %v1326_v47 = vsel %vm764_vm0, %v1930_v55, 0.0 }
 0x249   : > { %1309 = vadd.xlane.f32.xlu0 %v1308_v38  ;;  %v2721_v38 = vsub.f32 %v3199_v44, %v2449_v36  ;;  %1945 = vpow2.f32 %v1138_v12 }
 0x24a   : > { %1947 = vpow2.f32 %v1144_v8 }
 0x24b   : > { %3200 = vst [vmem:[#allocation18_spill] sm:$0xff] %v2721_v38  ;;  %v1142_v21 = vmul.f32 1.442695, %v2721_v38 }
 0x24c   : > { %1318 = vadd.xlane.f32.xlu1 %v1317_v15  ;;  %v3201_v15 = vld [vmem:[#allocation46_spill] sm:$0xff] }
 0x24d   : > { %1315 = vadd.xlane.f32.xlu0 %v1314_v60  ;;  %v2727_v29 = vsub.f32 %v3201_v15, %v2449_v36  ;;  %v1932_v60 = vpop.eup %1931  ;;  %v3205_v15 = vld [vmem:[#allocation49_spill] sm:$0xff]  ;;  %1949 = vpow2.f32 %v1142_v21 }
 0x24e   : > { %v1934_v44 = vpop.eup %1933  ;;  %v2739_v24 = vsub.f32 %v3205_v15, %v2449_v36  ;;  %v1335_v13 = vsel %vm764_vm0, %v1932_v60, 0.0  ;;  %v3209_v15 = vld [vmem:[#allocation52_spill] sm:$0xff]  ;;  %v3213_v21 = vld [vmem:[#allocation53_spill] sm:$0xff] }
 0x24f   : > { %3202 = vst [vmem:[#allocation19_spill] sm:$0xff] %v2727_v29  ;;  %v1148_v25 = vmul.f32 1.442695, %v2727_v29  ;;  %v1332_v55 = vsel %vm764_vm0, %v1934_v44, 0.0  ;;  %v2751_v38 = vsub.f32 %v3209_v15, %v2449_v36  ;;  %v2761_v44 = vsub.f32 %v3213_v21, %v2449_v36 }
 0x250   : > { %1324 = vadd.xlane.f32.xlu1 %v1323_v54  ;;  %v2733_v54 = vsub.f32 %v3203_v9, %v2449_v36  ;;  %3206 = vst [vmem:[#allocation23_spill] sm:$0xff] %v2739_v24  ;;  %v1152_v8 = vmul.f32 1.442695, %v2739_v24 }
 0x251   : > { %1321 = vadd.xlane.f32.xlu0 %v1320_v37  ;;  %v1936_v37 = vpop.eup %1935  ;;  %3210 = vst [vmem:[#allocation27_spill] sm:$0xff] %v2751_v38  ;;  %1951 = vpow2.f32 %v1148_v25  ;;  %3214 = vst [vmem:[#allocation31_spill] sm:$0xff] %v2761_v44  ;;  %v1156_v25 = vmul.f32 1.442695, %v2751_v38 }
 0x252   : > { %3204 = vst [vmem:[#allocation22_spill] sm:$0xff] %v2733_v54  ;;  %v1146_v12 = vmul.f32 1.442695, %v2733_v54  ;;  %v1938_v49 = vpop.eup %1937  ;;  %v1341_v60 = vsel %vm764_vm0, %v1936_v37, 0.0 }
 0x253   : > { %v1338_v15 = vsel %vm764_vm0, %v1938_v49, 0.0 }
 0x254   : > { %1330 = vadd.xlane.f32.xlu1 %v1329_v11  ;;  %v3207_v11 = vld [vmem:[#allocation50_spill] sm:$0xff]  ;;  %1953 = vpow2.f32 %v1146_v12 }
 0x255   : > { %1327 = vadd.xlane.f32.xlu0 %v1326_v47  ;;  %v2745_v9 = vsub.f32 %v3207_v11, %v2449_v36  ;;  %v1940_v47 = vpop.eup %1939  ;;  %1955 = vpow2.f32 %v1152_v8 }
 0x256   : > { %v1942_v24 = vpop.eup %1941  ;;  %v1347_v37 = vsel %vm764_vm0, %v1940_v47, 0.0 }
 0x257   : > { %3208 = vst [vmem:[#allocation26_spill] sm:$0xff] %v2745_v9  ;;  %v1150_v29 = vmul.f32 1.442695, %v2745_v9  ;;  %v1154_v9 = vmul.f32 1.442695, %v2761_v44  ;;  %v1344_v49 = vsel %vm764_vm0, %v1942_v24, 0.0 }
 0x258   : > { %1336 = vadd.xlane.f32.xlu1 %v1335_v13  ;;  %v3211_v13 = vld [vmem:[#allocation51_spill] sm:$0xff] }
 0x259   : > { %1333 = vadd.xlane.f32.xlu0 %v1332_v55  ;;  %v2757_v11 = vsub.f32 %v3211_v13, %v2449_v36  ;;  %v1944_v55 = vpop.eup %1943  ;;  %1957 = vpow2.f32 %v1150_v29 }
 0x25a   : > { %v1946_v12 = vpop.eup %1945  ;;  %1959 = vpow2.f32 %v1156_v25  ;;  %v1353_v8 = vsel %vm764_vm0, %v1944_v55, 0.0 }
 0x25b   : > { %3212 = vst [vmem:[#allocation30_spill] sm:$0xff] %v2757_v11  ;;  %v1160_v13 = vmul.f32 1.442695, %v2757_v11 }
 0x25c   : > { %1342 = vadd.xlane.f32.xlu1 %v1341_v60  ;;  %v3215_v60 = vld [vmem:[#allocation54_spill] sm:$0xff] }
 0x25d   : > { %1339 = vadd.xlane.f32.xlu0 %v1338_v15  ;;  %v2770_v21 = vsub.f32 %v3215_v60, %v2449_v36  ;;  %v1948_v15 = vpop.eup %1947  ;;  %1961 = vpow2.f32 %v1160_v13 }
 0x25e   : > { %1963 = vpow2.f32 %v1154_v9  ;;  %v1950_v36 = vpop.eup %1949  ;;  %v1359_v60 = vsel %vm764_vm0, %v1948_v15, 0.0 }
 0x25f   : > { %3216 = vst [vmem:[#allocation34_spill] sm:$0xff] %v2770_v21  ;;  %v1158_v47 = vmul.f32 1.442695, %v2770_v21  ;;  %v1952_v29 = vpop.eup %1951  ;;  %v1356_v24 = vsel %vm764_vm0, %v1950_v36, 0.0 }
 0x260   : > { %1348 = vadd.xlane.f32.xlu1 %v1347_v37  ;;  %v1350_v37 = vsel %vm764_vm0, %v1946_v12, 0.0  ;;  %v1365_v55 = vsel %vm764_vm0, %v1952_v29, 0.0 }
 0x261   : > { %1345 = vadd.xlane.f32.xlu0 %v1344_v49  ;;  %1965 = vpow2.f32 %v1158_v47  ;;  %v1954_v25 = vpop.eup %1953 }
 0x262   : > { %v1956_v13 = vpop.eup %1955  ;;  %v1362_v49 = vsel %vm764_vm0, %v1954_v25, 0.0 }
 0x263   : > { %v1371_v12 = vsel %vm764_vm0, %v1956_v13, 0.0 }
 0x264   : > { %1354 = vadd.xlane.f32.xlu1 %v1353_v8 }
 0x265   : > { %1351 = vadd.xlane.f32.xlu0 %v1350_v37 }
 0x266   : > { %v1958_v9 = vpop.eup %1957 }
 0x267   : > { %v1960_v8 = vpop.eup %1959  ;;  %v1368_v37 = vsel %vm764_vm0, %v1958_v9, 0.0 }
 0x268   : > { %1360 = vadd.xlane.f32.xlu1 %v1359_v60  ;;  %v1377_v36 = vsel %vm764_vm0, %v1960_v8, 0.0 }
 0x269   : > { %1357 = vadd.xlane.f32.xlu0 %v1356_v24 }
 0x26a   : > { %v1962_v15 = vpop.eup %1961 }
 0x26b   : > { %v1964_v47 = vpop.eup %1963  ;;  %v1217_v29 = vsel %vm707_vm1, %v1962_v15, 0.0 }
 0x26c   : > { %1366 = vadd.xlane.f32.xlu1 %v1365_v55  ;;  %v1374_v24 = vsel %vm764_vm0, %v1964_v47, 0.0  ;;  %v1383_v55 = vsel %vm764_vm0, %v1217_v29, 0.0 }
 0x26d   : > { %1363 = vadd.xlane.f32.xlu0 %v1362_v49 }
 0x26e   : > { %v1966_v25 = vpop.eup %1965 }
 0x26f   : > { %v1380_v13 = vsel %vm764_vm0, %v1966_v25, 0.0 }
 0x270   : > { %1372 = vadd.xlane.f32.xlu1 %v1371_v12 }
 0x271   : > { %1369 = vadd.xlane.f32.xlu0 %v1368_v37 }
 0x274   : > { %1378 = vadd.xlane.f32.xlu1 %v1377_v36 }
 0x275   : > { %1375 = vadd.xlane.f32.xlu0 %v1374_v24 }
 0x278   : > { %1384 = vadd.xlane.f32.xlu1 %v1383_v55 }
 0x279   : > { %1381 = vadd.xlane.f32.xlu0 %v1380_v13 }
 0x295   : > { %v1223_v49 = vpop.xlane.xlu1 %1222 }
 0x296   : > { %v1220_v9 = vpop.xlane.xlu0 %1219 }
 0x297   : > { %v1386_v37 = vadd.f32 %v1223_v49, %v1220_v9 }
 0x299   : > { %v1229_v12 = vpop.xlane.xlu1 %1228 }
 0x29a   : > { %v1226_v11 = vpop.xlane.xlu0 %1225 }
 0x29b   : > { %v1387_v8 = vadd.f32 %v1386_v37, %v1226_v11 }
 0x29d   : > { %v1235_v36 = vpop.xlane.xlu1 %1234  ;;  %v1388_v21 = vadd.f32 %v1387_v8, %v1229_v12 }
 0x29e   : > { %v1232_v60 = vpop.xlane.xlu0 %1231 }
 0x29f   : > { %v1389_v15 = vadd.f32 %v1388_v21, %v1232_v60 }
 0x2a1   : > { %v1241_v38 = vpop.xlane.xlu1 %1240  ;;  %v1390_v47 = vadd.f32 %v1389_v15, %v1235_v36 }
 0x2a2   : > { %v1238_v44 = vpop.xlane.xlu0 %1237 }
 0x2a3   : > { %v1391_v24 = vadd.f32 %v1390_v47, %v1238_v44 }
 0x2a5   : > { %v1247_v54 = vpop.xlane.xlu1 %1246  ;;  %v1392_v29 = vadd.f32 %v1391_v24, %v1241_v38 }
 0x2a6   : > { %v1244_v55 = vpop.xlane.xlu0 %1243 }
 0x2a7   : > { %v1393_v57 = vadd.f32 %v1392_v29, %v1244_v55 }
 0x2a9   : > { %v1253_v25 = vpop.xlane.xlu1 %1252  ;;  %v1394_v13 = vadd.f32 %v1393_v57, %v1247_v54 }
 0x2aa   : > { %v1250_v0 = vpop.xlane.xlu0 %1249 }
 0x2ab   : > { %v1395_v23 = vadd.f32 %v1394_v13, %v1250_v0 }
 0x2ad   : > { %v1259_v42 = vpop.xlane.xlu1 %1258  ;;  %v1396_v49 = vadd.f32 %v1395_v23, %v1253_v25 }
 0x2ae   : > { %v1256_v9 = vpop.xlane.xlu0 %1255 }
 0x2af   : > { %v1397_v11 = vadd.f32 %v1396_v49, %v1256_v9 }
 0x2b1   : > { %v1265_v37 = vpop.xlane.xlu1 %1264  ;;  %v1398_v12 = vadd.f32 %v1397_v11, %v1259_v42 }
 0x2b2   : > { %v1262_v8 = vpop.xlane.xlu0 %1261 }
 0x2b3   : > { %v1399_v21 = vadd.f32 %v1398_v12, %v1262_v8 }
 0x2b5   : > { %v1271_v60 = vpop.xlane.xlu1 %1270  ;;  %v1400_v36 = vadd.f32 %v1399_v21, %v1265_v37 }
 0x2b6   : > { %v1268_v15 = vpop.xlane.xlu0 %1267 }
 0x2b7   : > { %v1401_v44 = vadd.f32 %v1400_v36, %v1268_v15 }
 0x2b9   : > { %v1277_v47 = vpop.xlane.xlu1 %1276  ;;  %v1402_v38 = vadd.f32 %v1401_v44, %v1271_v60 }
 0x2ba   : > { %v1274_v24 = vpop.xlane.xlu0 %1273 }
 0x2bb   : > { %v1403_v29 = vadd.f32 %v1402_v38, %v1274_v24 }
 0x2bd   : > { %v1283_v55 = vpop.xlane.xlu1 %1282  ;;  %v1404_v57 = vadd.f32 %v1403_v29, %v1277_v47 }
 0x2be   : > { %v1280_v54 = vpop.xlane.xlu0 %1279 }
 0x2bf   : > { %v1405_v0 = vadd.f32 %v1404_v57, %v1280_v54 }
 0x2c1   : > { %v1289_v13 = vpop.xlane.xlu1 %1288  ;;  %v1406_v23 = vadd.f32 %v1405_v0, %v1283_v55 }
 0x2c2   : > { %v1286_v25 = vpop.xlane.xlu0 %1285 }
 0x2c3   : > { %v1407_v49 = vadd.f32 %v1406_v23, %v1286_v25 }
 0x2c5   : > { %v1295_v9 = vpop.xlane.xlu1 %1294  ;;  %v1408_v42 = vadd.f32 %v1407_v49, %v1289_v13 }
 0x2c6   : > { %v1292_v11 = vpop.xlane.xlu0 %1291 }
 0x2c7   : > { %v1409_v12 = vadd.f32 %v1408_v42, %v1292_v11 }
 0x2c9   : > { %v1301_v8 = vpop.xlane.xlu1 %1300  ;;  %v1410_v37 = vadd.f32 %v1409_v12, %v1295_v9 }
 0x2ca   : > { %v1298_v21 = vpop.xlane.xlu0 %1297 }
 0x2cb   : > { %v1411_v36 = vadd.f32 %v1410_v37, %v1298_v21 }
 0x2cd   : > { %v1307_v15 = vpop.xlane.xlu1 %1306  ;;  %v1412_v60 = vadd.f32 %v1411_v36, %v1301_v8 }
 0x2ce   : > { %v1304_v44 = vpop.xlane.xlu0 %1303 }
 0x2cf   : > { %v1413_v38 = vadd.f32 %v1412_v60, %v1304_v44 }
 0x2d1   : > { %v1313_v24 = vpop.xlane.xlu1 %1312  ;;  %v1414_v47 = vadd.f32 %v1413_v38, %v1307_v15 }
 0x2d2   : > { %v1310_v29 = vpop.xlane.xlu0 %1309 }
 0x2d3   : > { %v1415_v57 = vadd.f32 %v1414_v47, %v1310_v29 }
 0x2d5   : > { %v1319_v54 = vpop.xlane.xlu1 %1318  ;;  %v1416_v55 = vadd.f32 %v1415_v57, %v1313_v24 }
 0x2d6   : > { %v1316_v0 = vpop.xlane.xlu0 %1315 }
 0x2d7   : > { %v1417_v23 = vadd.f32 %v1416_v55, %v1316_v0 }
 0x2d9   : > { %v1325_v25 = vpop.xlane.xlu1 %1324  ;;  %v1418_v13 = vadd.f32 %v1417_v23, %v1319_v54 }
 0x2da   : > { %v1322_v49 = vpop.xlane.xlu0 %1321 }
 0x2db   : > { %v1419_v42 = vadd.f32 %v1418_v13, %v1322_v49 }
 0x2dd   : > { %v1331_v11 = vpop.xlane.xlu1 %1330  ;;  %v1420_v9 = vadd.f32 %v1419_v42, %v1325_v25 }
 0x2de   : > { %v1328_v12 = vpop.xlane.xlu0 %1327 }
 0x2df   : > { %v1421_v37 = vadd.f32 %v1420_v9, %v1328_v12 }
 0x2e1   : > { %v1337_v21 = vpop.xlane.xlu1 %1336  ;;  %v1422_v8 = vadd.f32 %v1421_v37, %v1331_v11 }
 0x2e2   : > { %v1334_v36 = vpop.xlane.xlu0 %1333 }
 0x2e3   : > { %v1423_v60 = vadd.f32 %v1422_v8, %v1334_v36 }
 0x2e5   : > { %v1343_v44 = vpop.xlane.xlu1 %1342  ;;  %v1424_v15 = vadd.f32 %v1423_v60, %v1337_v21 }
 0x2e6   : > { %v1340_v38 = vpop.xlane.xlu0 %1339 }
 0x2e7   : > { %v1425_v47 = vadd.f32 %v1424_v15, %v1340_v38 }
 0x2e9   : > { %v1349_v29 = vpop.xlane.xlu1 %1348  ;;  %v1426_v24 = vadd.f32 %v1425_v47, %v1343_v44 }
 0x2ea   : > { %v1346_v57 = vpop.xlane.xlu0 %1345 }
 0x2eb   : > { %v1427_v55 = vadd.f32 %v1426_v24, %v1346_v57 }
 0x2ed   : > { %v1355_v0 = vpop.xlane.xlu1 %1354  ;;  %v1428_v54 = vadd.f32 %v1427_v55, %v1349_v29 }
 0x2ee   : > { %v1352_v23 = vpop.xlane.xlu0 %1351 }
 0x2ef   : > { %v1429_v13 = vadd.f32 %v1428_v54, %v1352_v23 }
 0x2f1   : > { %v1361_v49 = vpop.xlane.xlu1 %1360  ;;  %v1430_v25 = vadd.f32 %v1429_v13, %v1355_v0 }
 0x2f2   : > { %v1358_v42 = vpop.xlane.xlu0 %1357 }
 0x2f3   : > { %v1431_v9 = vadd.f32 %v1430_v25, %v1358_v42 }
 0x2f5   : > { %v1367_v12 = vpop.xlane.xlu1 %1366  ;;  %v1432_v11 = vadd.f32 %v1431_v9, %v1361_v49 }
 0x2f6   : > { %v1364_v37 = vpop.xlane.xlu0 %1363 }
 0x2f7   : > { %v1433_v8 = vadd.f32 %v1432_v11, %v1364_v37 }
 0x2f9   : > { %v1373_v36 = vpop.xlane.xlu1 %1372  ;;  %v1434_v21 = vadd.f32 %v1433_v8, %v1367_v12 }
 0x2fa   : > { %v1370_v60 = vpop.xlane.xlu0 %1369 }
 0x2fb   : > { %v1435_v15 = vadd.f32 %v1434_v21, %v1370_v60 }
 0x2fd   : > { %v1436_v38 = vadd.f32 %v1435_v15, %v1373_v36  ;;  %v1379_v44 = vpop.xlane.xlu1 %1378 }
 0x2fe   : > { %v1376_v47 = vpop.xlane.xlu0 %1375 }
 0x2ff   : > { %v1437_v24 = vadd.f32 %v1436_v38, %v1376_v47  ;;  %v3222_v47 = vld [vmem:[#allocation11_spill] sm:$0xff] }
 0x301   : > { %v1438_v29 = vadd.f32 %v1437_v24, %v1379_v44  ;;  %v1385_v54 = vpop.xlane.xlu1 %1384 }
 0x302   : > { %v1382_v57 = vpop.xlane.xlu0 %1381 }
 0x303   : > { %v1439_v55 = vadd.f32 %v1438_v29, %v1382_v57  ;;  %v3223_v29 = vld [vmem:[#allocation18_spill] sm:$0xff] }
 0x305   : > { %v1440_v0 = vadd.f32 %v1439_v55, %v1385_v54  ;;  %v3224_v55 = vld [vmem:[#allocation15_spill] sm:$0xff] }
 0x307   : > { %v1441_v23 = vrot.slane %v1440_v0, 4 }
 0x309   : > { %v1442_v13 = vadd.f32 %v1441_v23, %v1440_v0  ;;  %v3225_v0 = vld [vmem:[#allocation22_spill] sm:$0xff] }
 0x30b   : > { %v1443_v25 = vrot.slane %v1442_v13, 2 }
 0x30d   : > { %v1444_v49 = vadd.f32 %v1443_v25, %v1442_v13  ;;  %v3226_v13 = vld [vmem:[#allocation19_spill] sm:$0xff] }
 0x30f   : > { %v1445_v42 = vrot.slane %v1444_v49, 1 }
 0x311   : > { %v1446_v9 = vadd.f32 %v1445_v42, %v1444_v49  ;;  %v3227_v49 = vld [vmem:[#allocation26_spill] sm:$0xff] }
 0x313   : > { %1967 = vlog2.f32 %v1446_v9  ;;  %v3228_v9 = vld [vmem:[#allocation23_spill] sm:$0xff] }
 0x320   : > { %v1968_v12 = vpop.eup %1967 }
 0x321   : > { %v2789_v11 = vmul.f32 0.6931472, %v1968_v12 }
 0x323   : > { %v1449_v37 = vsub.f32 %v2453_v17, %v2789_v11  ;;  %v1450_v8 = vsub.f32 %v2457_v50, %v2789_v11  ;;  %v1451_v36 = vsub.f32 %v2465_v32, %v2789_v11  ;;  %v1452_v21 = vsub.f32 %v2461_v61, %v2789_v11 }
 0x324   : > { %v1453_v60 = vsub.f32 %v2476_v39, %v2789_v11  ;;  %v1454_v15 = vsub.f32 %v2469_v58, %v2789_v11  ;;  %v1455_v17 = vsub.f32 %v2486_v19, %v2789_v11  ;;  %v1456_v50 = vsub.f32 %v2481_v4, %v2789_v11 }
 0x325   : > { %v1457_v32 = vsub.f32 %v2496_v52, %v2789_v11  ;;  %v1458_v61 = vsub.f32 %v2491_v30, %v2789_v11  ;;  %v1459_v39 = vsub.f32 %v2506_v7, %v2789_v11  ;;  %v1460_v58 = vsub.f32 %v2501_v46, %v2789_v11  ;;  %1505 = vst.msk [vmem:[%s2796_s29] sm:$0xff] %vm764_vm0, %v1449_v37  ;;  %v3229_v37 = vld [vmem:[#allocation31_spill] sm:$0xff] }
 0x326   : > { %1506 = vst.msk [vmem:[%s2796_s29 + $0x8] sm:$0xff] %vm764_vm0, %v1450_v8  ;;  %1507 = vst.msk [vmem:[%s2796_s29 + $0x10] sm:$0xff] %vm764_vm0, %v1451_v36  ;;  %v1461_v4 = vsub.f32 %v2517_v26, %v2789_v11  ;;  %v1462_v19 = vsub.f32 %v2511_v48, %v2789_v11  ;;  %v1463_v30 = vsub.f32 %v2529_v1, %v2789_v11  ;;  %v3230_v36 = vld [vmem:[#allocation27_spill] sm:$0xff] }
 0x327   : > { %1508 = vst.msk [vmem:[%s2796_s29 + $0x18] sm:$0xff] %vm764_vm0, %v1452_v21  ;;  %v1464_v52 = vsub.f32 %v2523_v43, %v2789_v11  ;;  %1509 = vst.msk [vmem:[%s2796_s29 + $0x20] sm:$0xff] %vm764_vm0, %v1453_v60  ;;  %v1465_v46 = vsub.f32 %v2541_v40, %v2789_v11  ;;  %v1466_v7 = vsub.f32 %v2535_v10, %v2789_v11  ;;  %v3231_v60 = vld [vmem:[#allocation34_spill] sm:$0xff] }
 0x328   : > { %1510 = vst.msk [vmem:[%s2796_s29 + $0x28] sm:$0xff] %vm764_vm0, %v1454_v15  ;;  %1511 = vst.msk [vmem:[%s2796_s29 + $0x30] sm:$0xff] %vm764_vm0, %v1455_v17  ;;  %v1467_v48 = vsub.f32 %v2553_v20, %v2789_v11  ;;  %v1468_v26 = vsub.f32 %v2547_v62, %v2789_v11  ;;  %v1469_v43 = vsub.f32 %v2565_v34, %v2789_v11  ;;  %v3232_v17 = vld [vmem:[#allocation30_spill] sm:$0xff] }
 0x329   : > { %1512 = vst.msk [vmem:[%s2796_s29 + $0x38] sm:$0xff] %vm764_vm0, %v1456_v50  ;;  %1513 = vst.msk [vmem:[%s2796_s29 + $0x40] sm:$0xff] %vm764_vm0, %v1457_v32  ;;  %v1470_v1 = vsub.f32 %v2559_v56, %v2789_v11  ;;  %v1471_v10 = vsub.f32 %v2577_v51, %v2789_v11  ;;  %v1472_v40 = vsub.f32 %v2571_v28, %v2789_v11 }
 0x32a   : > { %1514 = vst.msk [vmem:[%s2796_s29 + $0x48] sm:$0xff] %vm764_vm0, %v1458_v61  ;;  %1515 = vst.msk [vmem:[%s2796_s29 + $0x50] sm:$0xff] %vm764_vm0, %v1459_v39  ;;  %v1473_v62 = vsub.f32 %v2589_v45, %v2789_v11  ;;  %v1474_v20 = vsub.f32 %v2583_v63, %v2789_v11  ;;  %v1475_v56 = vsub.f32 %v2601_v31, %v2789_v11 }
 0x32b   : > { %1516 = vst.msk [vmem:[%s2796_s29 + $0x58] sm:$0xff] %vm764_vm0, %v1460_v58  ;;  %1517 = vst.msk [vmem:[%s2796_s29 + $0x60] sm:$0xff] %vm764_vm0, %v1461_v4  ;;  %v1476_v34 = vsub.f32 %v2595_v41, %v2789_v11  ;;  %v1477_v28 = vsub.f32 %v2613_v59, %v2789_v11  ;;  %v1478_v51 = vsub.f32 %v2607_v5, %v2789_v11 }
 0x32c   : > { %1518 = vst.msk [vmem:[%s2796_s29 + $0x68] sm:$0xff] %vm764_vm0, %v1462_v19  ;;  %1519 = vst.msk [vmem:[%s2796_s29 + $0x70] sm:$0xff] %vm764_vm0, %v1463_v30  ;;  %v1479_v63 = vsub.f32 %v2625_v14, %v2789_v11  ;;  %v1480_v45 = vsub.f32 %v2619_v27, %v2789_v11  ;;  %v1481_v41 = vsub.f32 %v2637_v16, %v2789_v11 }
 0x32d   : > { %1520 = vst.msk [vmem:[%s2796_s29 + $0x78] sm:$0xff] %vm764_vm0, %v1464_v52  ;;  %1521 = vst.msk [vmem:[%s2796_s29 + $0x80] sm:$0xff] %vm764_vm0, %v1465_v46  ;;  %v1482_v31 = vsub.f32 %v2631_v2, %v2789_v11  ;;  %v1483_v5 = vsub.f32 %v2649_v18, %v2789_v11  ;;  %v1484_v59 = vsub.f32 %v2643_v22, %v2789_v11  ;;  %v3218_v18 = vld [vmem:[#allocation6_spill] sm:$0xff] }
 0x32e   : > { %1522 = vst.msk [vmem:[%s2796_s29 + $0x88] sm:$0xff] %vm764_vm0, %v1466_v7  ;;  %1523 = vst.msk [vmem:[%s2796_s29 + $0x90] sm:$0xff] %vm764_vm0, %v1467_v48  ;;  %v1485_v27 = vsub.f32 %v2661_v3, %v2789_v11  ;;  %v1486_v14 = vsub.f32 %v2655_v35, %v2789_v11  ;;  %v1487_v2 = vsub.f32 %v2673_v33, %v2789_v11  ;;  %v3219_v3 = vld [vmem:[#allocation10_spill] sm:$0xff]  ;;  %v3220_v33 = vld [vmem:[#allocation7_spill] sm:$0xff] }
 0x32f   : > { %1524 = vst.msk [vmem:[%s2796_s29 + $0x98] sm:$0xff] %vm764_vm0, %v1468_v26  ;;  %1525 = vst.msk [vmem:[%s2796_s29 + $0xa0] sm:$0xff] %vm764_vm0, %v1469_v43  ;;  %v1488_v16 = vsub.f32 %v2667_v6, %v2789_v11  ;;  %v1489_v22 = vsub.f32 %v2685_v53, %v2789_v11  ;;  %v1490_v35 = vsub.f32 %v3218_v18, %v2789_v11  ;;  %v3221_v53 = vld [vmem:[#allocation14_spill] sm:$0xff] }
 0x330   : > { %1526 = vst.msk [vmem:[%s2796_s29 + $0xa8] sm:$0xff] %vm764_vm0, %v1470_v1  ;;  %1527 = vst.msk [vmem:[%s2796_s29 + $0xb0] sm:$0xff] %vm764_vm0, %v1471_v10  ;;  %v1491_v6 = vsub.f32 %v3219_v3, %v2789_v11  ;;  %v1492_v38 = vsub.f32 %v3220_v33, %v2789_v11  ;;  %v1493_v44 = vsub.f32 %v3221_v53, %v2789_v11 }
 0x331   : > { %1528 = vst.msk [vmem:[%s2796_s29 + $0xb8] sm:$0xff] %vm764_vm0, %v1472_v40  ;;  %1529 = vst.msk [vmem:[%s2796_s29 + $0xc0] sm:$0xff] %vm764_vm0, %v1473_v62  ;;  %v1494_v24 = vsub.f32 %v3222_v47, %v2789_v11  ;;  %v1495_v57 = vsub.f32 %v3223_v29, %v2789_v11  ;;  %v1496_v54 = vsub.f32 %v3224_v55, %v2789_v11 }
 0x332   : > { %1530 = vst.msk [vmem:[%s2796_s29 + $0xc8] sm:$0xff] %vm764_vm0, %v1474_v20  ;;  %1531 = vst.msk [vmem:[%s2796_s29 + $0xd0] sm:$0xff] %vm764_vm0, %v1475_v56  ;;  %v1497_v23 = vsub.f32 %v3225_v0, %v2789_v11  ;;  %v1498_v25 = vsub.f32 %v3226_v13, %v2789_v11  ;;  %v1499_v42 = vsub.f32 %v3227_v49, %v2789_v11 }
 0x333   : > { %1532 = vst.msk [vmem:[%s2796_s29 + $0xd8] sm:$0xff] %vm764_vm0, %v1476_v34  ;;  %1533 = vst.msk [vmem:[%s2796_s29 + $0xe0] sm:$0xff] %vm764_vm0, %v1477_v28  ;;  %v1500_v12 = vsub.f32 %v3228_v9, %v2789_v11  ;;  %v1501_v8 = vsub.f32 %v3229_v37, %v2789_v11  ;;  %v1502_v21 = vsub.f32 %v3230_v36, %v2789_v11 }
 0x334   : > { %1534 = vst.msk [vmem:[%s2796_s29 + $0xe8] sm:$0xff] %vm764_vm0, %v1478_v51  ;;  %1535 = vst.msk [vmem:[%s2796_s29 + $0xf0] sm:$0xff] %vm764_vm0, %v1479_v63  ;;  %v1503_v15 = vsub.f32 %v3231_v60, %v2789_v11  ;;  %v1504_v50 = vsub.f32 %v3232_v17, %v2789_v11 }
 0x335   : > { %1536 = vst.msk [vmem:[%s2796_s29 + $0xf8] sm:$0xff] %vm764_vm0, %v1480_v45  ;;  %1537 = vst.msk [vmem:[%s2796_s29 + $0x100] sm:$0xff] %vm764_vm0, %v1481_v41 }
 0x336   : > { %1538 = vst.msk [vmem:[%s2796_s29 + $0x108] sm:$0xff] %vm764_vm0, %v1482_v31  ;;  %1539 = vst.msk [vmem:[%s2796_s29 + $0x110] sm:$0xff] %vm764_vm0, %v1483_v5 }
 0x337   : > { %1540 = vst.msk [vmem:[%s2796_s29 + $0x118] sm:$0xff] %vm764_vm0, %v1484_v59  ;;  %1541 = vst.msk [vmem:[%s2796_s29 + $0x120] sm:$0xff] %vm764_vm0, %v1485_v27 }
 0x338   : > { %1542 = vst.msk [vmem:[%s2796_s29 + $0x128] sm:$0xff] %vm764_vm0, %v1486_v14  ;;  %1543 = vst.msk [vmem:[%s2796_s29 + $0x130] sm:$0xff] %vm764_vm0, %v1487_v2 }
 0x339   : > { %1544 = vst.msk [vmem:[%s2796_s29 + $0x138] sm:$0xff] %vm764_vm0, %v1488_v16  ;;  %1545 = vst.msk [vmem:[%s2796_s29 + $0x140] sm:$0xff] %vm764_vm0, %v1489_v22 }
 0x33a   : > { %1546 = vst.msk [vmem:[%s2796_s29 + $0x148] sm:$0xff] %vm764_vm0, %v1490_v35  ;;  %1547 = vst.msk [vmem:[%s2796_s29 + $0x150] sm:$0xff] %vm764_vm0, %v1491_v6 }
 0x33b   : > { %1548 = vst.msk [vmem:[%s2796_s29 + $0x158] sm:$0xff] %vm764_vm0, %v1492_v38  ;;  %1549 = vst.msk [vmem:[%s2796_s29 + $0x160] sm:$0xff] %vm764_vm0, %v1493_v44 }
 0x33c   : > { %1550 = vst.msk [vmem:[%s2796_s29 + $0x168] sm:$0xff] %vm764_vm0, %v1494_v24  ;;  %1551 = vst.msk [vmem:[%s2796_s29 + $0x170] sm:$0xff] %vm764_vm0, %v1495_v57 }
 0x33d   : > { %1552 = vst.msk [vmem:[%s2796_s29 + $0x178] sm:$0xff] %vm764_vm0, %v1496_v54  ;;  %1553 = vst.msk [vmem:[%s2796_s29 + $0x180] sm:$0xff] %vm764_vm0, %v1497_v23 }
 0x33e   : > { %1554 = vst.msk [vmem:[%s2796_s29 + $0x188] sm:$0xff] %vm764_vm0, %v1498_v25  ;;  %1555 = vst.msk [vmem:[%s2796_s29 + $0x190] sm:$0xff] %vm764_vm0, %v1499_v42 }
 0x33f   : > { %1556 = vst.msk [vmem:[%s2796_s29 + $0x198] sm:$0xff] %vm764_vm0, %v1500_v12  ;;  %1557 = vst.msk [vmem:[%s2796_s29 + $0x1a0] sm:$0xff] %vm764_vm0, %v1501_v8 }
 0x340   : > { %1558 = vst.msk [vmem:[%s2796_s29 + $0x1a8] sm:$0xff] %vm764_vm0, %v1502_v21  ;;  %1559 = vst.msk [vmem:[%s2796_s29 + $0x1b0] sm:$0xff] %vm764_vm0, %v1503_v15 }
 0x341   : > { %1560 = vst.msk [vmem:[%s2796_s29 + $0x1b8] sm:$0xff] %vm764_vm0, %v1504_v50 }
 0x342 PF: > { %s13_s12 = sadd.s32 1, %s1975_s12  }
 0x343   : > { %p10_p4 = scmp.ge.s32.totalorder %s13_s12, 4  }
 0x345   :  { %12 = sbr.rel (!%p10_p4) target bundleno = 1 (0x1), region = 62 }

</bundles_post_ra>
